<compile_context>
chip_gen: v6e
topology: v6e:2x2x1
jax: 0.10.0
libtpu: 0.0.40
codegen_flags: <defaults>
</compile_context>

<pallas_src>
import functools
import math

import jax
import jax.numpy as jnp
from jax.experimental import pallas as pl
from jax.experimental.pallas import tpu as pltpu

LATENT_DIM = 32
IMG_SHAPE = (1, 16, 16)                                  # (C, H, W)
IMG_DIM = IMG_SHAPE[0] * IMG_SHAPE[1] * IMG_SHAPE[2]     # 256
IN_DIM = LATENT_DIM + 1                                  # 33 (z concat num_nodes)
EPS = 0.8                                                # BatchNorm1d(out_feat, 0.8) -> eps=0.8
LEAK = 0.2

LAYER_DIMS = [(IN_DIM, 128), (128, 256), (256, 512), (512, 1024), (1024, IMG_DIM)]


def _leaky_relu(x):
    # max(x, 0.2*x) == LeakyReLU(0.2) for any sign of x.
    return jnp.maximum(x, LEAK * x)


def _batchnorm(x, gamma, beta):
    # Training-mode batch statistics (biased variance), matching nn.BatchNorm1d.
    # One-pass variance E[x^2] - mean^2 is safe here in f32 with eps=0.8.
    mean = jnp.mean(x, axis=0, keepdims=True)
    mean_sq = jnp.mean(x * x, axis=0, keepdims=True)
    var = mean_sq - mean * mean
    scale = gamma * jax.lax.rsqrt(var + EPS)      # fold gamma into the rsqrt scale
    shift = beta - mean * scale
    return x * scale + shift


def generator_kernel(z_ref, n_ref,
                     w1z_ref, w1n_ref, b1_ref,
                     w2_ref, g2_ref, be2_ref,
                     w3_ref, g3_ref, be3_ref,
                     w4_ref, g4_ref, be4_ref,
                     w5_ref, b5_ref,
                     out_ref):
    # block 1: Linear(33->128) (no normalize) + LeakyReLU.
    # The concatenated num_nodes column is applied as a rank-1 VPU update so
    # no padding / in-kernel concat is needed.
    z = z_ref[...].astype(jnp.bfloat16)                                   # (Bg, 32)
    n = n_ref[...].astype(jnp.float32)                                    # (Bg, 1)
    h = jnp.dot(z, w1z_ref[...], preferred_element_type=jnp.float32)      # (Bg, 128) f32
    h = h + n * w1n_ref[...] + b1_ref[...]
    h = _leaky_relu(h)

    # block 2: Linear(128->256, bias cancelled) + BatchNorm1d(256, eps=0.8) + LeakyReLU
    h = jnp.dot(h.astype(jnp.bfloat16), w2_ref[...],
                preferred_element_type=jnp.float32)
    h = _leaky_relu(_batchnorm(h, g2_ref[...], be2_ref[...]))

    # block 3: Linear(256->512, bias cancelled) + BatchNorm1d(512, eps=0.8) + LeakyReLU
    h = jnp.dot(h.astype(jnp.bfloat16), w3_ref[...],
                preferred_element_type=jnp.float32)
    h = _leaky_relu(_batchnorm(h, g3_ref[...], be3_ref[...]))

    # block 4: Linear(512->1024, bias cancelled) + BatchNorm1d(1024, eps=0.8) + LeakyReLU
    h = jnp.dot(h.astype(jnp.bfloat16), w4_ref[...],
                preferred_element_type=jnp.float32)
    h = _leaky_relu(_batchnorm(h, g4_ref[...], be4_ref[...]))

    # head: Linear(1024 -> prod(img_shape)) + Tanh, lane-dense 256-wide store.
    o = jnp.dot(h.astype(jnp.bfloat16), w5_ref[...],
                preferred_element_type=jnp.float32) + b5_ref[...]
    out_ref[...] = jnp.tanh(o)


def _linear_params(key, in_feat, out_feat):
    # PyTorch nn.Linear default init: U(-1/sqrt(in), 1/sqrt(in)) for W and b.
    kw, kb = jax.random.split(key)
    bound = 1.0 / math.sqrt(in_feat)
    w = jax.random.uniform(kw, (in_feat, out_feat), jnp.float32, -bound, bound)
    b = jax.random.uniform(kb, (1, out_feat), jnp.float32, -bound, bound)
    return w, b


def init_params(key):
    k1, k2, k3, k4, k5 = jax.random.split(key, 5)
    # Layer 1 is split: rows [:32] multiply z on the MXU (bf16), row [32]
    # multiplies num_nodes as a rank-1 f32 VPU update.
    w1, b1 = _linear_params(k1, IN_DIM, 128)
    w1z = w1[:LATENT_DIM].astype(jnp.bfloat16)               # (32, 128) bf16
    w1n = w1[LATENT_DIM:LATENT_DIM + 1]                      # (1, 128)  f32
    w2, _ = _linear_params(k2, 128, 256)                     # b2/b3/b4 are cancelled
    w3, _ = _linear_params(k3, 256, 512)                     # by train-mode BatchNorm
    w4, _ = _linear_params(k4, 512, 1024)
    w5, b5 = _linear_params(k5, 1024, IMG_DIM)
    # BatchNorm affine params: PyTorch default gamma=1, beta=0 (kept f32).
    g2, be2 = jnp.ones((1, 256), jnp.float32), jnp.zeros((1, 256), jnp.float32)
    g3, be3 = jnp.ones((1, 512), jnp.float32), jnp.zeros((1, 512), jnp.float32)
    g4, be4 = jnp.ones((1, 1024), jnp.float32), jnp.zeros((1, 1024), jnp.float32)
    return (w1z, w1n, b1,
            w2.astype(jnp.bfloat16), g2, be2,
            w3.astype(jnp.bfloat16), g3, be3,
            w4.astype(jnp.bfloat16), g4, be4,
            w5.astype(jnp.bfloat16), b5)


def _cost_estimate(B):
    flops = 2 * B * sum(i * o for i, o in LAYER_DIMS)
    transcendentals = B * IMG_DIM + (256 + 512 + 1024)        # tanh + BN rsqrt
    weight_bytes = sum(i * o for i, o in LAYER_DIMS) * 2      # bf16 weights (read once)
    bias_affine_bytes = (128 + 2 * 256 + 2 * 512 + 2 * 1024 + IMG_DIM) * 4
    io_bytes = B * (LATENT_DIM + 1 + IMG_DIM) * 4
    return pl.CostEstimate(flops=flops,
                           transcendentals=transcendentals,
                           bytes_accessed=weight_bytes + bias_affine_bytes + io_bytes)


@functools.partial(jax.jit, static_argnames=("group_size", "flat_output"))
def generator_forward(z, num_nodes, *params, group_size=None, flat_output=False):
    """Run the generator.

    z:         (B, LATENT_DIM)   any float dtype (cast inside the kernel)
    num_nodes: (B, 1)            any numeric dtype (cast inside the kernel)
    group_size: rows per grid step. Default = B (one group == exactly one
        PyTorch forward). Pass a divisor of B only for genuinely independent
        batches: BatchNorm statistics are computed per group.
    flat_output: if True, return the lane-dense (B, 256) slab and let the
        consumer fold the (1,16,16) reshape into its own layout.
    """
    B = z.shape[0]
    if group_size is None:
        group_size = B
    assert B % group_size == 0, (B, group_size)
    n_groups = B // group_size

    zg = z.reshape(n_groups, group_size, LATENT_DIM)
    ng = num_nodes.reshape(n_groups, group_size, 1)

    # Per-group I/O tiles (leading group dim squeezed away inside the kernel).
    z_spec = pl.BlockSpec((None, group_size, LATENT_DIM), lambda g: (g, 0, 0))
    n_spec = pl.BlockSpec((None, group_size, 1), lambda g: (g, 0, 0))
    out_spec = pl.BlockSpec((None, group_size, IMG_DIM), lambda g: (g, 0, 0))
    # Weights / biases / BN params: constant block index -> DMAed on the first
    # grid step only, then VMEM-resident for every subsequent group.
    param_specs = [
        pl.BlockSpec(p.shape, lambda g, _nd=p.ndim: (0,) * _nd) for p in params
    ]

    flat = pl.pallas_call(
        generator_kernel,
        out_shape=jax.ShapeDtypeStruct((n_groups, group_size, IMG_DIM), jnp.float32),
        grid=(n_groups,),
        in_specs=[z_spec, n_spec, *param_specs],
        out_specs=out_spec,
        compiler_params=pltpu.CompilerParams(
            # Groups are independent -> shard across both v7x TensorCores.
            dimension_semantics=("parallel",),
        ),
        cost_estimate=_cost_estimate(B),
    )(zg, ng, *params)

    if flat_output:
        return flat.reshape(B, IMG_DIM)                       # lane-dense slab
    return flat.reshape(B, *IMG_SHAPE)                        # (B, C, H, W)


if __name__ == "__main__":
    key = jax.random.PRNGKey(0)
    kp, kz, kn = jax.random.split(key, 3)

    params = init_params(kp)

    # 1) Exact module semantics: one group == one PyTorch forward over the batch.
    B = 8  # batch > 1 required for BatchNorm batch statistics
    z = jax.random.normal(kz, (B, LATENT_DIM), jnp.float32)
    num_nodes = jax.random.randint(kn, (B, 1), 1, 17).astype(jnp.float32)

    img = generator_forward(z, num_nodes, *params)
    jax.block_until_ready(img)
    assert img.shape == (B, *IMG_SHAPE), img.shape
    assert bool(jnp.all(jnp.isfinite(img)))
    assert bool(jnp.all(jnp.abs(img) <= 1.0))  # tanh range

    # 2) Multi-group path (grid > 1): weights stay VMEM-resident across groups,
    #    each group of 8 rows is an independent forward (per-group BN stats).
    B2, GS = 16, 8
    z2 = jax.random.normal(kz, (B2, LATENT_DIM), jnp.float32)
    n2 = jax.random.randint(kn, (B2, 1), 1, 17).astype(jnp.float32)
    img2 = generator_forward(z2, n2, *params, group_size=GS, flat_output=True)
    jax.block_until_ready(img2)
    assert img2.shape == (B2, IMG_DIM), img2.shape
    assert bool(jnp.all(jnp.isfinite(img2)))
    assert bool(jnp.all(jnp.abs(img2) <= 1.0))

    # TODO(synk): BatchNorm running-stat updates (eval-mode behavior) are not
    # reproduced; this kernel implements the train-mode forward only.
    print("KERNEL_OK")
</pallas_src>

<mosaic_0001>
module attributes {stable_mosaic.version = 11 : i64} {
  func.func @generator_kernel(%arg0: i32, %arg1: memref<1x8x32xf32, #tpu.memory_space<vmem>>, %arg2: memref<1x8x1xf32, #tpu.memory_space<vmem>>, %arg3: memref<32x128xbf16, #tpu.memory_space<vmem>>, %arg4: memref<1x128xf32, #tpu.memory_space<vmem>>, %arg5: memref<1x128xf32, #tpu.memory_space<vmem>>, %arg6: memref<128x256xbf16, #tpu.memory_space<vmem>>, %arg7: memref<1x256xf32, #tpu.memory_space<vmem>>, %arg8: memref<1x256xf32, #tpu.memory_space<vmem>>, %arg9: memref<256x512xbf16, #tpu.memory_space<vmem>>, %arg10: memref<1x512xf32, #tpu.memory_space<vmem>>, %arg11: memref<1x512xf32, #tpu.memory_space<vmem>>, %arg12: memref<512x1024xbf16, #tpu.memory_space<vmem>>, %arg13: memref<1x1024xf32, #tpu.memory_space<vmem>>, %arg14: memref<1x1024xf32, #tpu.memory_space<vmem>>, %arg15: memref<1024x256xbf16, #tpu.memory_space<vmem>>, %arg16: memref<1x256xf32, #tpu.memory_space<vmem>>, %arg17: memref<1x8x256xf32, #tpu.memory_space<vmem>>) attributes {dimension_semantics = [#tpu.dimension_semantics<parallel>], iteration_bounds = array<i64: 1>, scalar_prefetch = 0 : i64, scratch_operands = 0 : i64, tpu.core_type = #tpu.core_type<tc>, window_params = [{transform_indices = @transform_0, window_bounds = array<i64: 1, 8, 32>}, {transform_indices = @transform_1, window_bounds = array<i64: 1, 8, 1>}, {pipeline_mode = #tpu.pipeline_mode<synchronous>, transform_indices = @transform_2, window_bounds = array<i64: 32, 128>}, {pipeline_mode = #tpu.pipeline_mode<synchronous>, transform_indices = @transform_3, window_bounds = array<i64: 1, 128>}, {pipeline_mode = #tpu.pipeline_mode<synchronous>, transform_indices = @transform_4, window_bounds = array<i64: 1, 128>}, {pipeline_mode = #tpu.pipeline_mode<synchronous>, transform_indices = @transform_5, window_bounds = array<i64: 128, 256>}, {pipeline_mode = #tpu.pipeline_mode<synchronous>, transform_indices = @transform_6, window_bounds = array<i64: 1, 256>}, {pipeline_mode = #tpu.pipeline_mode<synchronous>, transform_indices = @transform_7, window_bounds = array<i64: 1, 256>}, {pipeline_mode = #tpu.pipeline_mode<synchronous>, transform_indices = @transform_8, window_bounds = array<i64: 256, 512>}, {pipeline_mode = #tpu.pipeline_mode<synchronous>, transform_indices = @transform_9, window_bounds = array<i64: 1, 512>}, {pipeline_mode = #tpu.pipeline_mode<synchronous>, transform_indices = @transform_10, window_bounds = array<i64: 1, 512>}, {pipeline_mode = #tpu.pipeline_mode<synchronous>, transform_indices = @transform_11, window_bounds = array<i64: 512, 1024>}, {pipeline_mode = #tpu.pipeline_mode<synchronous>, transform_indices = @transform_12, window_bounds = array<i64: 1, 1024>}, {pipeline_mode = #tpu.pipeline_mode<synchronous>, transform_indices = @transform_13, window_bounds = array<i64: 1, 1024>}, {pipeline_mode = #tpu.pipeline_mode<synchronous>, transform_indices = @transform_14, window_bounds = array<i64: 1024, 256>}, {pipeline_mode = #tpu.pipeline_mode<synchronous>, transform_indices = @transform_15, window_bounds = array<i64: 1, 256>}, {transform_indices = @transform_16, window_bounds = array<i64: 1, 8, 256>}]} {
    %c0 = arith.constant 0 : index
    %c0_0 = arith.constant 0 : index
    %c0_1 = arith.constant 0 : index
    %0 = vector.load %arg1[%c0, %c0_0, %c0_1] : memref<1x8x32xf32, #tpu.memory_space<vmem>>, vector<1x8x32xf32>
    %1 = vector.shape_cast %0 : vector<1x8x32xf32> to vector<8x32xf32>
    %2 = arith.truncf %1 : vector<8x32xf32> to vector<8x32xbf16>
    %c0_2 = arith.constant 0 : index
    %c0_3 = arith.constant 0 : index
    %c0_4 = arith.constant 0 : index
    %3 = vector.load %arg2[%c0_2, %c0_3, %c0_4] : memref<1x8x1xf32, #tpu.memory_space<vmem>>, vector<1x8x1xf32>
    %4 = vector.shape_cast %3 : vector<1x8x1xf32> to vector<8x1xf32>
    %c0_5 = arith.constant 0 : index
    %c0_6 = arith.constant 0 : index
    %5 = vector.load %arg3[%c0_5, %c0_6] : memref<32x128xbf16, #tpu.memory_space<vmem>>, vector<32x128xbf16>
    %cst = arith.constant dense<0.000000e+00> : vector<8x128xf32>
    %6 = tpu.matmul %2, %5, %cst {dimension_numbers = #tpu.dot_dimension_numbers<[1], [0], [0], [1], [0, 0, 1, 1], [], []>} : vector<8x32xbf16>, vector<32x128xbf16>, vector<8x128xf32> -> vector<8x128xf32>
    %c0_7 = arith.constant 0 : index
    %c0_8 = arith.constant 0 : index
    %7 = vector.load %arg4[%c0_7, %c0_8] : memref<1x128xf32, #tpu.memory_space<vmem>>, vector<1x128xf32>
    %8 = vector.broadcast %4 : vector<8x1xf32> to vector<8x128xf32>
    %9 = vector.broadcast %7 : vector<1x128xf32> to vector<8x128xf32>
    %10 = arith.mulf %8, %9 : vector<8x128xf32>
    %11 = arith.addf %6, %10 : vector<8x128xf32>
    %c0_9 = arith.constant 0 : index
    %c0_10 = arith.constant 0 : index
    %12 = vector.load %arg5[%c0_9, %c0_10] : memref<1x128xf32, #tpu.memory_space<vmem>>, vector<1x128xf32>
    %13 = vector.broadcast %12 : vector<1x128xf32> to vector<8x128xf32>
    %14 = arith.addf %11, %13 : vector<8x128xf32>
    %cst_11 = arith.constant 2.000000e-01 : f32
    %15 = vector.broadcast %cst_11 : f32 to vector<8x128xf32>
    %16 = arith.mulf %15, %14 : vector<8x128xf32>
    %17 = arith.maximumf %14, %16 : vector<8x128xf32>
    %18 = arith.truncf %17 : vector<8x128xf32> to vector<8x128xbf16>
    %c0_12 = arith.constant 0 : index
    %c0_13 = arith.constant 0 : index
    %19 = vector.load %arg6[%c0_12, %c0_13] : memref<128x256xbf16, #tpu.memory_space<vmem>>, vector<128x256xbf16>
    %cst_14 = arith.constant dense<0.000000e+00> : vector<8x256xf32>
    %20 = tpu.matmul %18, %19, %cst_14 {dimension_numbers = #tpu.dot_dimension_numbers<[1], [0], [0], [1], [0, 0, 1, 1], [], []>} : vector<8x128xbf16>, vector<128x256xbf16>, vector<8x256xf32> -> vector<8x256xf32>
    %c0_15 = arith.constant 0 : index
    %c0_16 = arith.constant 0 : index
    %21 = vector.load %arg7[%c0_15, %c0_16] : memref<1x256xf32, #tpu.memory_space<vmem>>, vector<1x256xf32>
    %c0_17 = arith.constant 0 : index
    %c0_18 = arith.constant 0 : index
    %22 = vector.load %arg8[%c0_17, %c0_18] : memref<1x256xf32, #tpu.memory_space<vmem>>, vector<1x256xf32>
    %cst_19 = arith.constant dense<0.000000e+00> : vector<256xf32>
    %23 = vector.multi_reduction <add>, %20, %cst_19 [0] : vector<8x256xf32> to vector<256xf32>
    %24 = vector.shape_cast %23 : vector<256xf32> to vector<1x256xf32>
    %cst_20 = arith.constant 8.000000e+00 : f32
    %25 = vector.broadcast %cst_20 : f32 to vector<1x256xf32>
    %26 = arith.divf %24, %25 : vector<1x256xf32>
    %27 = arith.mulf %20, %20 : vector<8x256xf32>
    %cst_21 = arith.constant dense<0.000000e+00> : vector<256xf32>
    %28 = vector.multi_reduction <add>, %27, %cst_21 [0] : vector<8x256xf32> to vector<256xf32>
    %29 = vector.shape_cast %28 : vector<256xf32> to vector<1x256xf32>
    %cst_22 = arith.constant 8.000000e+00 : f32
    %30 = vector.broadcast %cst_22 : f32 to vector<1x256xf32>
    %31 = arith.divf %29, %30 : vector<1x256xf32>
    %32 = arith.mulf %26, %26 : vector<1x256xf32>
    %33 = arith.subf %31, %32 : vector<1x256xf32>
    %cst_23 = arith.constant 8.000000e-01 : f32
    %34 = vector.broadcast %cst_23 : f32 to vector<1x256xf32>
    %35 = arith.addf %33, %34 : vector<1x256xf32>
    %36 = math.rsqrt %35 : vector<1x256xf32>
    %37 = arith.mulf %21, %36 : vector<1x256xf32>
    %38 = arith.mulf %26, %37 : vector<1x256xf32>
    %39 = arith.subf %22, %38 : vector<1x256xf32>
    %40 = vector.broadcast %37 : vector<1x256xf32> to vector<8x256xf32>
    %41 = arith.mulf %20, %40 : vector<8x256xf32>
    %42 = vector.broadcast %39 : vector<1x256xf32> to vector<8x256xf32>
    %43 = arith.addf %41, %42 : vector<8x256xf32>
    %cst_24 = arith.constant 2.000000e-01 : f32
    %44 = vector.broadcast %cst_24 : f32 to vector<8x256xf32>
    %45 = arith.mulf %44, %43 : vector<8x256xf32>
    %46 = arith.maximumf %43, %45 : vector<8x256xf32>
    %47 = arith.truncf %46 : vector<8x256xf32> to vector<8x256xbf16>
    %c0_25 = arith.constant 0 : index
    %c0_26 = arith.constant 0 : index
    %48 = vector.load %arg9[%c0_25, %c0_26] : memref<256x512xbf16, #tpu.memory_space<vmem>>, vector<256x512xbf16>
    %cst_27 = arith.constant dense<0.000000e+00> : vector<8x512xf32>
    %49 = tpu.matmul %47, %48, %cst_27 {dimension_numbers = #tpu.dot_dimension_numbers<[1], [0], [0], [1], [0, 0, 1, 1], [], []>} : vector<8x256xbf16>, vector<256x512xbf16>, vector<8x512xf32> -> vector<8x512xf32>
    %c0_28 = arith.constant 0 : index
    %c0_29 = arith.constant 0 : index
    %50 = vector.load %arg10[%c0_28, %c0_29] : memref<1x512xf32, #tpu.memory_space<vmem>>, vector<1x512xf32>
    %c0_30 = arith.constant 0 : index
    %c0_31 = arith.constant 0 : index
    %51 = vector.load %arg11[%c0_30, %c0_31] : memref<1x512xf32, #tpu.memory_space<vmem>>, vector<1x512xf32>
    %cst_32 = arith.constant dense<0.000000e+00> : vector<512xf32>
    %52 = vector.multi_reduction <add>, %49, %cst_32 [0] : vector<8x512xf32> to vector<512xf32>
    %53 = vector.shape_cast %52 : vector<512xf32> to vector<1x512xf32>
    %cst_33 = arith.constant 8.000000e+00 : f32
    %54 = vector.broadcast %cst_33 : f32 to vector<1x512xf32>
    %55 = arith.divf %53, %54 : vector<1x512xf32>
    %56 = arith.mulf %49, %49 : vector<8x512xf32>
    %cst_34 = arith.constant dense<0.000000e+00> : vector<512xf32>
    %57 = vector.multi_reduction <add>, %56, %cst_34 [0] : vector<8x512xf32> to vector<512xf32>
    %58 = vector.shape_cast %57 : vector<512xf32> to vector<1x512xf32>
    %cst_35 = arith.constant 8.000000e+00 : f32
    %59 = vector.broadcast %cst_35 : f32 to vector<1x512xf32>
    %60 = arith.divf %58, %59 : vector<1x512xf32>
    %61 = arith.mulf %55, %55 : vector<1x512xf32>
    %62 = arith.subf %60, %61 : vector<1x512xf32>
    %cst_36 = arith.constant 8.000000e-01 : f32
    %63 = vector.broadcast %cst_36 : f32 to vector<1x512xf32>
    %64 = arith.addf %62, %63 : vector<1x512xf32>
    %65 = math.rsqrt %64 : vector<1x512xf32>
    %66 = arith.mulf %50, %65 : vector<1x512xf32>
    %67 = arith.mulf %55, %66 : vector<1x512xf32>
    %68 = arith.subf %51, %67 : vector<1x512xf32>
    %69 = vector.broadcast %66 : vector<1x512xf32> to vector<8x512xf32>
    %70 = arith.mulf %49, %69 : vector<8x512xf32>
    %71 = vector.broadcast %68 : vector<1x512xf32> to vector<8x512xf32>
    %72 = arith.addf %70, %71 : vector<8x512xf32>
    %cst_37 = arith.constant 2.000000e-01 : f32
    %73 = vector.broadcast %cst_37 : f32 to vector<8x512xf32>
    %74 = arith.mulf %73, %72 : vector<8x512xf32>
    %75 = arith.maximumf %72, %74 : vector<8x512xf32>
    %76 = arith.truncf %75 : vector<8x512xf32> to vector<8x512xbf16>
    %c0_38 = arith.constant 0 : index
    %c0_39 = arith.constant 0 : index
    %77 = vector.load %arg12[%c0_38, %c0_39] : memref<512x1024xbf16, #tpu.memory_space<vmem>>, vector<512x1024xbf16>
    %cst_40 = arith.constant dense<0.000000e+00> : vector<8x1024xf32>
    %78 = tpu.matmul %76, %77, %cst_40 {dimension_numbers = #tpu.dot_dimension_numbers<[1], [0], [0], [1], [0, 0, 1, 1], [], []>} : vector<8x512xbf16>, vector<512x1024xbf16>, vector<8x1024xf32> -> vector<8x1024xf32>
    %c0_41 = arith.constant 0 : index
    %c0_42 = arith.constant 0 : index
    %79 = vector.load %arg13[%c0_41, %c0_42] : memref<1x1024xf32, #tpu.memory_space<vmem>>, vector<1x1024xf32>
    %c0_43 = arith.constant 0 : index
    %c0_44 = arith.constant 0 : index
    %80 = vector.load %arg14[%c0_43, %c0_44] : memref<1x1024xf32, #tpu.memory_space<vmem>>, vector<1x1024xf32>
    %cst_45 = arith.constant dense<0.000000e+00> : vector<1024xf32>
    %81 = vector.multi_reduction <add>, %78, %cst_45 [0] : vector<8x1024xf32> to vector<1024xf32>
    %82 = vector.shape_cast %81 : vector<1024xf32> to vector<1x1024xf32>
    %cst_46 = arith.constant 8.000000e+00 : f32
    %83 = vector.broadcast %cst_46 : f32 to vector<1x1024xf32>
    %84 = arith.divf %82, %83 : vector<1x1024xf32>
    %85 = arith.mulf %78, %78 : vector<8x1024xf32>
    %cst_47 = arith.constant dense<0.000000e+00> : vector<1024xf32>
    %86 = vector.multi_reduction <add>, %85, %cst_47 [0] : vector<8x1024xf32> to vector<1024xf32>
    %87 = vector.shape_cast %86 : vector<1024xf32> to vector<1x1024xf32>
    %cst_48 = arith.constant 8.000000e+00 : f32
    %88 = vector.broadcast %cst_48 : f32 to vector<1x1024xf32>
    %89 = arith.divf %87, %88 : vector<1x1024xf32>
    %90 = arith.mulf %84, %84 : vector<1x1024xf32>
    %91 = arith.subf %89, %90 : vector<1x1024xf32>
    %cst_49 = arith.constant 8.000000e-01 : f32
    %92 = vector.broadcast %cst_49 : f32 to vector<1x1024xf32>
    %93 = arith.addf %91, %92 : vector<1x1024xf32>
    %94 = math.rsqrt %93 : vector<1x1024xf32>
    %95 = arith.mulf %79, %94 : vector<1x1024xf32>
    %96 = arith.mulf %84, %95 : vector<1x1024xf32>
    %97 = arith.subf %80, %96 : vector<1x1024xf32>
    %98 = vector.broadcast %95 : vector<1x1024xf32> to vector<8x1024xf32>
    %99 = arith.mulf %78, %98 : vector<8x1024xf32>
    %100 = vector.broadcast %97 : vector<1x1024xf32> to vector<8x1024xf32>
    %101 = arith.addf %99, %100 : vector<8x1024xf32>
    %cst_50 = arith.constant 2.000000e-01 : f32
    %102 = vector.broadcast %cst_50 : f32 to vector<8x1024xf32>
    %103 = arith.mulf %102, %101 : vector<8x1024xf32>
    %104 = arith.maximumf %101, %103 : vector<8x1024xf32>
    %105 = arith.truncf %104 : vector<8x1024xf32> to vector<8x1024xbf16>
    %c0_51 = arith.constant 0 : index
    %c0_52 = arith.constant 0 : index
    %106 = vector.load %arg15[%c0_51, %c0_52] : memref<1024x256xbf16, #tpu.memory_space<vmem>>, vector<1024x256xbf16>
    %cst_53 = arith.constant dense<0.000000e+00> : vector<8x256xf32>
    %107 = tpu.matmul %105, %106, %cst_53 {dimension_numbers = #tpu.dot_dimension_numbers<[1], [0], [0], [1], [0, 0, 1, 1], [], []>} : vector<8x1024xbf16>, vector<1024x256xbf16>, vector<8x256xf32> -> vector<8x256xf32>
    %c0_54 = arith.constant 0 : index
    %c0_55 = arith.constant 0 : index
    %108 = vector.load %arg16[%c0_54, %c0_55] : memref<1x256xf32, #tpu.memory_space<vmem>>, vector<1x256xf32>
    %109 = vector.broadcast %108 : vector<1x256xf32> to vector<8x256xf32>
    %110 = arith.addf %107, %109 : vector<8x256xf32>
    %111 = math.tanh %110 : vector<8x256xf32>
    %c0_56 = arith.constant 0 : index
    %c0_57 = arith.constant 0 : index
    %c0_58 = arith.constant 0 : index
    %112 = vector.load %arg17[%c0_56, %c0_57, %c0_58] : memref<1x8x256xf32, #tpu.memory_space<vmem>>, vector<1x8x256xf32>
    %113 = vector.shape_cast %112 : vector<1x8x256xf32> to vector<8x256xf32>
    %114 = vector.shape_cast %111 : vector<8x256xf32> to vector<1x8x256xf32>
    tpu.vector_store %arg17[%c0_56, %c0_57, %c0_58], %114 {strides = array<i32>} : memref<1x8x256xf32, #tpu.memory_space<vmem>>, vector<1x8x256xf32>,
    return
  }
  func.func @transform_0(%arg0: i32) -> (i32, i32, i32) {
    %c0_i32 = arith.constant 0 : i32
    %c0_i32_0 = arith.constant 0 : i32
    %c0_i32_1 = arith.constant 0 : i32
    return %arg0, %c0_i32, %c0_i32_0 : i32, i32, i32
  }
  func.func @transform_1(%arg0: i32) -> (i32, i32, i32) {
    %c0_i32 = arith.constant 0 : i32
    %c0_i32_0 = arith.constant 0 : i32
    %c0_i32_1 = arith.constant 0 : i32
    return %arg0, %c0_i32, %c0_i32_0 : i32, i32, i32
  }
  func.func @transform_2(%arg0: i32) -> (i32, i32) {
    %c0_i32 = arith.constant 0 : i32
    %c0_i32_0 = arith.constant 0 : i32
    %c0_i32_1 = arith.constant 0 : i32
    return %c0_i32, %c0_i32_0 : i32, i32
  }
  func.func @transform_3(%arg0: i32) -> (i32, i32) {
    %c0_i32 = arith.constant 0 : i32
    %c0_i32_0 = arith.constant 0 : i32
    %c0_i32_1 = arith.constant 0 : i32
    return %c0_i32, %c0_i32_0 : i32, i32
  }
  func.func @transform_4(%arg0: i32) -> (i32, i32) {
    %c0_i32 = arith.constant 0 : i32
    %c0_i32_0 = arith.constant 0 : i32
    %c0_i32_1 = arith.constant 0 : i32
    return %c0_i32, %c0_i32_0 : i32, i32
  }
  func.func @transform_5(%arg0: i32) -> (i32, i32) {
    %c0_i32 = arith.constant 0 : i32
    %c0_i32_0 = arith.constant 0 : i32
    %c0_i32_1 = arith.constant 0 : i32
    return %c0_i32, %c0_i32_0 : i32, i32
  }
  func.func @transform_6(%arg0: i32) -> (i32, i32) {
    %c0_i32 = arith.constant 0 : i32
    %c0_i32_0 = arith.constant 0 : i32
    %c0_i32_1 = arith.constant 0 : i32
    return %c0_i32, %c0_i32_0 : i32, i32
  }
  func.func @transform_7(%arg0: i32) -> (i32, i32) {
    %c0_i32 = arith.constant 0 : i32
    %c0_i32_0 = arith.constant 0 : i32
    %c0_i32_1 = arith.constant 0 : i32
    return %c0_i32, %c0_i32_0 : i32, i32
  }
  func.func @transform_8(%arg0: i32) -> (i32, i32) {
    %c0_i32 = arith.constant 0 : i32
    %c0_i32_0 = arith.constant 0 : i32
    %c0_i32_1 = arith.constant 0 : i32
    return %c0_i32, %c0_i32_0 : i32, i32
  }
  func.func @transform_9(%arg0: i32) -> (i32, i32) {
    %c0_i32 = arith.constant 0 : i32
    %c0_i32_0 = arith.constant 0 : i32
    %c0_i32_1 = arith.constant 0 : i32
    return %c0_i32, %c0_i32_0 : i32, i32
  }
  func.func @transform_10(%arg0: i32) -> (i32, i32) {
    %c0_i32 = arith.constant 0 : i32
    %c0_i32_0 = arith.constant 0 : i32
    %c0_i32_1 = arith.constant 0 : i32
    return %c0_i32, %c0_i32_0 : i32, i32
  }
  func.func @transform_11(%arg0: i32) -> (i32, i32) {
    %c0_i32 = arith.constant 0 : i32
    %c0_i32_0 = arith.constant 0 : i32
    %c0_i32_1 = arith.constant 0 : i32
    return %c0_i32, %c0_i32_0 : i32, i32
  }
  func.func @transform_12(%arg0: i32) -> (i32, i32) {
    %c0_i32 = arith.constant 0 : i32
    %c0_i32_0 = arith.constant 0 : i32
    %c0_i32_1 = arith.constant 0 : i32
    return %c0_i32, %c0_i32_0 : i32, i32
  }
  func.func @transform_13(%arg0: i32) -> (i32, i32) {
    %c0_i32 = arith.constant 0 : i32
    %c0_i32_0 = arith.constant 0 : i32
    %c0_i32_1 = arith.constant 0 : i32
    return %c0_i32, %c0_i32_0 : i32, i32
  }
  func.func @transform_14(%arg0: i32) -> (i32, i32) {
    %c0_i32 = arith.constant 0 : i32
    %c0_i32_0 = arith.constant 0 : i32
    %c0_i32_1 = arith.constant 0 : i32
    return %c0_i32, %c0_i32_0 : i32, i32
  }
  func.func @transform_15(%arg0: i32) -> (i32, i32) {
    %c0_i32 = arith.constant 0 : i32
    %c0_i32_0 = arith.constant 0 : i32
    %c0_i32_1 = arith.constant 0 : i32
    return %c0_i32, %c0_i32_0 : i32, i32
  }
  func.func @transform_16(%arg0: i32) -> (i32, i32, i32) {
    %c0_i32 = arith.constant 0 : i32
    %c0_i32_0 = arith.constant 0 : i32
    %c0_i32_1 = arith.constant 0 : i32
    return %arg0, %c0_i32, %c0_i32_0 : i32, i32, i32
  }
}

</mosaic_0001>

<bundles_post_ra>
// kernel: generator_forward.1
= control target key start
LH: loop header
LB: loop body
LE: loop exit
PB: predicated region body
PF: predicated region fallthrough
CT: control target
= control target key end

     0   :  { %s5934_s0 = inlined_call_operand.hbm [shape: f32[1,8,32], index: 0, kind: input, shape index: {}]   ;;  %s5935_s1 = inlined_call_operand.vmem [shape: f32[1,8,1], index: 1, kind: input, shape index: {}]   ;;  %s5936_s2 = inlined_call_operand.vmem [shape: bf16[32,128], index: 2, kind: input, shape index: {}]   ;;  %s5937_s3 = inlined_call_operand.hbm [shape: f32[1,128], index: 3, kind: input, shape index: {}]   ;;  %s5938_s4 = inlined_call_operand.hbm [shape: f32[1,128], index: 4, kind: input, shape index: {}]   ;;  %s5939_s5 = inlined_call_operand.hbm [shape: bf16[128,256], index: 5, kind: input, shape index: {}]   ;;  %s5940_s6 = inlined_call_operand.hbm [shape: f32[1,256], index: 6, kind: input, shape index: {}]   ;;  %s5941_s7 = inlined_call_operand.hbm [shape: f32[1,256], index: 7, kind: input, shape index: {}]   ;;  %s5942_s8 = inlined_call_operand.hbm [shape: bf16[256,512], index: 8, kind: input, shape index: {}]   ;;  %s5943_s9 = inlined_call_operand.hbm [shape: f32[1,512], index: 9, kind: input, shape index: {}]   ;;  %s5944_s10 = inlined_call_operand.hbm [shape: f32[1,512], index: 10, kind: input, shape index: {}]   ;;  %s5945_s11 = inlined_call_operand.hbm [shape: bf16[512,1024], index: 11, kind: input, shape index: {}]   ;;  %s5946_s12 = inlined_call_operand.vmem [shape: f32[1,1024], index: 12, kind: input, shape index: {}]   ;;  %s5947_s13 = inlined_call_operand.vmem [shape: f32[1,1024], index: 13, kind: input, shape index: {}]   ;;  %s5948_s14 = inlined_call_operand.hbm [shape: bf16[1024,256], index: 14, kind: input, shape index: {}]   ;;  %s5949_s15 = inlined_call_operand.vmem [shape: f32[1,256], index: 15, kind: input, shape index: {}]   ;;  %s5950_s16 = inlined_call_operand.vmem [shape: f32[1,8,256], index: 16, kind: output, shape index: {}]  }
   0x1   :  { %5951 = sst [smem:[#allocation25_spill]] %s5934_s0 }
   0x2   :  { %21 = vsyncpa [#allocation3], 0 }
   0x3   :  { %22 = vsyncpa [#allocation5], 0 }
   0x4   :  { %23 = vsyncpa [#allocation8], 0 }
   0x5   :  { %24 = vsyncpa [#allocation11], 0 }
   0x6   :  { %25 = vsyncpa [#allocation14], 0 }
   0x7   :  { %26 = vsyncpa [#allocation17], 0  ;;  %s5500_s21 = smov [#allocation4]   ;;  %s5501_s23 = smov [#allocation7]  }
   0x8   :  { %s47_s22 = sshll.u32 %s5500_s21, 4  ;;  %s66_s24 = sshll.u32 %s5501_s23, 4  ;;  %s48_s22 = int_to_ptr.vmem [resolvable:$true] %s47_s22  ;;  %s67_s24 = int_to_ptr.vmem [resolvable:$true] %s66_s24 }
   0x9   :  { %s5276_s25 = scalar_lea.vmem %s48_s22, 16  ;;  %s5280_s26 = scalar_lea.vmem %s48_s22, 32 }
   0xa   :  { %p5277_p0 = scmp.ne.s32.totalorder %s48_s22, %s5276_s25  ;;  %p5281_p1 = scmp.lt.s32.totalorder %s48_s22, %s48_s22 }
   0xb   :  { %p5282_p2 = scmp.lt.s32.totalorder %s5280_s26, %s5276_s25 }
   0xd   :  { %p5283_p3 = por %p5282_p2, %p5281_p1 }
   0xf   :  { %p5284_p4 = pnand %p5283_p3, %p5277_p0 }
  0x11   :  { %5287 = shalt.err (!%p5284_p4)
}
  0x12   :  { %50 = dma.hbm_to_vmem [thread:$0]  %s5937_s3, 16, %s48_s22, [#allocation5]  }
  0x13   :  { %s5296_s29 = scalar_lea.vmem %s67_s24, 2048  ;;  %p5301_p6 = scmp.lt.s32.totalorder %s67_s24, %s67_s24 }
  0x14   :  { %p5297_p5 = scmp.ne.s32.totalorder %s67_s24, %s5296_s29  ;;  %p5302_p7 = scmp.lt.s32.totalorder %s5296_s29, %s5296_s29 }
  0x16   :  { %p5303_p8 = por %p5302_p7, %p5301_p6 }
  0x18   :  { %p5304_p9 = pnand %p5303_p8, %p5297_p5 }
  0x1a   :  { %5307 = shalt.err (!%p5304_p9)
}
  0x1b   :  { %s5502_s30 = smov 128   ;;  %s5503_s0 = smov 8  }
  0x1c   :  { %72 = dma.hbm_to_vmem [thread:$0]  %s5939_s5, 2048, %s67_s24, [#allocation8], %s5502_s30, %s5502_s30, %s5503_s0  }
  0x1d   :  { %s5504_s19 = smov [#allocation10]   ;;  %s5505_s21 = smov [#allocation13]  }
  0x1e   :  { %s89_s20 = sshll.u32 %s5504_s19, 4  ;;  %s111_s3 = sshll.u32 %s5505_s21, 4  ;;  %s90_s20 = int_to_ptr.vmem [resolvable:$true] %s89_s20  ;;  %s112_s3 = int_to_ptr.vmem [resolvable:$true] %s111_s3 }
  0x1f   :  { %s5316_s22 = scalar_lea.vmem %s90_s20, 32  ;;  %p5321_p11 = scmp.lt.s32.totalorder %s90_s20, %s90_s20 }
  0x20   :  { %p5317_p10 = scmp.ne.s32.totalorder %s90_s20, %s5316_s22  ;;  %p5322_p12 = scmp.lt.s32.totalorder %s5316_s22, %s5316_s22 }
  0x22   :  { %p5323_p13 = por %p5322_p12, %p5321_p11 }
  0x24   :  { %p5324_p0 = pnand %p5323_p13, %p5317_p10 }
  0x26   :  { %5327 = shalt.err (!%p5324_p0)
}
  0x27   :  { %92 = dma.hbm_to_vmem [thread:$0]  %s5941_s7, 32, %s90_s20, [#allocation11]  }
  0x28   :  { %s5336_s26 = scalar_lea.vmem %s112_s3, 64  ;;  %p5341_p2 = scmp.lt.s32.totalorder %s112_s3, %s112_s3 }
  0x29   :  { %p5337_p1 = scmp.ne.s32.totalorder %s112_s3, %s5336_s26  ;;  %p5342_p3 = scmp.lt.s32.totalorder %s5336_s26, %s5336_s26 }
  0x2b   :  { %p5343_p4 = por %p5342_p3, %p5341_p2 }
  0x2d   :  { %p5344_p5 = pnand %p5343_p4, %p5337_p1 }
  0x2f   :  { %5347 = shalt.err (!%p5344_p5)
}
  0x30   :  { %114 = dma.hbm_to_vmem [thread:$0]  %s5943_s9, 64, %s112_s3, [#allocation14]  }
  0x31   :  { %s5506_s27 = smov [#allocation16]  }
  0x32   :  { %s130_s28 = sshll.u32 %s5506_s27, 4  ;;  %s131_s28 = int_to_ptr.vmem [resolvable:$true] %s130_s28 }
  0x33   :  { %s5356_s29 = scalar_lea.vmem %s131_s28, 32768  ;;  %p5361_p7 = scmp.lt.s32.totalorder %s131_s28, %s131_s28 }
  0x34   :  { %p5357_p6 = scmp.ne.s32.totalorder %s131_s28, %s5356_s29  ;;  %p5362_p8 = scmp.lt.s32.totalorder %s5356_s29, %s5356_s29 }
  0x36   :  { %p5363_p9 = por %p5362_p8, %p5361_p7 }
  0x38   :  { %p5364_p10 = pnand %p5363_p9, %p5357_p6 }
  0x3a   :  { %5367 = shalt.err (!%p5364_p10)
}
  0x3b   :  { %s5507_s7 = smov 512   ;;  %s5508_s17 = smov 32  }
  0x3c   :  { %136 = dma.hbm_to_vmem [thread:$0]  %s5945_s11, 32768, %s131_s28, [#allocation17], %s5507_s7, %s5507_s7, %s5508_s17  }
  0x3d   :  { %s5509_s20 = smov [#allocation2]   ;;  %s5510_s9 = smov [#allocation6]  }
  0x3e   :  { %s33_s21 = sshll.u32 %s5509_s20, 4  ;;  %s57_s3 = sshll.u32 %s5510_s9, 4  ;;  %s34_s21 = int_to_ptr.vmem [resolvable:$true] %s33_s21  ;;  %s58_s3 = int_to_ptr.vmem [resolvable:$true] %s57_s3 }
  0x3f   :  { %s5376_s22 = scalar_lea.vmem %s34_s21, 128  ;;  %p5381_p12 = scmp.lt.s32.totalorder %s34_s21, %s34_s21 }
  0x40   :  { %p5377_p11 = scmp.ne.s32.totalorder %s34_s21, %s5376_s22  ;;  %p5382_p13 = scmp.lt.s32.totalorder %s5376_s22, %s5376_s22 }
  0x42   :  { %p5383_p0 = por %p5382_p13, %p5381_p12 }
  0x44   :  { %p5384_p1 = pnand %p5383_p0, %p5377_p11 }
  0x46   :  { %5387 = shalt.err (!%p5384_p1)
}
  0x47   :  { %s5952_s26 = sld [smem:[#allocation25_spill]]  ;;  %s5396_s5 = scalar_lea.vmem %s58_s3, 16 }
  0x48   :  { %p5397_p2 = scmp.ne.s32.totalorder %s58_s3, %s5396_s5  ;;  %s5400_s11 = scalar_lea.vmem %s58_s3, 32 }
  0x49   :  { %p5401_p3 = scmp.lt.s32.totalorder %s58_s3, %s58_s3  ;;  %p5402_p4 = scmp.lt.s32.totalorder %s5400_s11, %s5396_s5 }
  0x4b   :  { %p5403_p5 = por %p5402_p4, %p5401_p3 }
  0x4d   :  { %36 = dma.hbm_to_vmem [thread:$0]  %s5952_s26, 128, %s34_s21, [#allocation3]  }
  0x4e   :  { %p5404_p6 = pnand %p5403_p5, %p5397_p2 }
  0x50   :  { %5407 = shalt.err (!%p5404_p6)
}
  0x51   :  { %60 = dma.hbm_to_vmem [thread:$0]  %s5938_s4, 16, %s58_s3, [#allocation5]  }
  0x52   :  { %s5511_s28 = smov [#allocation9]   ;;  %s5512_s7 = smov [#allocation12]  }
  0x53   :  { %s79_s29 = sshll.u32 %s5511_s28, 4  ;;  %s98_s17 = sshll.u32 %s5512_s7, 4  ;;  %s80_s29 = int_to_ptr.vmem [resolvable:$true] %s79_s29  ;;  %s99_s17 = int_to_ptr.vmem [resolvable:$true] %s98_s17 }
  0x54   :  { %s5416_s18 = scalar_lea.vmem %s80_s29, 32  ;;  %p5421_p8 = scmp.lt.s32.totalorder %s80_s29, %s80_s29 }
  0x55   :  { %p5417_p7 = scmp.ne.s32.totalorder %s80_s29, %s5416_s18  ;;  %p5422_p9 = scmp.lt.s32.totalorder %s5416_s18, %s5416_s18 }
  0x57   :  { %p5423_p10 = por %p5422_p9, %p5421_p8 }
  0x59   :  { %p5424_p11 = pnand %p5423_p10, %p5417_p7 }
  0x5b   :  { %5427 = shalt.err (!%p5424_p11)
}
  0x5c   :  { %82 = dma.hbm_to_vmem [thread:$0]  %s5940_s6, 32, %s80_s29, [#allocation8]  }
  0x5d   :  { %s5436_s21 = scalar_lea.vmem %s99_s17, 8192  ;;  %p5441_p13 = scmp.lt.s32.totalorder %s99_s17, %s99_s17 }
  0x5e   :  { %p5437_p12 = scmp.ne.s32.totalorder %s99_s17, %s5436_s21  ;;  %p5442_p0 = scmp.lt.s32.totalorder %s5436_s21, %s5436_s21 }
  0x60   :  { %p5443_p1 = por %p5442_p0, %p5441_p13 }
  0x62   :  { %p5444_p2 = pnand %p5443_p1, %p5437_p12 }
  0x64   :  { %5447 = shalt.err (!%p5444_p2)
}
  0x65   :  { %s5513_s4 = smov 256   ;;  %s5514_s9 = smov 16  }
  0x66   :  { %104 = dma.hbm_to_vmem [thread:$0]  %s5942_s8, 8192, %s99_s17, [#allocation11], %s5513_s4, %s5513_s4, %s5514_s9  }
  0x67   :  { %s5515_s23 = smov [#allocation15]   ;;  %s5516_s26 = smov [#allocation18]  }
  0x68   :  { %s121_s25 = sshll.u32 %s5515_s23, 4  ;;  %s146_s5 = sshll.u32 %s5516_s26, 4  ;;  %s122_s25 = int_to_ptr.vmem [resolvable:$true] %s121_s25  ;;  %s147_s5 = int_to_ptr.vmem [resolvable:$true] %s146_s5 }
  0x69   :  { %s5456_s6 = scalar_lea.vmem %s122_s25, 64  ;;  %p5461_p4 = scmp.lt.s32.totalorder %s122_s25, %s122_s25 }
  0x6a   :  { %p5457_p3 = scmp.ne.s32.totalorder %s122_s25, %s5456_s6  ;;  %p5462_p5 = scmp.lt.s32.totalorder %s5456_s6, %s5456_s6 }
  0x6c   :  { %p5463_p6 = por %p5462_p5, %p5461_p4 }
  0x6e   :  { %p5464_p7 = pnand %p5463_p6, %p5457_p3 }
  0x70   :  { %5467 = shalt.err (!%p5464_p7)
}
  0x71   :  { %124 = dma.hbm_to_vmem [thread:$0]  %s5944_s10, 64, %s122_s25, [#allocation14]  }
  0x72   :  { %s5476_s27 = scalar_lea.vmem %s147_s5, 16384  ;;  %p5481_p9 = scmp.lt.s32.totalorder %s147_s5, %s147_s5 }
  0x73   :  { %p5477_p8 = scmp.ne.s32.totalorder %s147_s5, %s5476_s27  ;;  %p5482_p10 = scmp.lt.s32.totalorder %s5476_s27, %s5476_s27 }
  0x75   :  { %p5483_p11 = por %p5482_p10, %p5481_p9 }
  0x77   :  { %p5484_p12 = pnand %p5483_p11, %p5477_p8 }
  0x79   :  { %5487 = shalt.err (!%p5484_p12)
}
  0x7a   :  { %152 = dma.hbm_to_vmem [thread:$0]  %s5948_s14, 16384, %s147_s5, [#allocation17], %s5502_s30, %s5502_s30, %s5503_s0  }
  0x7b   :  { %5488 = dma.done.wait [#allocation3], 128  }
  0x7c   :  { %5489 = vsyncadd [#allocation3], 4294967168 }
  0x7d   :  { %5490 = dma.done.wait [#allocation5], 32  }
  0x7e   :  { %5491 = vsyncadd [#allocation5], 4294967264 }
  0x7f   :  { %5492 = dma.done.wait [#allocation8], 2080  }
  0x80   :  { %5493 = vsyncadd [#allocation8], 4294965216 }
  0x81   :  { %5494 = dma.done.wait [#allocation11], 8224  }
  0x82   :  { %5495 = vsyncadd [#allocation11], 4294959072 }
  0x83   :  { %5496 = dma.done.wait [#allocation14], 128  }
  0x84   :  { %5497 = vsyncadd [#allocation14], 4294967168 }
  0x85   :  { %5498 = dma.done.wait [#allocation17], 49152  }
  0x86   :  { %5499 = vsyncadd [#allocation17], 4294918144  ;;  %v5517_v0 = vmov 0.0   ;;  %vm5518_vm0 = vmmov 0   ;;  %v5519_v1 = vmov 0   ;;  %v4922_v2 = vld [vmem:[%s5936_s2 + $0x8] sm:$0xff]  }
  0x87   :  { %4892 = vmatprep.subr.bf16.mxu0 %v5517_v0  ;;  %4896 = vmatprep.mubr.msk.bf16.mxu0 %vm5518_vm0, %v5517_v0  ;;  %v4923_v3 = vld [vmem:[%s5936_s2] sm:$0xff]   ;;  %v4927_v8 = vld [vmem:[#allocation7 + $0x64] ss:$8 sps:$4 sm:$0xff]   ;;  %vm221_vm1 = vcmask 261120   ;;  %v4929_v10 = vld [vmem:[#allocation7 + $0x60] ss:$8 sps:$4 sm:$0xff]  }
  0x88   :  { %4921 = vset.pattern.permute.xlu0 %v5519_v1  ;;  %404 = vmatprep.mubr.bf16.mxu1 %v5519_v1  ;;  %v189_v4 = vld [vmem:[#allocation2] sm:$0xff]  ;;  %v4933_v13 = vld [vmem:[#allocation7 + $0x44] ss:$8 sps:$4 sm:$0xff]   ;;  %v4935_v14 = vld [vmem:[#allocation7 + $0x40] ss:$8 sps:$4 sm:$0xff]  }
  0x89   :  { %4893 = vmatpush3.bf16.msra.mxu0 %v4922_v2  ;;  %v191_v5 = vld [vmem:[%s5935_s1] sm:$0xff]  ;;  %v190_v9 = vpack.c.bf16 %v189_v4, %v189_v4  ;;  %v4939_v17 = vld [vmem:[#allocation7 + $0x24] ss:$8 sps:$4 sm:$0xff]   ;;  %v4941_v18 = vld [vmem:[#allocation7 + $0x20] ss:$8 sps:$4 sm:$0xff]  }
  0x8a   :  { %4894 = vmatprep.subr.bf16.mxu0 %v5517_v0  ;;  %199 = vperm.xlu0 %4921, %v191_v5   ;;  %v4924_v6 = vld [vmem:[#allocation7 + $0x74] ss:$8 sps:$4 sm:$0xff]   ;;  %v4926_v7 = vld [vmem:[#allocation7 + $0x70] ss:$8 sps:$4 sm:$0xff]   ;;  %v4945_v21 = vld [vmem:[#allocation7 + $0x4] ss:$8 sps:$4 sm:$0xff]  }
  0x8b   :  { %372 = vmatprep.subr.bf16.mxu1 %v4924_v6  ;;  %v4930_v11 = vld [vmem:[#allocation7 + $0x54] ss:$8 sps:$4 sm:$0xff]   ;;  %v4932_v12 = vld [vmem:[#allocation7 + $0x50] ss:$8 sps:$4 sm:$0xff]   ;;  %v4947_v22 = vld [vmem:[#allocation7] ss:$8 sps:$4 sm:$0xff]  }
  0x8c   :  { %373 = vmatpush1.bf16.msra.mxu1 %v4926_v7  ;;  %v4936_v15 = vld [vmem:[#allocation7 + $0x34] ss:$8 sps:$4 sm:$0xff]   ;;  %v4938_v16 = vld [vmem:[#allocation7 + $0x30] ss:$8 sps:$4 sm:$0xff]  }
  0x8d   :  { %4895 = vmatpush3.bf16.msra.mxu0 %v4923_v3  ;;  %374 = vmatprep.subr.bf16.mxu1 %v4927_v8  ;;  %v4942_v19 = vld [vmem:[#allocation7 + $0x14] ss:$8 sps:$4 sm:$0xff]   ;;  %v4944_v20 = vld [vmem:[#allocation7 + $0x10] ss:$8 sps:$4 sm:$0xff]  }
  0x8e   :  { %v4420_v23 = vld [vmem:[#allocation4] ss:$0 sm:$0xff]  ;;  %v4424_v27 = vld [vmem:[#allocation6] ss:$0 sm:$0xff]  ;;  %v4950_v36 = vld [vmem:[#allocation12 + $0xe4] ss:$16 sps:$4 sm:$0xff]  }
  0x8f   :  { %v4953_v37 = vld [vmem:[#allocation12 + $0xec] ss:$16 sps:$4 sm:$0xff]   ;;  %v4948_v38 = vld [vmem:[#allocation12 + $0xe0] ss:$16 sps:$4 sm:$0xff]   ;;  %v4951_v39 = vld [vmem:[#allocation12 + $0xe8] ss:$16 sps:$4 sm:$0xff]   ;;  %910 = vmatprep.subr.bf16.mxu0 %v4950_v36 }
  0x90   :  { %4897 = vmatmul.mubr.msk.bf16.vlgmr.msra.gmra.mxu0 %vm221_vm1, %v190_v9  ;;  %375 = vmatpush1.bf16.msra.mxu1 %v4929_v10  ;;  %v4956_v40 = vld [vmem:[#allocation12 + $0xc4] ss:$16 sps:$4 sm:$0xff]   ;;  %v4959_v41 = vld [vmem:[#allocation12 + $0xcc] ss:$16 sps:$4 sm:$0xff]   ;;  %v4954_v42 = vld [vmem:[#allocation12 + $0xc0] ss:$16 sps:$4 sm:$0xff]  }
  0x91   :  { %376 = vmatprep.subr.bf16.mxu1 %v4930_v11  ;;  %911 = vmatpush1.bf16.msra.mxu0 %v4948_v38  ;;  %v4957_v43 = vld [vmem:[#allocation12 + $0xc8] ss:$16 sps:$4 sm:$0xff]   ;;  %v4962_v44 = vld [vmem:[#allocation12 + $0xa4] ss:$16 sps:$4 sm:$0xff]   ;;  %v4965_v45 = vld [vmem:[#allocation12 + $0xac] ss:$16 sps:$4 sm:$0xff]  }
  0x92   :  { %912 = vmatprep.subr.bf16.mxu0 %v4956_v40  ;;  %v4960_v46 = vld [vmem:[#allocation12 + $0xa0] ss:$16 sps:$4 sm:$0xff]   ;;  %v4963_v47 = vld [vmem:[#allocation12 + $0xa8] ss:$16 sps:$4 sm:$0xff]   ;;  %v4968_v48 = vld [vmem:[#allocation12 + $0x84] ss:$16 sps:$4 sm:$0xff]  }
  0x93   :  { %v4971_v49 = vld [vmem:[#allocation12 + $0x8c] ss:$16 sps:$4 sm:$0xff]   ;;  %v4966_v50 = vld [vmem:[#allocation12 + $0x80] ss:$16 sps:$4 sm:$0xff]   ;;  %v4969_v51 = vld [vmem:[#allocation12 + $0x88] ss:$16 sps:$4 sm:$0xff]  }
  0x94   :  { %377 = vmatpush1.bf16.msra.mxu1 %v4932_v12  ;;  %v4974_v52 = vld [vmem:[#allocation12 + $0x64] ss:$16 sps:$4 sm:$0xff]   ;;  %v4977_v53 = vld [vmem:[#allocation12 + $0x6c] ss:$16 sps:$4 sm:$0xff]   ;;  %v4972_v54 = vld [vmem:[#allocation12 + $0x60] ss:$16 sps:$4 sm:$0xff]  }
  0x95   :  { %378 = vmatprep.subr.bf16.mxu1 %v4933_v13  ;;  %913 = vmatpush1.bf16.msra.mxu0 %v4954_v42  ;;  %v4975_v55 = vld [vmem:[#allocation12 + $0x68] ss:$16 sps:$4 sm:$0xff]   ;;  %v4980_v56 = vld [vmem:[#allocation12 + $0x44] ss:$16 sps:$4 sm:$0xff]   ;;  %v4983_v57 = vld [vmem:[#allocation12 + $0x4c] ss:$16 sps:$4 sm:$0xff]  }
  0x96   :  { %914 = vmatprep.subr.bf16.mxu0 %v4962_v44  ;;  %v4978_v58 = vld [vmem:[#allocation12 + $0x40] ss:$16 sps:$4 sm:$0xff]   ;;  %v4981_v59 = vld [vmem:[#allocation12 + $0x48] ss:$16 sps:$4 sm:$0xff]   ;;  %v4986_v60 = vld [vmem:[#allocation12 + $0x24] ss:$16 sps:$4 sm:$0xff]  }
  0x97   :  { %v4989_v61 = vld [vmem:[#allocation12 + $0x2c] ss:$16 sps:$4 sm:$0xff]   ;;  %v4984_v62 = vld [vmem:[#allocation12 + $0x20] ss:$16 sps:$4 sm:$0xff]   ;;  %v4987_v63 = vld [vmem:[#allocation12 + $0x28] ss:$16 sps:$4 sm:$0xff]  }
  0x98   :  { %379 = vmatpush1.bf16.msra.mxu1 %v4935_v14  ;;  %v4992_v0 = vld [vmem:[#allocation12 + $0x4] ss:$16 sps:$4 sm:$0xff]   ;;  %v4995_v1 = vld [vmem:[#allocation12 + $0xc] ss:$16 sps:$4 sm:$0xff]   ;;  %v4990_v2 = vld [vmem:[#allocation12] ss:$16 sps:$4 sm:$0xff]  }
  0x99   :  { %380 = vmatprep.subr.bf16.mxu1 %v4936_v15  ;;  %915 = vmatpush1.bf16.msra.mxu0 %v4960_v46  ;;  %v4993_v3 = vld [vmem:[#allocation12 + $0x8] ss:$16 sps:$4 sm:$0xff]   ;;  %v4998_v4 = vld [vmem:[#allocation12 + $0x1e4] ss:$16 sps:$4 sm:$0xff]   ;;  %v5001_v5 = vld [vmem:[#allocation12 + $0x1ec] ss:$16 sps:$4 sm:$0xff]  }
  0x9a   :  { %916 = vmatprep.subr.bf16.mxu0 %v4968_v48  ;;  %v4996_v6 = vld [vmem:[#allocation12 + $0x1e0] ss:$16 sps:$4 sm:$0xff]   ;;  %v4999_v7 = vld [vmem:[#allocation12 + $0x1e8] ss:$16 sps:$4 sm:$0xff]   ;;  %v5004_v8 = vld [vmem:[#allocation12 + $0x1c4] ss:$16 sps:$4 sm:$0xff]  }
  0x9b   :  { %v5007_v9 = vld [vmem:[#allocation12 + $0x1cc] ss:$16 sps:$4 sm:$0xff]   ;;  %v5002_v10 = vld [vmem:[#allocation12 + $0x1c0] ss:$16 sps:$4 sm:$0xff]   ;;  %v5005_v11 = vld [vmem:[#allocation12 + $0x1c8] ss:$16 sps:$4 sm:$0xff]  }
  0x9c   :  { %381 = vmatpush1.bf16.msra.mxu1 %v4938_v16  ;;  %v5010_v12 = vld [vmem:[#allocation12 + $0x1a4] ss:$16 sps:$4 sm:$0xff]   ;;  %v5013_v13 = vld [vmem:[#allocation12 + $0x1ac] ss:$16 sps:$4 sm:$0xff]   ;;  %v5008_v14 = vld [vmem:[#allocation12 + $0x1a0] ss:$16 sps:$4 sm:$0xff]  }
  0x9d   :  { %382 = vmatprep.subr.bf16.mxu1 %v4939_v17  ;;  %917 = vmatpush1.bf16.msra.mxu0 %v4966_v50  ;;  %v5011_v15 = vld [vmem:[#allocation12 + $0x1a8] ss:$16 sps:$4 sm:$0xff]   ;;  %v5016_v16 = vld [vmem:[#allocation12 + $0x184] ss:$16 sps:$4 sm:$0xff]   ;;  %v5019_v17 = vld [vmem:[#allocation12 + $0x18c] ss:$16 sps:$4 sm:$0xff]  }
  0x9e   :  { %918 = vmatprep.subr.bf16.mxu0 %v4974_v52 }
  0xa0   :  { %383 = vmatpush1.bf16.msra.mxu1 %v4941_v18  ;;  %v5014_v18 = vld [vmem:[#allocation12 + $0x180] ss:$16 sps:$4 sm:$0xff]  }
  0xa1   :  { %384 = vmatprep.subr.bf16.mxu1 %v4942_v19  ;;  %919 = vmatpush1.bf16.msra.mxu0 %v4972_v54  ;;  %v5017_v19 = vld [vmem:[#allocation12 + $0x188] ss:$16 sps:$4 sm:$0xff]  }
  0xa2   :  { %920 = vmatprep.subr.bf16.mxu0 %v4980_v56 }
  0xa4   :  { %385 = vmatpush1.bf16.msra.mxu1 %v4944_v20  ;;  %v5022_v20 = vld [vmem:[#allocation12 + $0x164] ss:$16 sps:$4 sm:$0xff]  }
  0xa5   :  { %386 = vmatprep.subr.bf16.mxu1 %v4945_v21  ;;  %921 = vmatpush1.bf16.msra.mxu0 %v4978_v58  ;;  %v5025_v21 = vld [vmem:[#allocation12 + $0x16c] ss:$16 sps:$4 sm:$0xff]  }
  0xa6   :  { %922 = vmatprep.subr.bf16.mxu0 %v4986_v60 }
  0xa8   :  { %387 = vmatpush1.bf16.msra.mxu1 %v4947_v22  ;;  %v5020_v22 = vld [vmem:[#allocation12 + $0x160] ss:$16 sps:$4 sm:$0xff]  }
  0xa9   :  { %951 = vmatprep.subr.bf16.mxu1 %v4953_v37  ;;  %923 = vmatpush1.bf16.msra.mxu0 %v4984_v62 }
  0xaa   :  { %924 = vmatprep.subr.bf16.mxu0 %v4992_v0 }
  0xad   :  { %925 = vmatpush1.bf16.msra.mxu0 %v4990_v2 }
  0xae   :  { %926 = vmatprep.subr.bf16.mxu0 %v4998_v4 }
  0xb1   :  { %927 = vmatpush2.bf16.msra.mxu0 %v4996_v6 }
  0xb2   :  { %928 = vmatprep.subr.bf16.mxu0 %v5004_v8 }
  0xb5   :  { %929 = vmatpush2.bf16.msra.mxu0 %v5002_v10 }
  0xb6   :  { %930 = vmatprep.subr.bf16.mxu0 %v5010_v12  ;;  %v5520_v12 = vmov 1966171168  }
  0xb9   :  { %931 = vmatpush2.bf16.msra.mxu0 %v5008_v14  ;;  %v460_v14 = vlaneseq }
  0xba   :  { %932 = vmatprep.subr.bf16.mxu0 %v5016_v16 }
  0xbb   :  { %v5666_v16 = vshrl.u32 %v460_v14, 7 }
  0xbd   :  { %933 = vmatpush2.bf16.msra.mxu0 %v5014_v18 }
  0xbe   :  { %934 = vmatprep.subr.bf16.mxu0 %v5022_v20 }
  0xc1   :  { %935 = vmatpush2.bf16.msra.mxu0 %v5020_v22  ;;  %v413_v22 = vld [vmem:[#allocation9] sm:$0x3] }
 0x105   :  { %v200_v24 = vpop.permute.xlu0 %199 }
 0x106   :  { %v208_v25 = vmul.f32 %v4420_v23, %v200_v24  ;;  %v5023_v23 = vld [vmem:[#allocation12 + $0x168] ss:$16 sps:$4 sm:$0xff]   ;;  %v5028_v24 = vld [vmem:[#allocation12 + $0x144] ss:$16 sps:$4 sm:$0xff]  }
 0x107   :  { %936 = vmatprep.subr.bf16.mxu0 %v5028_v24  ;;  %v5674_v24 = vsub.s32 0, %v5666_v16 }
 0x150   :  { %v259_v26 = vpop.f32.mrf.mxu0 }
 0x151   :  { %v260_v28 = vadd.f32 %v259_v26, %v208_v25  ;;  %v5031_v25 = vld [vmem:[#allocation12 + $0x14c] ss:$16 sps:$4 sm:$0xff]   ;;  %v5026_v26 = vld [vmem:[#allocation12 + $0x140] ss:$16 sps:$4 sm:$0xff]  }
 0x152   :  { %v4898_v29 = vpop.f32.mrf.mxu0  ;;  %937 = vmatpush2.bf16.msra.mxu0 %v5026_v26 }
 0x153   :  { %v272_v30 = vadd.f32 %v4424_v27, %v260_v28  ;;  %v5029_v27 = vld [vmem:[#allocation12 + $0x148] ss:$16 sps:$4 sm:$0xff]   ;;  %v5034_v28 = vld [vmem:[#allocation12 + $0x124] ss:$16 sps:$4 sm:$0xff]   ;;  %v5037_v29 = vld [vmem:[#allocation12 + $0x12c] ss:$16 sps:$4 sm:$0xff]  }
 0x154   :  { %v262_v31 = vpop.f32.mrf.mxu0  ;;  %938 = vmatprep.subr.bf16.mxu0 %v5034_v28 }
 0x155   :  { %v273_v32 = vmul.f32 0.2, %v272_v30  ;;  %v5035_v31 = vld [vmem:[#allocation12 + $0x128] ss:$16 sps:$4 sm:$0xff]  }
 0x156   :  { %v4899_v33 = vpop.f32.mrf.mxu0 }
 0x157   :  { %v274_v34 = vmax.f32 %v272_v30, %v273_v32  ;;  %v5032_v30 = vld [vmem:[#allocation12 + $0x120] ss:$16 sps:$4 sm:$0xff]   ;;  %v5040_v32 = vld [vmem:[#allocation12 + $0x104] ss:$16 sps:$4 sm:$0xff]   ;;  %v5043_v33 = vld [vmem:[#allocation12 + $0x10c] ss:$16 sps:$4 sm:$0xff]  }
 0x158   :  { %939 = vmatpush2.bf16.msra.mxu0 %v5032_v30 }
 0x159   :  { %v275_v35 = vpack.c.bf16 %v274_v34, %v274_v34  ;;  %v5038_v34 = vld [vmem:[#allocation12 + $0x100] ss:$16 sps:$4 sm:$0xff]   ;;  %940 = vmatprep.subr.bf16.mxu0 %v5040_v32 }
 0x15b   :  { %405 = vmatmul.mubr.bf16.vlgmr.msra.gmra.mxu1 %v275_v35  ;;  %v5041_v35 = vld [vmem:[#allocation12 + $0x108] ss:$16 sps:$4 sm:$0xff]  }
 0x15c   :  { %952 = vmatpush1.bf16.msra.mxu1 %v4951_v39  ;;  %941 = vmatpush2.bf16.msra.mxu0 %v5038_v34 }
 0x15d   :  { %953 = vmatprep.subr.bf16.mxu1 %v4959_v41 }
 0x160   :  { %954 = vmatpush1.bf16.msra.mxu1 %v4957_v43 }
 0x161   :  { %955 = vmatprep.subr.bf16.mxu1 %v4965_v45 }
 0x164   :  { %956 = vmatpush1.bf16.msra.mxu1 %v4963_v47 }
 0x165   :  { %957 = vmatprep.subr.bf16.mxu1 %v4971_v49 }
 0x168   :  { %958 = vmatpush1.bf16.msra.mxu1 %v4969_v51 }
 0x169   :  { %959 = vmatprep.subr.bf16.mxu1 %v4977_v53 }
 0x16c   :  { %960 = vmatpush1.bf16.msra.mxu1 %v4975_v55 }
 0x16d   :  { %961 = vmatprep.subr.bf16.mxu1 %v4983_v57 }
 0x170   :  { %962 = vmatpush1.bf16.msra.mxu1 %v4981_v59 }
 0x171   :  { %963 = vmatprep.subr.bf16.mxu1 %v4989_v61 }
 0x174   :  { %964 = vmatpush1.bf16.msra.mxu1 %v4987_v63 }
 0x175   :  { %965 = vmatprep.subr.bf16.mxu1 %v4995_v1 }
 0x178   :  { %966 = vmatpush1.bf16.msra.mxu1 %v4993_v3 }
 0x179   :  { %967 = vmatprep.subr.bf16.mxu1 %v5001_v5 }
 0x17c   :  { %968 = vmatpush2.bf16.msra.mxu1 %v4999_v7 }
 0x17d   :  { %969 = vmatprep.subr.bf16.mxu1 %v5007_v9 }
 0x180   :  { %970 = vmatpush2.bf16.msra.mxu1 %v5005_v11 }
 0x181   :  { %971 = vmatprep.subr.bf16.mxu1 %v5013_v13  ;;  %v458_v13 = vunpack.c.l.s4 %v5520_v12  ;;  %v1360_v12 = vld [vmem:[#allocation16 + $0x520] sm:$0xff] }
 0x184   :  { %972 = vmatpush2.bf16.msra.mxu1 %v5011_v15  ;;  %v459_v15 = vunpack.c.0.s8 %v458_v13 }
 0x185   :  { %973 = vmatprep.subr.bf16.mxu1 %v5019_v17 }
 0x186   :  { %v5669_v18 = vsub.s32 %v459_v15, %v5666_v16 }
 0x188   :  { %974 = vmatpush2.bf16.msra.mxu1 %v5017_v19 }
 0x189   :  { %975 = vmatprep.subr.bf16.mxu1 %v5025_v21 }
 0x18c   :  { %976 = vmatpush2.bf16.msra.mxu1 %v5023_v23 }
 0x18d   :  { %977 = vmatprep.subr.bf16.mxu1 %v5031_v25  ;;  %v5677_v25 = vsub.s32 1, %v5666_v16 }
 0x190   :  { %978 = vmatpush2.bf16.msra.mxu1 %v5029_v27 }
 0x191   :  { %979 = vmatprep.subr.bf16.mxu1 %v5037_v29 }
 0x194   :  { %980 = vmatpush2.bf16.msra.mxu1 %v5035_v31 }
 0x195   :  { %981 = vmatprep.subr.bf16.mxu1 %v5043_v33  ;;  %v414_v33 = vld [vmem:[#allocation10] sm:$0x3] }
 0x198   :  { %982 = vmatpush2.bf16.msra.mxu1 %v5041_v35 }
 0x21b   :  { %v5654_v36 = vpop.f32.mrf.mxu1 }
 0x21c   :  { %v415_v37 = vrot.slane %v5654_v36, 4  ;;  %v430_v38 = vmul.f32 %v5654_v36, %v5654_v36 }
 0x21d   :  { %v5659_v39 = vpop.f32.mrf.mxu1 }
 0x21e   :  { %v416_v40 = vadd.f32 %v415_v37, %v5654_v36  ;;  %v432_v41 = vrot.slane %v430_v38, 4  ;;  %v421_v42 = vrot.slane %v5659_v39, 4  ;;  %v431_v43 = vmul.f32 %v5659_v39, %v5659_v39 }
 0x21f   :  { %v410_v44 = vpop.f32.mrf.mxu1 }
 0x220   :  { %v417_v45 = vrot.slane %v416_v40, 2  ;;  %v433_v46 = vadd.f32 %v432_v41, %v430_v38  ;;  %v422_v47 = vadd.f32 %v421_v42, %v5659_v39  ;;  %v438_v48 = vrot.slane %v431_v43, 4 }
 0x221   :  { %v411_v49 = vpop.f32.mrf.mxu1 }
 0x222   :  { %v418_v50 = vadd.f32 %v417_v45, %v416_v40  ;;  %v434_v51 = vrot.slane %v433_v46, 2  ;;  %v423_v52 = vrot.slane %v422_v47, 2  ;;  %v439_v53 = vadd.f32 %v438_v48, %v431_v43 }
 0x224   :  { %v419_v54 = vrot.slane %v418_v50, 1  ;;  %v435_v55 = vadd.f32 %v434_v51, %v433_v46  ;;  %v424_v56 = vadd.f32 %v423_v52, %v422_v47  ;;  %v440_v57 = vrot.slane %v439_v53, 2  ;;  %v1380_v51 = vld [vmem:[#allocation16 + $0x5c0] sm:$0xff] }
 0x226   :  { %v420_v58 = vadd.f32 %v419_v54, %v418_v50  ;;  %v436_v59 = vrot.slane %v435_v55, 1  ;;  %v425_v60 = vrot.slane %v424_v56, 1  ;;  %v441_v61 = vadd.f32 %v440_v57, %v439_v53  ;;  %v1252_v50 = vld [vmem:[#allocation16 + $0x1c0] sm:$0xff] }
 0x227   :  { %v1384_v53 = vld [vmem:[#allocation16 + $0x5e0] sm:$0xff] }
 0x228   :  { %v428_v62 = vmul.f32 0.125, %v420_v58  ;;  %v437_v63 = vadd.f32 %v436_v59, %v435_v55  ;;  %v426_v0 = vadd.f32 %v425_v60, %v424_v56  ;;  %v442_v1 = vrot.slane %v441_v61, 1  ;;  %v1244_v56 = vld [vmem:[#allocation16 + $0x180] sm:$0xff] }
 0x229   :  { %v4689_v54 = vcombine.low %v1380_v51, %v1384_v53  ;;  %v4690_v55 = vcombine.high %v1380_v51, %v1384_v53  ;;  %v1248_v57 = vld [vmem:[#allocation16 + $0x1a0] sm:$0xff] }
 0x22a   :  { %v444_v2 = vmul.f32 0.125, %v437_v63  ;;  %v446_v3 = vmul.f32 %v428_v62, %v428_v62  ;;  %v429_v4 = vmul.f32 0.125, %v426_v0  ;;  %v443_v5 = vadd.f32 %v442_v1, %v441_v61  ;;  %v1372_v58 = vld [vmem:[#allocation16 + $0x580] sm:$0xff] }
 0x22b   :  { %2773 = vmatprep.subr.bf16.mxu1 %v4690_v55  ;;  %v4554_v59 = vcombine.high %v1244_v56, %v1248_v57  ;;  %v1376_v60 = vld [vmem:[#allocation16 + $0x5a0] sm:$0xff]  ;;  %v4553_v61 = vcombine.low %v1244_v56, %v1248_v57 }
 0x22c   :  { %v448_v6 = vsub.f32 %v444_v2, %v446_v3  ;;  %v445_v7 = vmul.f32 0.125, %v443_v5  ;;  %v447_v8 = vmul.f32 %v429_v4, %v429_v4  ;;  %v4682_v63 = vcombine.high %v1372_v58, %v1376_v60  ;;  %v1236_v0 = vld [vmem:[#allocation16 + $0x140] sm:$0xff] }
 0x22d   :  { %v1240_v1 = vld [vmem:[#allocation16 + $0x160] sm:$0xff] }
 0x22e   :  { %v450_v9 = vadd.f32 0.8, %v448_v6  ;;  %v449_v10 = vsub.f32 %v445_v7, %v447_v8  ;;  %v1364_v2 = vld [vmem:[#allocation16 + $0x540] sm:$0xff]  ;;  %v4546_v3 = vcombine.high %v1236_v0, %v1240_v1  ;;  %v4545_v5 = vcombine.low %v1236_v0, %v1240_v1 }
 0x22f   :  { %v1228_v8 = vld [vmem:[#allocation16 + $0x100] sm:$0xff] }
 0x230   :  { %v451_v11 = vadd.f32 0.8, %v449_v10  ;;  %5236 = vrsqrt.f32 %v450_v9  ;;  %v1232_v9 = vld [vmem:[#allocation16 + $0x120] sm:$0xff] }
 0x231   :  { %v1356_v10 = vld [vmem:[#allocation16 + $0x500] sm:$0xff]  ;;  %v4537_v13 = vcombine.low %v1228_v8, %v1232_v9 }
 0x232   :  { %5238 = vrsqrt.f32 %v451_v11  ;;  %v4538_v11 = vcombine.high %v1228_v8, %v1232_v9  ;;  %v4665_v14 = vcombine.low %v1356_v10, %v1360_v12  ;;  %v4666_v15 = vcombine.high %v1356_v10, %v1360_v12  ;;  %v1316_v53 = vld [vmem:[#allocation16 + $0x3c0] sm:$0xff] }
 0x233   :  { %v1448_v56 = vld [vmem:[#allocation16 + $0x7e0] sm:$0xff] }
 0x234   :  { %v1440_v0 = vld [vmem:[#allocation16 + $0x7a0] sm:$0xff] }
 0x235   :  { %v1432_v8 = vld [vmem:[#allocation16 + $0x760] sm:$0xff] }
 0x236   :  { %v1292_v12 = vld [vmem:[#allocation16 + $0x300] sm:$0xff] }
 0x23d   :  { %v5237_v17 = vpop.eup %5236 }
 0x23f   :  { %v5239_v19 = vpop.eup %5238 }
 0x240   :  { %v456_v20 = vcombine.low %v5237_v17, %v5239_v19  ;;  %v1220_v17 = vld [vmem:[#allocation16 + $0xc0] sm:$0xff] }
 0x241   :  { %v1224_v19 = vld [vmem:[#allocation16 + $0xe0] sm:$0xff] }
 0x242   :  { %v463_v21 = vrot.slane %v456_v20, %v5669_v18  ;;  %v1348_v20 = vld [vmem:[#allocation16 + $0x4c0] sm:$0xff] }
 0x244   :  { %v470_v23 = vrot.slane %v463_v21, %v5669_v18  ;;  %v4530_v21 = vcombine.high %v1220_v17, %v1224_v19 }
 0x246   :  { %v472_v26 = vmul.f32 %v470_v23, %v413_v22  ;;  %v1352_v22 = vld [vmem:[#allocation16 + $0x4e0] sm:$0xff]  ;;  %v4529_v23 = vcombine.low %v1220_v17, %v1224_v19 }
 0x247   :  { %v1424_v17 = vld [vmem:[#allocation16 + $0x720] sm:$0xff] }
 0x248   :  { %v477_v27 = vrot.slane %v472_v26, %v5674_v24  ;;  %v481_v28 = vrot.slane %v472_v26, %v5677_v25  ;;  %v4657_v26 = vcombine.low %v1348_v20, %v1352_v22 }
 0x24a   :  { %v484_v29 = vmul.f32 %v477_v27, %v428_v62  ;;  %v485_v30 = vmul.f32 %v481_v28, %v429_v4  ;;  %v506_v37 = vmul.f32 %v481_v28, %v5659_v39  ;;  %v505_v40 = vmul.f32 %v477_v27, %v5654_v36  ;;  %v1256_v39 = vld [vmem:[#allocation16 + $0x1e0] sm:$0xff] }
 0x24b   :  { %v4562_v52 = vcombine.high %v1252_v50, %v1256_v39  ;;  %v4561_v36 = vcombine.low %v1252_v50, %v1256_v39  ;;  %v4681_v62 = vcombine.low %v1372_v58, %v1376_v60  ;;  %v1368_v4 = vld [vmem:[#allocation16 + $0x560] sm:$0xff]  ;;  %v4658_v27 = vcombine.high %v1348_v20, %v1352_v22 }
 0x24c   :  { %v488_v31 = vcombine.low %v484_v29, %v485_v30  ;;  %v4673_v6 = vcombine.low %v1364_v2, %v1368_v4  ;;  %v4674_v7 = vcombine.high %v1364_v2, %v1368_v4  ;;  %v1212_v28 = vld [vmem:[#allocation16 + $0x80] sm:$0xff] }
 0x24d   :  { %2732 = vmatprep.subr.bf16.mxu0 %v4562_v52  ;;  %v1216_v29 = vld [vmem:[#allocation16 + $0xa0] sm:$0xff] }
 0x24e   :  { %v495_v32 = vrot.slane %v488_v31, %v5669_v18  ;;  %v1340_v30 = vld [vmem:[#allocation16 + $0x480] sm:$0xff]  ;;  %v4522_v31 = vcombine.high %v1212_v28, %v1216_v29 }
 0x24f   :  { %v1328_v50 = vld [vmem:[#allocation16 + $0x420] sm:$0xff] }
 0x250   :  { %v502_v34 = vrot.slane %v495_v32, %v5669_v18  ;;  %v1344_v32 = vld [vmem:[#allocation16 + $0x4a0] sm:$0xff] }
 0x251   :  { %v1308_v60 = vld [vmem:[#allocation16 + $0x380] sm:$0xff] }
 0x252   :  { %v504_v35 = vsub.f32 %v414_v33, %v502_v34  ;;  %v4521_v33 = vcombine.low %v1212_v28, %v1216_v29  ;;  %v4649_v34 = vcombine.low %v1340_v30, %v1344_v32  ;;  %v1300_v4 = vld [vmem:[#allocation16 + $0x340] sm:$0xff] }
 0x253   :  { %v1284_v22 = vld [vmem:[#allocation16 + $0x2c0] sm:$0xff] }
 0x254   :  { %v515_v38 = vrot.slane %v504_v35, %v5677_v25  ;;  %v511_v41 = vrot.slane %v504_v35, %v5674_v24  ;;  %v4650_v35 = vcombine.high %v1340_v30, %v1344_v32  ;;  %v1416_v28 = vld [vmem:[#allocation16 + $0x6e0] sm:$0xff] }
 0x255   :  { %v1276_v32 = vld [vmem:[#allocation16 + $0x280] sm:$0xff] }
 0x256   :  { %v519_v42 = vadd.f32 %v515_v38, %v506_v37  ;;  %v518_v43 = vadd.f32 %v511_v41, %v505_v40  ;;  %v1204_v37 = vld [vmem:[#allocation16 + $0x40] sm:$0xff] }
 0x257   :  { %v1208_v38 = vld [vmem:[#allocation16 + $0x60] sm:$0xff] }
 0x258   :  { %v521_v44 = vmul.f32 0.2, %v519_v42  ;;  %v520_v45 = vmul.f32 0.2, %v518_v43  ;;  %v1332_v40 = vld [vmem:[#allocation16 + $0x440] sm:$0xff]  ;;  %v4514_v41 = vcombine.high %v1204_v37, %v1208_v38 }
 0x25a   :  { %v523_v46 = vmax.f32 %v519_v42, %v521_v44  ;;  %v522_v47 = vmax.f32 %v518_v43, %v520_v45  ;;  %v1336_v42 = vld [vmem:[#allocation16 + $0x460] sm:$0xff]  ;;  %v4513_v43 = vcombine.low %v1204_v37, %v1208_v38 }
 0x25b   :  { %v4641_v44 = vcombine.low %v1332_v40, %v1336_v42  ;;  %v4642_v45 = vcombine.high %v1332_v40, %v1336_v42  ;;  %v1408_v37 = vld [vmem:[#allocation16 + $0x6a0] sm:$0xff] }
 0x25c   :  { %v525_v48 = vpack.c.bf16 %v523_v46, %v523_v46  ;;  %v524_v49 = vpack.c.bf16 %v522_v47, %v522_v47  ;;  %v1196_v46 = vld [vmem:[#allocation16] sm:$0xff] }
 0x25d   :  { %v1200_v47 = vld [vmem:[#allocation16 + $0x20] sm:$0xff] }
 0x25e   :  { %942 = vmatprep.mubr.bf16.mxu0 %v525_v48  ;;  %983 = vmatprep.mubr.bf16.mxu1 %v525_v48  ;;  %v1324_v48 = vld [vmem:[#allocation16 + $0x400] sm:$0xff]  ;;  %v4505_v39 = vcombine.low %v1196_v46, %v1200_v47 }
 0x25f   :  { %943 = vmatmul.mubr.bf16.vlgmr.msra.gmra.mxu0 %v524_v49  ;;  %984 = vmatmul.mubr.bf16.vlgmr.msra.gmra.mxu1 %v524_v49  ;;  %v4506_v49 = vcombine.high %v1196_v46, %v1200_v47  ;;  %v4633_v51 = vcombine.low %v1324_v48, %v1328_v50  ;;  %v4634_v52 = vcombine.high %v1324_v48, %v1328_v50  ;;  %v1268_v42 = vld [vmem:[#allocation16 + $0x240] sm:$0xff] }
 0x260   :  { %2733 = vmatpush1.bf16.msra.mxu0 %v4561_v36  ;;  %2774 = vmatpush1.bf16.msra.mxu1 %v4689_v54  ;;  %v1320_v36 = vld [vmem:[#allocation16 + $0x3e0] sm:$0xff] }
 0x261   :  { %2734 = vmatprep.subr.bf16.mxu0 %v4554_v59  ;;  %2775 = vmatprep.subr.bf16.mxu1 %v4682_v63  ;;  %v1444_v54 = vld [vmem:[#allocation16 + $0x7c0] sm:$0xff]  ;;  %v4626_v55 = vcombine.high %v1316_v53, %v1320_v36  ;;  %v4625_v57 = vcombine.low %v1316_v53, %v1320_v36 }
 0x262   :  { %v4753_v58 = vcombine.low %v1444_v54, %v1448_v56  ;;  %v4754_v59 = vcombine.high %v1444_v54, %v1448_v56  ;;  %v1400_v46 = vld [vmem:[#allocation16 + $0x660] sm:$0xff]  ;;  %v5687_v56 = vld [vmem:[#allocation16 + $0x1c8] sm:$0xff] }
 0x263   :  { %v1260_v50 = vld [vmem:[#allocation16 + $0x200] sm:$0xff] }
 0x264   :  { %2735 = vmatpush1.bf16.msra.mxu0 %v4553_v61  ;;  %2776 = vmatpush1.bf16.msra.mxu1 %v4681_v62  ;;  %v1312_v61 = vld [vmem:[#allocation16 + $0x3a0] sm:$0xff] }
 0x265   :  { %2736 = vmatprep.subr.bf16.mxu0 %v4546_v3  ;;  %2777 = vmatprep.subr.bf16.mxu1 %v4674_v7  ;;  %v1436_v62 = vld [vmem:[#allocation16 + $0x780] sm:$0xff]  ;;  %v4618_v63 = vcombine.high %v1308_v60, %v1312_v61  ;;  %v4617_v1 = vcombine.low %v1308_v60, %v1312_v61  ;;  %v5695_v60 = vld [vmem:[#allocation16 + $0x5e8] sm:$0xff] }
 0x266   :  { %v4745_v2 = vcombine.low %v1436_v62, %v1440_v0  ;;  %v4746_v3 = vcombine.high %v1436_v62, %v1440_v0  ;;  %v1392_v36 = vld [vmem:[#allocation16 + $0x620] sm:$0xff] }
 0x268   :  { %2737 = vmatpush1.bf16.msra.mxu0 %v4545_v5  ;;  %2778 = vmatpush1.bf16.msra.mxu1 %v4673_v6  ;;  %v1304_v5 = vld [vmem:[#allocation16 + $0x360] sm:$0xff] }
 0x269   :  { %2738 = vmatprep.subr.bf16.mxu0 %v4538_v11  ;;  %2779 = vmatprep.subr.bf16.mxu1 %v4666_v15  ;;  %v1428_v6 = vld [vmem:[#allocation16 + $0x740] sm:$0xff]  ;;  %v4610_v7 = vcombine.high %v1300_v4, %v1304_v5  ;;  %v4609_v9 = vcombine.low %v1300_v4, %v1304_v5 }
 0x26a   :  { %v4737_v10 = vcombine.low %v1428_v6, %v1432_v8  ;;  %v4738_v11 = vcombine.high %v1428_v6, %v1432_v8 }
 0x26c   :  { %2739 = vmatpush1.bf16.msra.mxu0 %v4537_v13  ;;  %2780 = vmatpush1.bf16.msra.mxu1 %v4665_v14  ;;  %v1296_v13 = vld [vmem:[#allocation16 + $0x320] sm:$0xff] }
 0x26d   :  { %2740 = vmatprep.subr.bf16.mxu0 %v4530_v21  ;;  %2781 = vmatprep.subr.bf16.mxu1 %v4658_v27  ;;  %v1420_v14 = vld [vmem:[#allocation16 + $0x700] sm:$0xff]  ;;  %v4602_v15 = vcombine.high %v1292_v12, %v1296_v13  ;;  %v4601_v19 = vcombine.low %v1292_v12, %v1296_v13 }
 0x26e   :  { %v4729_v20 = vcombine.low %v1420_v14, %v1424_v17  ;;  %v4730_v21 = vcombine.high %v1420_v14, %v1424_v17 }
 0x270   :  { %2741 = vmatpush1.bf16.msra.mxu0 %v4529_v23  ;;  %2782 = vmatpush1.bf16.msra.mxu1 %v4657_v26  ;;  %v1288_v23 = vld [vmem:[#allocation16 + $0x2e0] sm:$0xff] }
 0x271   :  { %2742 = vmatprep.subr.bf16.mxu0 %v4522_v31  ;;  %2783 = vmatprep.subr.bf16.mxu1 %v4650_v35  ;;  %v1412_v26 = vld [vmem:[#allocation16 + $0x6c0] sm:$0xff]  ;;  %v4594_v27 = vcombine.high %v1284_v22, %v1288_v23  ;;  %v4593_v29 = vcombine.low %v1284_v22, %v1288_v23 }
 0x272   :  { %v4721_v30 = vcombine.low %v1412_v26, %v1416_v28  ;;  %v4722_v31 = vcombine.high %v1412_v26, %v1416_v28 }
 0x274   :  { %2743 = vmatpush1.bf16.msra.mxu0 %v4521_v33  ;;  %2784 = vmatpush1.bf16.msra.mxu1 %v4649_v34  ;;  %v1280_v33 = vld [vmem:[#allocation16 + $0x2a0] sm:$0xff] }
 0x275   :  { %2744 = vmatprep.subr.bf16.mxu0 %v4514_v41  ;;  %2785 = vmatprep.subr.bf16.mxu1 %v4642_v45  ;;  %v1404_v34 = vld [vmem:[#allocation16 + $0x680] sm:$0xff]  ;;  %v4586_v35 = vcombine.high %v1276_v32, %v1280_v33  ;;  %v4585_v38 = vcombine.low %v1276_v32, %v1280_v33 }
 0x276   :  { %v4713_v40 = vcombine.low %v1404_v34, %v1408_v37  ;;  %v4714_v41 = vcombine.high %v1404_v34, %v1408_v37 }
 0x278   :  { %2745 = vmatpush1.bf16.msra.mxu0 %v4513_v43  ;;  %2786 = vmatpush1.bf16.msra.mxu1 %v4641_v44  ;;  %v1272_v43 = vld [vmem:[#allocation16 + $0x260] sm:$0xff] }
 0x279   :  { %2746 = vmatprep.subr.bf16.mxu0 %v4506_v49  ;;  %2787 = vmatprep.subr.bf16.mxu1 %v4634_v52  ;;  %v1396_v44 = vld [vmem:[#allocation16 + $0x640] sm:$0xff]  ;;  %v4578_v45 = vcombine.high %v1268_v42, %v1272_v43  ;;  %v4577_v47 = vcombine.low %v1268_v42, %v1272_v43 }
 0x27a   :  { %v4705_v48 = vcombine.low %v1396_v44, %v1400_v46  ;;  %v4706_v49 = vcombine.high %v1396_v44, %v1400_v46 }
 0x27c   :  { %2747 = vmatpush1.bf16.msra.mxu0 %v4505_v39  ;;  %2788 = vmatpush1.bf16.msra.mxu1 %v4633_v51  ;;  %v1264_v39 = vld [vmem:[#allocation16 + $0x220] sm:$0xff] }
 0x27d   :  { %2748 = vmatprep.subr.bf16.mxu0 %v4626_v55  ;;  %2789 = vmatprep.subr.bf16.mxu1 %v4754_v59  ;;  %v1388_v51 = vld [vmem:[#allocation16 + $0x600] sm:$0xff]  ;;  %v4569_v52 = vcombine.low %v1260_v50, %v1264_v39  ;;  %v4570_v53 = vcombine.high %v1260_v50, %v1264_v39 }
 0x27e   :  { %v4697_v54 = vcombine.low %v1388_v51, %v1392_v36  ;;  %v4698_v55 = vcombine.high %v1388_v51, %v1392_v36 }
 0x280   :  { %2749 = vmatpush2.bf16.msra.mxu0 %v4625_v57  ;;  %2790 = vmatpush2.bf16.msra.mxu1 %v4753_v58  ;;  %v5689_v57 = vld [vmem:[#allocation16 + $0x1e8] sm:$0xff] }
 0x281   :  { %2750 = vmatprep.subr.bf16.mxu0 %v4618_v63  ;;  %2791 = vmatprep.subr.bf16.mxu1 %v4746_v3  ;;  %v5691_v58 = vld [vmem:[#allocation16 + $0x5c8] sm:$0xff]  ;;  %v4564_v59 = vcombine.high %v5687_v56, %v5689_v57  ;;  %v4563_v61 = vcombine.low %v5687_v56, %v5689_v57 }
 0x282   :  { %v4691_v62 = vcombine.low %v5691_v58, %v5695_v60  ;;  %v4692_v63 = vcombine.high %v5691_v58, %v5695_v60 }
 0x284   :  { %2751 = vmatpush2.bf16.msra.mxu0 %v4617_v1  ;;  %2792 = vmatpush2.bf16.msra.mxu1 %v4745_v2 }
 0x285   :  { %2752 = vmatprep.subr.bf16.mxu0 %v4610_v7  ;;  %2793 = vmatprep.subr.bf16.mxu1 %v4738_v11 }
 0x288   :  { %2753 = vmatpush2.bf16.msra.mxu0 %v4609_v9  ;;  %2794 = vmatpush2.bf16.msra.mxu1 %v4737_v10 }
 0x289   :  { %2754 = vmatprep.subr.bf16.mxu0 %v4602_v15  ;;  %2795 = vmatprep.subr.bf16.mxu1 %v4730_v21 }
 0x28c   :  { %2755 = vmatpush2.bf16.msra.mxu0 %v4601_v19  ;;  %2796 = vmatpush2.bf16.msra.mxu1 %v4729_v20 }
 0x28d   :  { %2756 = vmatprep.subr.bf16.mxu0 %v4594_v27  ;;  %2797 = vmatprep.subr.bf16.mxu1 %v4722_v31 }
 0x290   :  { %2757 = vmatpush2.bf16.msra.mxu0 %v4593_v29  ;;  %2798 = vmatpush2.bf16.msra.mxu1 %v4721_v30 }
 0x291   :  { %2758 = vmatprep.subr.bf16.mxu0 %v4586_v35  ;;  %2799 = vmatprep.subr.bf16.mxu1 %v4714_v41 }
 0x294   :  { %2759 = vmatpush2.bf16.msra.mxu0 %v4585_v38  ;;  %2800 = vmatpush2.bf16.msra.mxu1 %v4713_v40 }
 0x295   :  { %2760 = vmatprep.subr.bf16.mxu0 %v4578_v45  ;;  %2801 = vmatprep.subr.bf16.mxu1 %v4706_v49 }
 0x298   :  { %2761 = vmatpush2.bf16.msra.mxu0 %v4577_v47  ;;  %2802 = vmatpush2.bf16.msra.mxu1 %v4705_v48 }
 0x299   :  { %2762 = vmatprep.subr.bf16.mxu0 %v4570_v53  ;;  %2803 = vmatprep.subr.bf16.mxu1 %v4698_v55 }
 0x29c   :  { %2763 = vmatpush2.bf16.msra.mxu0 %v4569_v52  ;;  %2804 = vmatpush2.bf16.msra.mxu1 %v4697_v54 }
 0x29d   :  { %2814 = vmatprep.subr.bf16.mxu0 %v4564_v59  ;;  %2855 = vmatprep.subr.bf16.mxu1 %v4692_v63 }
 0x31f   :  { %v5703_v0 = vpop.f32.mrf.mxu0  ;;  %v5705_v1 = vpop.f32.mrf.mxu1 }
 0x320   :  { %v994_v2 = vrot.slane %v5703_v0, 4  ;;  %v1022_v3 = vmul.f32 %v5703_v0, %v5703_v0  ;;  %v1006_v4 = vrot.slane %v5705_v1, 4  ;;  %v1024_v5 = vmul.f32 %v5705_v1, %v5705_v1 }
 0x321   :  { %v5713_v6 = vpop.f32.mrf.mxu0  ;;  %v5715_v7 = vpop.f32.mrf.mxu1 }
 0x322   :  { %v995_v8 = vadd.f32 %v994_v2, %v5703_v0  ;;  %v1026_v9 = vrot.slane %v1022_v3, 4  ;;  %v1007_v10 = vadd.f32 %v1006_v4, %v5705_v1  ;;  %v1038_v11 = vrot.slane %v1024_v5, 4 }
 0x323   :  { %v1000_v12 = vrot.slane %v5713_v6, 4  ;;  %v1023_v13 = vmul.f32 %v5713_v6, %v5713_v6  ;;  %v1012_v14 = vrot.slane %v5715_v7, 4  ;;  %v1025_v15 = vmul.f32 %v5715_v7, %v5715_v7  ;;  %v948_v17 = vpop.f32.mrf.mxu0  ;;  %v989_v19 = vpop.f32.mrf.mxu1 }
 0x324   :  { %v996_v20 = vrot.slane %v995_v8, 2  ;;  %v1027_v21 = vadd.f32 %v1026_v9, %v1022_v3  ;;  %v1008_v22 = vrot.slane %v1007_v10, 2  ;;  %v1039_v23 = vadd.f32 %v1038_v11, %v1024_v5 }
 0x325   :  { %v1001_v26 = vadd.f32 %v1000_v12, %v5713_v6  ;;  %v1032_v27 = vrot.slane %v1023_v13, 4  ;;  %v1013_v28 = vadd.f32 %v1012_v14, %v5715_v7  ;;  %v1044_v29 = vrot.slane %v1025_v15, 4  ;;  %v949_v30 = vpop.f32.mrf.mxu0  ;;  %v990_v31 = vpop.f32.mrf.mxu1 }
 0x326   :  { %v997_v32 = vadd.f32 %v996_v20, %v995_v8  ;;  %v1028_v33 = vrot.slane %v1027_v21, 2  ;;  %v1009_v34 = vadd.f32 %v1008_v22, %v1007_v10  ;;  %v1040_v35 = vrot.slane %v1039_v23, 2 }
 0x327   :  { %v1002_v37 = vrot.slane %v1001_v26, 2  ;;  %v1033_v38 = vadd.f32 %v1032_v27, %v1023_v13  ;;  %v1014_v40 = vrot.slane %v1013_v28, 2  ;;  %v1045_v41 = vadd.f32 %v1044_v29, %v1025_v15 }
 0x328   :  { %v998_v42 = vrot.slane %v997_v32, 1  ;;  %v1029_v43 = vadd.f32 %v1028_v33, %v1027_v21  ;;  %v1010_v44 = vrot.slane %v1009_v34, 1  ;;  %v1041_v45 = vadd.f32 %v1040_v35, %v1039_v23 }
 0x329   :  { %v1003_v46 = vadd.f32 %v1002_v37, %v1001_v26  ;;  %v1034_v47 = vrot.slane %v1033_v38, 2  ;;  %v1015_v48 = vadd.f32 %v1014_v40, %v1013_v28  ;;  %v1046_v49 = vrot.slane %v1045_v41, 2 }
 0x32a   :  { %v999_v50 = vadd.f32 %v998_v42, %v997_v32  ;;  %v1030_v39 = vrot.slane %v1029_v43, 1  ;;  %v1011_v51 = vadd.f32 %v1010_v44, %v1009_v34  ;;  %v1042_v52 = vrot.slane %v1041_v45, 1 }
 0x32b   :  { %v1004_v53 = vrot.slane %v1003_v46, 1  ;;  %v1035_v36 = vadd.f32 %v1034_v47, %v1033_v38  ;;  %v1016_v54 = vrot.slane %v1015_v48, 1  ;;  %v1047_v55 = vadd.f32 %v1046_v49, %v1045_v41 }
 0x32c   :  { %v1018_v59 = vmul.f32 0.125, %v999_v50  ;;  %v1031_v63 = vadd.f32 %v1030_v39, %v1029_v43  ;;  %v1020_v2 = vmul.f32 0.125, %v1011_v51  ;;  %v1043_v3 = vadd.f32 %v1042_v52, %v1041_v45  ;;  %v992_v45 = vld [vmem:[#allocation13] sm:$0xf] }
 0x32d   :  { %v1005_v4 = vadd.f32 %v1004_v53, %v1003_v46  ;;  %v1036_v5 = vrot.slane %v1035_v36, 1  ;;  %v1017_v8 = vadd.f32 %v1016_v54, %v1015_v48  ;;  %v1048_v9 = vrot.slane %v1047_v55, 1 }
 0x32e   :  { %v1050_v10 = vmul.f32 0.125, %v1031_v63  ;;  %v1054_v11 = vmul.f32 %v1018_v59, %v1018_v59  ;;  %v1052_v12 = vmul.f32 0.125, %v1043_v3  ;;  %v1056_v13 = vmul.f32 %v1020_v2, %v1020_v2 }
 0x32f   :  { %v1019_v14 = vmul.f32 0.125, %v1005_v4  ;;  %v1037_v15 = vadd.f32 %v1036_v5, %v1035_v36  ;;  %v1021_v17 = vmul.f32 0.125, %v1017_v8  ;;  %v1049_v19 = vadd.f32 %v1048_v9, %v1047_v55  ;;  %v993_v9 = vld [vmem:[#allocation15] sm:$0xf] }
 0x330   :  { %v1058_v20 = vsub.f32 %v1050_v10, %v1054_v11  ;;  %v1060_v21 = vsub.f32 %v1052_v12, %v1056_v13  ;;  %v5731_v47 = vsub.s32 2, %v5666_v16  ;;  %v5734_v48 = vsub.s32 3, %v5666_v16 }
 0x331   :  { %v1051_v22 = vmul.f32 0.125, %v1037_v15  ;;  %v1055_v23 = vmul.f32 %v1019_v14, %v1019_v14  ;;  %v1053_v26 = vmul.f32 0.125, %v1049_v19  ;;  %v1057_v27 = vmul.f32 %v1021_v17, %v1021_v17 }
 0x332   :  { %v1062_v28 = vadd.f32 0.8, %v1058_v20  ;;  %v1064_v29 = vadd.f32 0.8, %v1060_v21 }
 0x333   :  { %v1059_v30 = vsub.f32 %v1051_v22, %v1055_v23  ;;  %v1061_v31 = vsub.f32 %v1053_v26, %v1057_v27 }
 0x334   :  { %5240 = vrsqrt.f32 %v1062_v28 }
 0x335   :  { %v1063_v32 = vadd.f32 0.8, %v1059_v30  ;;  %v1065_v33 = vadd.f32 0.8, %v1061_v31  ;;  %5242 = vrsqrt.f32 %v1064_v29  ;;  %v1249_v31 = vld [vmem:[#allocation16 + $0x1a8] sm:$0xff] }
 0x337   :  { %5244 = vrsqrt.f32 %v1063_v32  ;;  %v1373_v32 = vld [vmem:[#allocation16 + $0x588] sm:$0xff] }
 0x338   :  { %5246 = vrsqrt.f32 %v1065_v33  ;;  %v1377_v33 = vld [vmem:[#allocation16 + $0x5a8] sm:$0xff] }
 0x341   :  { %v5241_v34 = vpop.eup %5240 }
 0x342   :  { %v5243_v35 = vpop.eup %5242 }
 0x344   :  { %v5245_v37 = vpop.eup %5244 }
 0x345   :  { %v5247_v38 = vpop.eup %5246  ;;  %v1074_v40 = vcombine.low %v5241_v34, %v5245_v37 }
 0x346   :  { %v1075_v41 = vcombine.low %v5243_v35, %v5247_v38 }
 0x347   :  { %v1082_v42 = vrot.slane %v1074_v40, %v5669_v18  ;;  %v1237_v40 = vld [vmem:[#allocation16 + $0x148] sm:$0xff] }
 0x348   :  { %v1089_v43 = vrot.slane %v1075_v41, %v5669_v18 }
 0x34a   :  { %v1090_v44 = vcombine.low %v1082_v42, %v1089_v43  ;;  %v4684_v42 = vcombine.high %v1373_v32, %v1377_v33  ;;  %v1241_v43 = vld [vmem:[#allocation16 + $0x168] sm:$0xff] }
 0x34b   :  { %v4547_v56 = vcombine.low %v1237_v40, %v1241_v43 }
 0x34c   :  { %v1097_v46 = vrot.slane %v1090_v44, %v5669_v18  ;;  %v1365_v44 = vld [vmem:[#allocation16 + $0x548] sm:$0xff] }
 0x34e   :  { %v1099_v49 = vmul.f32 %v1097_v46, %v992_v45  ;;  %v1369_v45 = vld [vmem:[#allocation16 + $0x568] sm:$0xff] }
 0x34f   :  { %v4675_v57 = vcombine.low %v1365_v44, %v1369_v45 }
 0x350   :  { %v1104_v50 = vrot.slane %v1099_v49, %v5674_v24  ;;  %v1108_v39 = vrot.slane %v1099_v49, %v5677_v25  ;;  %v1112_v51 = vrot.slane %v1099_v49, %v5731_v47  ;;  %v1116_v52 = vrot.slane %v1099_v49, %v5734_v48 }
 0x351   :  { %v4683_v49 = vcombine.low %v1373_v32, %v1377_v33  ;;  %v1445_v32 = vld [vmem:[#allocation16 + $0x7c8] sm:$0xff] }
 0x352   :  { %v1121_v53 = vmul.f32 %v1104_v50, %v1018_v59  ;;  %v1122_v36 = vmul.f32 %v1108_v39, %v1019_v14  ;;  %v1123_v54 = vmul.f32 %v1112_v51, %v1020_v2  ;;  %v1124_v55 = vmul.f32 %v1116_v52, %v1021_v17  ;;  %v1449_v33 = vld [vmem:[#allocation16 + $0x7e8] sm:$0xff] }
 0x353   :  { %v1158_v12 = vmul.f32 %v1116_v52, %v5715_v7  ;;  %v1156_v13 = vmul.f32 %v1108_v39, %v5713_v6  ;;  %v1155_v59 = vmul.f32 %v1104_v50, %v5703_v0  ;;  %v1157_v2 = vmul.f32 %v1112_v51, %v5705_v1  ;;  %v1245_v1 = vld [vmem:[#allocation16 + $0x188] sm:$0xff] }
 0x354   :  { %v1129_v63 = vcombine.low %v1121_v53, %v1122_v36  ;;  %v1130_v3 = vcombine.low %v1123_v54, %v1124_v55  ;;  %v4556_v41 = vcombine.high %v1245_v1, %v1249_v31  ;;  %v4555_v46 = vcombine.low %v1245_v1, %v1249_v31  ;;  %v1229_v51 = vld [vmem:[#allocation16 + $0x108] sm:$0xff] }
 0x355   :  { %v4548_v50 = vcombine.high %v1237_v40, %v1241_v43  ;;  %v4676_v39 = vcombine.high %v1365_v44, %v1369_v45  ;;  %v1233_v52 = vld [vmem:[#allocation16 + $0x128] sm:$0xff]  ;;  %v4756_v43 = vcombine.high %v1445_v32, %v1449_v33 }
 0x356   :  { %v1137_v4 = vrot.slane %v1129_v63, %v5669_v18  ;;  %v1144_v5 = vrot.slane %v1130_v3, %v5669_v18  ;;  %v1357_v53 = vld [vmem:[#allocation16 + $0x508] sm:$0xff]  ;;  %v4540_v58 = vcombine.high %v1229_v51, %v1233_v52  ;;  %v4539_v63 = vcombine.low %v1229_v51, %v1233_v52 }
 0x357   :  { %v1361_v36 = vld [vmem:[#allocation16 + $0x528] sm:$0xff] }
 0x358   :  { %v1145_v8 = vcombine.low %v1137_v4, %v1144_v5  ;;  %v4668_v60 = vcombine.high %v1357_v53, %v1361_v36  ;;  %v1349_v54 = vld [vmem:[#allocation16 + $0x4c8] sm:$0xff]  ;;  %v4667_v3 = vcombine.low %v1357_v53, %v1361_v36 }
 0x359   :  { %v1353_v55 = vld [vmem:[#allocation16 + $0x4e8] sm:$0xff] }
 0x35a   :  { %v1152_v10 = vrot.slane %v1145_v8, %v5669_v18  ;;  %v4660_v5 = vcombine.high %v1349_v54, %v1353_v55  ;;  %v1213_v8 = vld [vmem:[#allocation16 + $0x88] sm:$0xff] }
 0x35b   :  { %v1321_v31 = vld [vmem:[#allocation16 + $0x3e8] sm:$0xff] }
 0x35c   :  { %v1154_v11 = vsub.f32 %v993_v9, %v1152_v10  ;;  %v1217_v9 = vld [vmem:[#allocation16 + $0xa8] sm:$0xff] }
 0x35d   :  { %v1341_v10 = vld [vmem:[#allocation16 + $0x488] sm:$0xff] }
 0x35e   :  { %v1175_v14 = vrot.slane %v1154_v11, %v5734_v48  ;;  %v1167_v15 = vrot.slane %v1154_v11, %v5677_v25  ;;  %v1163_v17 = vrot.slane %v1154_v11, %v5674_v24  ;;  %v1171_v19 = vrot.slane %v1154_v11, %v5731_v47  ;;  %v1345_v11 = vld [vmem:[#allocation16 + $0x4a8] sm:$0xff] }
 0x35f   :  { %v1309_v44 = vld [vmem:[#allocation16 + $0x388] sm:$0xff] }
 0x360   :  { %v1183_v20 = vadd.f32 %v1175_v14, %v1158_v12  ;;  %v1181_v21 = vadd.f32 %v1167_v15, %v1156_v13  ;;  %v1180_v22 = vadd.f32 %v1163_v17, %v1155_v59  ;;  %v1182_v23 = vadd.f32 %v1171_v19, %v1157_v2  ;;  %v1205_v14 = vld [vmem:[#allocation16 + $0x48] sm:$0xff] }
 0x361   :  { %v4659_v13 = vcombine.low %v1349_v54, %v1353_v55  ;;  %v4524_v59 = vcombine.high %v1213_v8, %v1217_v9  ;;  %v4652_v2 = vcombine.high %v1341_v10, %v1345_v11  ;;  %v1209_v15 = vld [vmem:[#allocation16 + $0x68] sm:$0xff] }
 0x362   :  { %v1187_v26 = vmul.f32 0.2, %v1183_v20  ;;  %v1185_v7 = vmul.f32 0.2, %v1181_v21  ;;  %v1184_v27 = vmul.f32 0.2, %v1180_v22 }
 0x363   :  { %v1186_v6 = vmul.f32 0.2, %v1182_v23  ;;  %v1333_v17 = vld [vmem:[#allocation16 + $0x448] sm:$0xff] }
 0x364   :  { %v1189_v28 = vmax.f32 %v1181_v21, %v1185_v7  ;;  %v1191_v0 = vmax.f32 %v1183_v20, %v1187_v26  ;;  %v1188_v29 = vmax.f32 %v1180_v22, %v1184_v27  ;;  %v1337_v19 = vld [vmem:[#allocation16 + $0x468] sm:$0xff]  ;;  %v4523_v20 = vcombine.low %v1213_v8, %v1217_v9 }
 0x365   :  { %v1190_v30 = vmax.f32 %v1182_v23, %v1186_v6  ;;  %v4651_v21 = vcombine.low %v1341_v10, %v1345_v11  ;;  %v4516_v22 = vcombine.high %v1205_v14, %v1209_v15  ;;  %v4644_v23 = vcombine.high %v1333_v17, %v1337_v19  ;;  %v1197_v26 = vld [vmem:[#allocation16 + $0x8] sm:$0xff] }
 0x366   :  { %v5751_v34 = vpack.c.bf16 %v1189_v28, %v1189_v28  ;;  %v5753_v35 = vpack.c.bf16 %v1191_v0, %v1191_v0  ;;  %v5755_v37 = vpack.c.bf16 %v1188_v29, %v1188_v29  ;;  %v1201_v7 = vld [vmem:[#allocation16 + $0x28] sm:$0xff]  ;;  %v4515_v28 = vcombine.low %v1205_v14, %v1209_v15 }
 0x367   :  { %v5757_v38 = vpack.c.bf16 %v1190_v30, %v1190_v30  ;;  %v1325_v27 = vld [vmem:[#allocation16 + $0x408] sm:$0xff]  ;;  %v4643_v0 = vcombine.low %v1333_v17, %v1337_v19  ;;  %v4508_v29 = vcombine.high %v1197_v26, %v1201_v7  ;;  %v4507_v40 = vcombine.low %v1197_v26, %v1201_v7 }
 0x368   :  { %2764 = vmatprep.mubr.bf16.mxu0 %v5751_v34  ;;  %2805 = vmatprep.mubr.bf16.mxu1 %v5753_v35  ;;  %v1329_v6 = vld [vmem:[#allocation16 + $0x428] sm:$0xff] }
 0x369   :  { %2765 = vmatmul.mubr.bf16.vlgmr.msra.gmra.mxu0 %v5755_v37  ;;  %2806 = vmatmul.mubr.bf16.vlgmr.msra.gmra.mxu1 %v5757_v38  ;;  %v4636_v1 = vcombine.high %v1325_v27, %v1329_v6  ;;  %v1317_v30 = vld [vmem:[#allocation16 + $0x3c8] sm:$0xff] }
 0x36a   :  { %2815 = vmatpush1.bf16.msra.mxu0 %v4563_v61  ;;  %2856 = vmatpush1.bf16.msra.mxu1 %v4691_v62  ;;  %v1221_v61 = vld [vmem:[#allocation16 + $0xc8] sm:$0xff] }
 0x36b   :  { %2846 = vmatprep.mubr.bf16.mxu0 %v5751_v34  ;;  %2887 = vmatprep.mubr.bf16.mxu1 %v5753_v35  ;;  %v1225_v62 = vld [vmem:[#allocation16 + $0xe8] sm:$0xff] }
 0x36c   :  { %2816 = vmatprep.subr.bf16.mxu0 %v4556_v41  ;;  %2857 = vmatprep.subr.bf16.mxu1 %v4684_v42  ;;  %v4532_v4 = vcombine.high %v1221_v61, %v1225_v62  ;;  %v4531_v12 = vcombine.low %v1221_v61, %v1225_v62  ;;  %v4635_v41 = vcombine.low %v1325_v27, %v1329_v6  ;;  %v1313_v45 = vld [vmem:[#allocation16 + $0x3a8] sm:$0xff] }
 0x36d   :  { %v4628_v42 = vcombine.high %v1317_v30, %v1321_v31  ;;  %v4620_v51 = vcombine.high %v1309_v44, %v1313_v45  ;;  %v1301_v53 = vld [vmem:[#allocation16 + $0x348] sm:$0xff] }
 0x36e   :  { %2817 = vmatpush1.bf16.msra.mxu0 %v4555_v46  ;;  %2858 = vmatpush1.bf16.msra.mxu1 %v4683_v49  ;;  %v1437_v46 = vld [vmem:[#allocation16 + $0x788] sm:$0xff] }
 0x36f   :  { %2818 = vmatprep.subr.bf16.mxu0 %v4548_v50  ;;  %2859 = vmatprep.subr.bf16.mxu1 %v4676_v39  ;;  %v1441_v49 = vld [vmem:[#allocation16 + $0x7a8] sm:$0xff]  ;;  %v4627_v50 = vcombine.low %v1317_v30, %v1321_v31  ;;  %v4755_v39 = vcombine.low %v1445_v32, %v1449_v33 }
 0x370   :  { %v4748_v52 = vcombine.high %v1437_v46, %v1441_v49  ;;  %v1305_v36 = vld [vmem:[#allocation16 + $0x368] sm:$0xff] }
 0x371   :  { %v4612_v61 = vcombine.high %v1301_v53, %v1305_v36  ;;  %v1293_v54 = vld [vmem:[#allocation16 + $0x308] sm:$0xff] }
 0x372   :  { %2819 = vmatpush1.bf16.msra.mxu0 %v4547_v56  ;;  %2860 = vmatpush1.bf16.msra.mxu1 %v4675_v57  ;;  %v1429_v56 = vld [vmem:[#allocation16 + $0x748] sm:$0xff] }
 0x373   :  { %2820 = vmatprep.subr.bf16.mxu0 %v4540_v58  ;;  %2861 = vmatprep.subr.bf16.mxu1 %v4668_v60  ;;  %v1433_v57 = vld [vmem:[#allocation16 + $0x768] sm:$0xff]  ;;  %v4619_v58 = vcombine.low %v1309_v44, %v1313_v45  ;;  %v4747_v60 = vcombine.low %v1437_v46, %v1441_v49  ;;  %v1254_v46 = vld [vmem:[#allocation16 + $0x1d0] sm:$0xff] }
 0x374   :  { %v4740_v62 = vcombine.high %v1429_v56, %v1433_v57  ;;  %v1297_v55 = vld [vmem:[#allocation16 + $0x328] sm:$0xff]  ;;  %v1258_v49 = vld [vmem:[#allocation16 + $0x1f0] sm:$0xff] }
 0x375   :  { %v4604_v8 = vcombine.high %v1293_v54, %v1297_v55  ;;  %v1285_v10 = vld [vmem:[#allocation16 + $0x2c8] sm:$0xff] }
 0x376   :  { %2821 = vmatpush1.bf16.msra.mxu0 %v4539_v63  ;;  %2862 = vmatpush1.bf16.msra.mxu1 %v4667_v3  ;;  %v1421_v63 = vld [vmem:[#allocation16 + $0x708] sm:$0xff] }
 0x377   :  { %2822 = vmatprep.subr.bf16.mxu0 %v4532_v4  ;;  %2863 = vmatprep.subr.bf16.mxu1 %v4660_v5  ;;  %v1425_v3 = vld [vmem:[#allocation16 + $0x728] sm:$0xff]  ;;  %v4611_v4 = vcombine.low %v1301_v53, %v1305_v36  ;;  %v4739_v5 = vcombine.low %v1429_v56, %v1433_v57  ;;  %v4566_v53 = vcombine.high %v1254_v46, %v1258_v49  ;;  %v1246_v56 = vld [vmem:[#allocation16 + $0x190] sm:$0xff] }
 0x378   :  { %v4732_v9 = vcombine.high %v1421_v63, %v1425_v3  ;;  %v1289_v11 = vld [vmem:[#allocation16 + $0x2e8] sm:$0xff]  ;;  %v1250_v57 = vld [vmem:[#allocation16 + $0x1b0] sm:$0xff] }
 0x379   :  { %v4596_v14 = vcombine.high %v1285_v10, %v1289_v11  ;;  %v1277_v17 = vld [vmem:[#allocation16 + $0x288] sm:$0xff] }
 0x37a   :  { %2823 = vmatpush1.bf16.msra.mxu0 %v4531_v12  ;;  %2864 = vmatpush1.bf16.msra.mxu1 %v4659_v13  ;;  %v1413_v12 = vld [vmem:[#allocation16 + $0x6c8] sm:$0xff] }
 0x37b   :  { %2824 = vmatprep.subr.bf16.mxu0 %v4524_v59  ;;  %2865 = vmatprep.subr.bf16.mxu1 %v4652_v2  ;;  %v1417_v13 = vld [vmem:[#allocation16 + $0x6e8] sm:$0xff]  ;;  %v4603_v59 = vcombine.low %v1293_v54, %v1297_v55  ;;  %v4731_v2 = vcombine.low %v1421_v63, %v1425_v3  ;;  %v4558_v54 = vcombine.high %v1246_v56, %v1250_v57  ;;  %v1238_v63 = vld [vmem:[#allocation16 + $0x150] sm:$0xff] }
 0x37c   :  { %v4724_v15 = vcombine.high %v1413_v12, %v1417_v13  ;;  %v1281_v19 = vld [vmem:[#allocation16 + $0x2a8] sm:$0xff]  ;;  %v1242_v3 = vld [vmem:[#allocation16 + $0x170] sm:$0xff] }
 0x37d   :  { %v4588_v26 = vcombine.high %v1277_v17, %v1281_v19  ;;  %v1269_v27 = vld [vmem:[#allocation16 + $0x248] sm:$0xff] }
 0x37e   :  { %2825 = vmatpush1.bf16.msra.mxu0 %v4523_v20  ;;  %2866 = vmatpush1.bf16.msra.mxu1 %v4651_v21  ;;  %v1405_v20 = vld [vmem:[#allocation16 + $0x688] sm:$0xff] }
 0x37f   :  { %2826 = vmatprep.subr.bf16.mxu0 %v4516_v22  ;;  %2867 = vmatprep.subr.bf16.mxu1 %v4644_v23  ;;  %v1409_v21 = vld [vmem:[#allocation16 + $0x6a8] sm:$0xff]  ;;  %v4595_v22 = vcombine.low %v1285_v10, %v1289_v11  ;;  %v4723_v23 = vcombine.low %v1413_v12, %v1417_v13  ;;  %v4550_v10 = vcombine.high %v1238_v63, %v1242_v3  ;;  %v1230_v12 = vld [vmem:[#allocation16 + $0x110] sm:$0xff] }
 0x380   :  { %v4716_v7 = vcombine.high %v1405_v20, %v1409_v21  ;;  %v1273_v6 = vld [vmem:[#allocation16 + $0x268] sm:$0xff]  ;;  %v1234_v13 = vld [vmem:[#allocation16 + $0x130] sm:$0xff] }
 0x381   :  { %v4580_v30 = vcombine.high %v1269_v27, %v1273_v6  ;;  %v1261_v32 = vld [vmem:[#allocation16 + $0x208] sm:$0xff] }
 0x382   :  { %2827 = vmatpush1.bf16.msra.mxu0 %v4515_v28  ;;  %2868 = vmatpush1.bf16.msra.mxu1 %v4643_v0  ;;  %v1397_v28 = vld [vmem:[#allocation16 + $0x648] sm:$0xff] }
 0x383   :  { %2828 = vmatprep.subr.bf16.mxu0 %v4508_v29  ;;  %2869 = vmatprep.subr.bf16.mxu1 %v4636_v1  ;;  %v1401_v0 = vld [vmem:[#allocation16 + $0x668] sm:$0xff]  ;;  %v4587_v29 = vcombine.low %v1277_v17, %v1281_v19  ;;  %v4715_v1 = vcombine.low %v1405_v20, %v1409_v21  ;;  %v4542_v17 = vcombine.high %v1230_v12, %v1234_v13  ;;  %v1222_v20 = vld [vmem:[#allocation16 + $0xd0] sm:$0xff] }
 0x384   :  { %v4708_v31 = vcombine.high %v1397_v28, %v1401_v0  ;;  %v1265_v33 = vld [vmem:[#allocation16 + $0x228] sm:$0xff]  ;;  %v1226_v21 = vld [vmem:[#allocation16 + $0xf0] sm:$0xff] }
 0x385   :  { %v4572_v44 = vcombine.high %v1261_v32, %v1265_v33 }
 0x386   :  { %2829 = vmatpush1.bf16.msra.mxu0 %v4507_v40  ;;  %2870 = vmatpush1.bf16.msra.mxu1 %v4635_v41  ;;  %v1389_v40 = vld [vmem:[#allocation16 + $0x608] sm:$0xff] }
 0x387   :  { %2830 = vmatprep.subr.bf16.mxu0 %v4628_v42  ;;  %2871 = vmatprep.subr.bf16.mxu1 %v4756_v43  ;;  %v1393_v41 = vld [vmem:[#allocation16 + $0x628] sm:$0xff]  ;;  %v4579_v42 = vcombine.low %v1269_v27, %v1273_v6  ;;  %v4707_v43 = vcombine.low %v1397_v28, %v1401_v0  ;;  %v4534_v27 = vcombine.high %v1222_v20, %v1226_v21  ;;  %v1214_v28 = vld [vmem:[#allocation16 + $0x90] sm:$0xff] }
 0x388   :  { %v4700_v45 = vcombine.high %v1389_v40, %v1393_v41  ;;  %v1218_v0 = vld [vmem:[#allocation16 + $0xb0] sm:$0xff] }
 0x38a   :  { %2831 = vmatpush2.bf16.msra.mxu0 %v4627_v50  ;;  %2872 = vmatpush2.bf16.msra.mxu1 %v4755_v39  ;;  %v1382_v50 = vld [vmem:[#allocation16 + $0x5d0] sm:$0xff] }
 0x38b   :  { %2832 = vmatprep.subr.bf16.mxu0 %v4620_v51  ;;  %2873 = vmatprep.subr.bf16.mxu1 %v4748_v52  ;;  %v1386_v39 = vld [vmem:[#allocation16 + $0x5f0] sm:$0xff]  ;;  %v4571_v51 = vcombine.low %v1261_v32, %v1265_v33  ;;  %v4699_v52 = vcombine.low %v1389_v40, %v1393_v41  ;;  %v4526_v32 = vcombine.high %v1214_v28, %v1218_v0 }
 0x38c   :  { %v4694_v36 = vcombine.high %v1382_v50, %v1386_v39  ;;  %v1206_v40 = vld [vmem:[#allocation16 + $0x50] sm:$0xff] }
 0x38d   :  { %v1210_v41 = vld [vmem:[#allocation16 + $0x70] sm:$0xff] }
 0x38e   :  { %2833 = vmatpush2.bf16.msra.mxu0 %v4619_v58  ;;  %2874 = vmatpush2.bf16.msra.mxu1 %v4747_v60  ;;  %v1374_v58 = vld [vmem:[#allocation16 + $0x590] sm:$0xff] }
 0x38f   :  { %2834 = vmatprep.subr.bf16.mxu0 %v4612_v61  ;;  %2875 = vmatprep.subr.bf16.mxu1 %v4740_v62  ;;  %v1378_v60 = vld [vmem:[#allocation16 + $0x5b0] sm:$0xff]  ;;  %v4565_v61 = vcombine.low %v1254_v46, %v1258_v49  ;;  %v4693_v62 = vcombine.low %v1382_v50, %v1386_v39  ;;  %v4518_v46 = vcombine.high %v1206_v40, %v1210_v41 }
 0x390   :  { %v4686_v55 = vcombine.high %v1374_v58, %v1378_v60  ;;  %v1198_v50 = vld [vmem:[#allocation16 + $0x10] sm:$0xff] }
 0x391   :  { %v1202_v39 = vld [vmem:[#allocation16 + $0x30] sm:$0xff] }
 0x392   :  { %2835 = vmatpush2.bf16.msra.mxu0 %v4611_v4  ;;  %2876 = vmatpush2.bf16.msra.mxu1 %v4739_v5  ;;  %v1366_v4 = vld [vmem:[#allocation16 + $0x550] sm:$0xff] }
 0x393   :  { %2836 = vmatprep.subr.bf16.mxu0 %v4604_v8  ;;  %2877 = vmatprep.subr.bf16.mxu1 %v4732_v9  ;;  %v1370_v5 = vld [vmem:[#allocation16 + $0x570] sm:$0xff]  ;;  %v4557_v8 = vcombine.low %v1246_v56, %v1250_v57  ;;  %v4685_v9 = vcombine.low %v1374_v58, %v1378_v60  ;;  %v4510_v56 = vcombine.high %v1198_v50, %v1202_v39 }
 0x394   :  { %v4678_v11 = vcombine.high %v1366_v4, %v1370_v5  ;;  %v1318_v58 = vld [vmem:[#allocation16 + $0x3d0] sm:$0xff] }
 0x395   :  { %v1322_v60 = vld [vmem:[#allocation16 + $0x3f0] sm:$0xff] }
 0x396   :  { %2837 = vmatpush2.bf16.msra.mxu0 %v4603_v59  ;;  %2878 = vmatpush2.bf16.msra.mxu1 %v4731_v2  ;;  %v1358_v59 = vld [vmem:[#allocation16 + $0x510] sm:$0xff] }
 0x397   :  { %2838 = vmatprep.subr.bf16.mxu0 %v4596_v14  ;;  %2879 = vmatprep.subr.bf16.mxu1 %v4724_v15  ;;  %v1362_v2 = vld [vmem:[#allocation16 + $0x530] sm:$0xff]  ;;  %v4549_v14 = vcombine.low %v1238_v63, %v1242_v3  ;;  %v4677_v15 = vcombine.low %v1366_v4, %v1370_v5  ;;  %v4630_v63 = vcombine.high %v1318_v58, %v1322_v60 }
 0x398   :  { %v4670_v19 = vcombine.high %v1358_v59, %v1362_v2  ;;  %v1310_v4 = vld [vmem:[#allocation16 + $0x390] sm:$0xff] }
 0x399   :  { %v1314_v5 = vld [vmem:[#allocation16 + $0x3b0] sm:$0xff] }
 0x39a   :  { %2839 = vmatpush2.bf16.msra.mxu0 %v4595_v22  ;;  %2880 = vmatpush2.bf16.msra.mxu1 %v4723_v23  ;;  %v1350_v22 = vld [vmem:[#allocation16 + $0x4d0] sm:$0xff] }
 0x39b   :  { %2840 = vmatprep.subr.bf16.mxu0 %v4588_v26  ;;  %2881 = vmatprep.subr.bf16.mxu1 %v4716_v7  ;;  %v1354_v23 = vld [vmem:[#allocation16 + $0x4f0] sm:$0xff]  ;;  %v4541_v26 = vcombine.low %v1230_v12, %v1234_v13  ;;  %v4669_v7 = vcombine.low %v1358_v59, %v1362_v2  ;;  %v4622_v12 = vcombine.high %v1310_v4, %v1314_v5 }
 0x39c   :  { %v4662_v6 = vcombine.high %v1350_v22, %v1354_v23  ;;  %v1302_v59 = vld [vmem:[#allocation16 + $0x350] sm:$0xff] }
 0x39d   :  { %v1306_v2 = vld [vmem:[#allocation16 + $0x370] sm:$0xff] }
 0x39e   :  { %2841 = vmatpush2.bf16.msra.mxu0 %v4587_v29  ;;  %2882 = vmatpush2.bf16.msra.mxu1 %v4715_v1  ;;  %v1342_v29 = vld [vmem:[#allocation16 + $0x490] sm:$0xff] }
 0x39f   :  { %2842 = vmatprep.subr.bf16.mxu0 %v4580_v30  ;;  %2883 = vmatprep.subr.bf16.mxu1 %v4708_v31  ;;  %v1346_v1 = vld [vmem:[#allocation16 + $0x4b0] sm:$0xff]  ;;  %v4533_v30 = vcombine.low %v1222_v20, %v1226_v21  ;;  %v4661_v31 = vcombine.low %v1350_v22, %v1354_v23  ;;  %v4614_v20 = vcombine.high %v1302_v59, %v1306_v2 }
 0x3a0   :  { %v4654_v33 = vcombine.high %v1342_v29, %v1346_v1  ;;  %v1294_v22 = vld [vmem:[#allocation16 + $0x310] sm:$0xff] }
 0x3a1   :  { %v1298_v23 = vld [vmem:[#allocation16 + $0x330] sm:$0xff] }
 0x3a2   :  { %2843 = vmatpush2.bf16.msra.mxu0 %v4579_v42  ;;  %2884 = vmatpush2.bf16.msra.mxu1 %v4707_v43  ;;  %v1334_v42 = vld [vmem:[#allocation16 + $0x450] sm:$0xff] }
 0x3a3   :  { %2844 = vmatprep.subr.bf16.mxu0 %v4572_v44  ;;  %2885 = vmatprep.subr.bf16.mxu1 %v4700_v45  ;;  %v1338_v43 = vld [vmem:[#allocation16 + $0x470] sm:$0xff]  ;;  %v4525_v44 = vcombine.low %v1214_v28, %v1218_v0  ;;  %v4653_v45 = vcombine.low %v1342_v29, %v1346_v1  ;;  %v4606_v28 = vcombine.high %v1294_v22, %v1298_v23 }
 0x3a4   :  { %v4646_v49 = vcombine.high %v1334_v42, %v1338_v43  ;;  %v1286_v29 = vld [vmem:[#allocation16 + $0x2d0] sm:$0xff] }
 0x3a5   :  { %v1290_v1 = vld [vmem:[#allocation16 + $0x2f0] sm:$0xff] }
 0x3a6   :  { %2845 = vmatpush2.bf16.msra.mxu0 %v4571_v51  ;;  %2886 = vmatpush2.bf16.msra.mxu1 %v4699_v52  ;;  %v1326_v51 = vld [vmem:[#allocation16 + $0x410] sm:$0xff] }
 0x3a7   :  { %2896 = vmatprep.subr.bf16.mxu0 %v4566_v53  ;;  %2937 = vmatprep.subr.bf16.mxu1 %v4694_v36  ;;  %v1330_v52 = vld [vmem:[#allocation16 + $0x430] sm:$0xff]  ;;  %v4517_v53 = vcombine.low %v1206_v40, %v1210_v41  ;;  %v4645_v36 = vcombine.low %v1334_v42, %v1338_v43  ;;  %v4598_v40 = vcombine.high %v1286_v29, %v1290_v1 }
 0x3a8   :  { %v4638_v57 = vcombine.high %v1326_v51, %v1330_v52  ;;  %v1278_v42 = vld [vmem:[#allocation16 + $0x290] sm:$0xff] }
 0x3a9   :  { %2847 = vmatmul.mubr.bf16.vlgmr.msra.gmra.mxu0 %v5755_v37  ;;  %2888 = vmatmul.mubr.bf16.vlgmr.msra.gmra.mxu1 %v5757_v38  ;;  %v1282_v43 = vld [vmem:[#allocation16 + $0x2b0] sm:$0xff] }
 0x3aa   :  { %2897 = vmatpush1.bf16.msra.mxu0 %v4565_v61  ;;  %2928 = vmatprep.mubr.bf16.mxu0 %v5751_v34  ;;  %v1446_v61 = vld [vmem:[#allocation16 + $0x7d0] sm:$0xff] }
 0x3ab   :  { %2938 = vmatpush1.bf16.msra.mxu1 %v4693_v62  ;;  %2969 = vmatprep.mubr.bf16.mxu1 %v5753_v35  ;;  %v1450_v62 = vld [vmem:[#allocation16 + $0x7f0] sm:$0xff] }
 0x3ac   :  { %2898 = vmatprep.subr.bf16.mxu0 %v4558_v54  ;;  %2939 = vmatprep.subr.bf16.mxu1 %v4686_v55  ;;  %v4509_v54 = vcombine.low %v1198_v50, %v1202_v39  ;;  %v4637_v55 = vcombine.low %v1326_v51, %v1330_v52  ;;  %v4758_v3 = vcombine.high %v1446_v61, %v1450_v62  ;;  %v1270_v51 = vld [vmem:[#allocation16 + $0x250] sm:$0xff] }
 0x3ad   :  { %v4590_v50 = vcombine.high %v1278_v42, %v1282_v43  ;;  %v1274_v52 = vld [vmem:[#allocation16 + $0x270] sm:$0xff] }
 0x3ae   :  { %2899 = vmatpush1.bf16.msra.mxu0 %v4557_v8  ;;  %v1438_v8 = vld [vmem:[#allocation16 + $0x790] sm:$0xff] }
 0x3af   :  { %2940 = vmatpush1.bf16.msra.mxu1 %v4685_v9  ;;  %2900 = vmatprep.subr.bf16.mxu0 %v4550_v10  ;;  %v1442_v9 = vld [vmem:[#allocation16 + $0x7b0] sm:$0xff]  ;;  %v4629_v10 = vcombine.low %v1318_v58, %v1322_v60  ;;  %v4582_v58 = vcombine.high %v1270_v51, %v1274_v52 }
 0x3b0   :  { %2941 = vmatprep.subr.bf16.mxu1 %v4678_v11  ;;  %v4757_v11 = vcombine.low %v1446_v61, %v1450_v62  ;;  %v4750_v13 = vcombine.high %v1438_v8, %v1442_v9  ;;  %v1262_v61 = vld [vmem:[#allocation16 + $0x210] sm:$0xff] }
 0x3b1   :  { %v1266_v62 = vld [vmem:[#allocation16 + $0x230] sm:$0xff] }
 0x3b2   :  { %2901 = vmatpush1.bf16.msra.mxu0 %v4549_v14  ;;  %v1430_v14 = vld [vmem:[#allocation16 + $0x750] sm:$0xff] }
 0x3b3   :  { %2942 = vmatpush1.bf16.msra.mxu1 %v4677_v15  ;;  %2902 = vmatprep.subr.bf16.mxu0 %v4542_v17  ;;  %v1434_v15 = vld [vmem:[#allocation16 + $0x770] sm:$0xff]  ;;  %v4621_v17 = vcombine.low %v1310_v4, %v1314_v5  ;;  %v4574_v4 = vcombine.high %v1262_v61, %v1266_v62 }
 0x3b4   :  { %2943 = vmatprep.subr.bf16.mxu1 %v4670_v19  ;;  %v4749_v19 = vcombine.low %v1438_v8, %v1442_v9  ;;  %v4742_v21 = vcombine.high %v1430_v14, %v1434_v15  ;;  %v1255_v8 = vld [vmem:[#allocation16 + $0x1d8] sm:$0xff] }
 0x3b5   :  { %v1259_v9 = vld [vmem:[#allocation16 + $0x1f8] sm:$0xff] }
 0x3b6   :  { %2903 = vmatpush1.bf16.msra.mxu0 %v4541_v26  ;;  %v1422_v26 = vld [vmem:[#allocation16 + $0x710] sm:$0xff] }
 0x3b7   :  { %2944 = vmatpush1.bf16.msra.mxu1 %v4669_v7  ;;  %2904 = vmatprep.subr.bf16.mxu0 %v4534_v27  ;;  %v1426_v7 = vld [vmem:[#allocation16 + $0x730] sm:$0xff]  ;;  %v4613_v27 = vcombine.low %v1302_v59, %v1306_v2  ;;  %v4568_v59 = vcombine.high %v1255_v8, %v1259_v9 }
 0x3b8   :  { %2945 = vmatprep.subr.bf16.mxu1 %v4662_v6  ;;  %v4741_v6 = vcombine.low %v1430_v14, %v1434_v15  ;;  %v4734_v0 = vcombine.high %v1422_v26, %v1426_v7  ;;  %v1247_v14 = vld [vmem:[#allocation16 + $0x198] sm:$0xff] }
 0x3b9   :  { %v1251_v15 = vld [vmem:[#allocation16 + $0x1b8] sm:$0xff] }
 0x3ba   :  { %2905 = vmatpush1.bf16.msra.mxu0 %v4533_v30  ;;  %v1414_v30 = vld [vmem:[#allocation16 + $0x6d0] sm:$0xff] }
 0x3bb   :  { %2946 = vmatpush1.bf16.msra.mxu1 %v4661_v31  ;;  %2906 = vmatprep.subr.bf16.mxu0 %v4526_v32  ;;  %v1418_v31 = vld [vmem:[#allocation16 + $0x6f0] sm:$0xff]  ;;  %v4605_v32 = vcombine.low %v1294_v22, %v1298_v23  ;;  %v4560_v22 = vcombine.high %v1247_v14, %v1251_v15  ;;  %v1239_v23 = vld [vmem:[#allocation16 + $0x158] sm:$0xff] }
 0x3bc   :  { %2947 = vmatprep.subr.bf16.mxu1 %v4654_v33  ;;  %v4733_v33 = vcombine.low %v1422_v26, %v1426_v7  ;;  %v4726_v41 = vcombine.high %v1414_v30, %v1418_v31  ;;  %v1243_v26 = vld [vmem:[#allocation16 + $0x178] sm:$0xff] }
 0x3be   :  { %2907 = vmatpush1.bf16.msra.mxu0 %v4525_v44  ;;  %v1406_v44 = vld [vmem:[#allocation16 + $0x690] sm:$0xff] }
 0x3bf   :  { %2948 = vmatpush1.bf16.msra.mxu1 %v4653_v45  ;;  %2908 = vmatprep.subr.bf16.mxu0 %v4518_v46  ;;  %v1410_v45 = vld [vmem:[#allocation16 + $0x6b0] sm:$0xff]  ;;  %v4597_v46 = vcombine.low %v1286_v29, %v1290_v1  ;;  %v4552_v29 = vcombine.high %v1239_v23, %v1243_v26 }
 0x3c0   :  { %2949 = vmatprep.subr.bf16.mxu1 %v4646_v49  ;;  %v4725_v49 = vcombine.low %v1414_v30, %v1418_v31  ;;  %v4718_v39 = vcombine.high %v1406_v44, %v1410_v45  ;;  %v1231_v30 = vld [vmem:[#allocation16 + $0x118] sm:$0xff] }
 0x3c1   :  { %v1235_v31 = vld [vmem:[#allocation16 + $0x138] sm:$0xff] }
 0x3c2   :  { %2909 = vmatpush1.bf16.msra.mxu0 %v4517_v53  ;;  %v1398_v53 = vld [vmem:[#allocation16 + $0x650] sm:$0xff] }
 0x3c3   :  { %2950 = vmatpush1.bf16.msra.mxu1 %v4645_v36  ;;  %2910 = vmatprep.subr.bf16.mxu0 %v4510_v56  ;;  %v1402_v36 = vld [vmem:[#allocation16 + $0x670] sm:$0xff]  ;;  %v4589_v56 = vcombine.low %v1278_v42, %v1282_v43  ;;  %v4544_v42 = vcombine.high %v1231_v30, %v1235_v31  ;;  %v1223_v43 = vld [vmem:[#allocation16 + $0xd8] sm:$0xff] }
 0x3c4   :  { %2951 = vmatprep.subr.bf16.mxu1 %v4638_v57  ;;  %v4717_v57 = vcombine.low %v1406_v44, %v1410_v45  ;;  %v4710_v60 = vcombine.high %v1398_v53, %v1402_v36  ;;  %v1227_v44 = vld [vmem:[#allocation16 + $0xf8] sm:$0xff] }
 0x3c5   :  { %v1351_v45 = vld [vmem:[#allocation16 + $0x4d8] sm:$0xff] }
 0x3c6   :  { %2911 = vmatpush1.bf16.msra.mxu0 %v4509_v54  ;;  %v1390_v54 = vld [vmem:[#allocation16 + $0x610] sm:$0xff] }
 0x3c7   :  { %2952 = vmatpush1.bf16.msra.mxu1 %v4637_v55  ;;  %2912 = vmatprep.subr.bf16.mxu0 %v4630_v63  ;;  %v1394_v55 = vld [vmem:[#allocation16 + $0x630] sm:$0xff]  ;;  %v4581_v63 = vcombine.low %v1270_v51, %v1274_v52  ;;  %v1215_v51 = vld [vmem:[#allocation16 + $0x98] sm:$0xff] }
 0x3c8   :  { %2953 = vmatprep.subr.bf16.mxu1 %v4758_v3  ;;  %v4709_v3 = vcombine.low %v1398_v53, %v1402_v36  ;;  %v4702_v5 = vcombine.high %v1390_v54, %v1394_v55  ;;  %v1219_v52 = vld [vmem:[#allocation16 + $0xb8] sm:$0xff] }
 0x3c9   :  { %v1343_v53 = vld [vmem:[#allocation16 + $0x498] sm:$0xff] }
 0x3ca   :  { %2913 = vmatpush2.bf16.msra.mxu0 %v4629_v10  ;;  %v1383_v10 = vld [vmem:[#allocation16 + $0x5d8] sm:$0xff] }
 0x3cb   :  { %2954 = vmatpush2.bf16.msra.mxu1 %v4757_v11  ;;  %2914 = vmatprep.subr.bf16.mxu0 %v4622_v12  ;;  %v1387_v11 = vld [vmem:[#allocation16 + $0x5f8] sm:$0xff]  ;;  %v4573_v12 = vcombine.low %v1262_v61, %v1266_v62 }
 0x3cc   :  { %2955 = vmatprep.subr.bf16.mxu1 %v4750_v13  ;;  %v4701_v13 = vcombine.low %v1390_v54, %v1394_v55  ;;  %v4696_v2 = vcombine.high %v1383_v10, %v1387_v11  ;;  %v1347_v36 = vld [vmem:[#allocation16 + $0x4b8] sm:$0xff] }
 0x3cd   :  { %v1207_v61 = vld [vmem:[#allocation16 + $0x58] sm:$0xff] }
 0x3ce   :  { %2915 = vmatpush2.bf16.msra.mxu0 %v4621_v17  ;;  %v4567_v17 = vcombine.low %v1255_v8, %v1259_v9  ;;  %v1211_v62 = vld [vmem:[#allocation16 + $0x78] sm:$0xff] }
 0x3cf   :  { %2956 = vmatpush2.bf16.msra.mxu1 %v4749_v19  ;;  %2916 = vmatprep.subr.bf16.mxu0 %v4614_v20  ;;  %v1375_v19 = vld [vmem:[#allocation16 + $0x598] sm:$0xff] }
 0x3d0   :  { %2957 = vmatprep.subr.bf16.mxu1 %v4742_v21  ;;  %v1379_v20 = vld [vmem:[#allocation16 + $0x5b8] sm:$0xff]  ;;  %v4695_v21 = vcombine.low %v1383_v10, %v1387_v11 }
 0x3d1   :  { %v4688_v7 = vcombine.high %v1375_v19, %v1379_v20  ;;  %v1335_v54 = vld [vmem:[#allocation16 + $0x458] sm:$0xff] }
 0x3d2   :  { %2917 = vmatpush2.bf16.msra.mxu0 %v4613_v27  ;;  %v1367_v27 = vld [vmem:[#allocation16 + $0x558] sm:$0xff] }
 0x3d3   :  { %2958 = vmatpush2.bf16.msra.mxu1 %v4741_v6  ;;  %2918 = vmatprep.subr.bf16.mxu0 %v4606_v28  ;;  %v1371_v6 = vld [vmem:[#allocation16 + $0x578] sm:$0xff]  ;;  %v4559_v28 = vcombine.low %v1247_v14, %v1251_v15 }
 0x3d4   :  { %2959 = vmatprep.subr.bf16.mxu1 %v4734_v0  ;;  %v4687_v0 = vcombine.low %v1375_v19, %v1379_v20  ;;  %v4680_v1 = vcombine.high %v1367_v27, %v1371_v6  ;;  %v1339_v55 = vld [vmem:[#allocation16 + $0x478] sm:$0xff] }
 0x3d5   :  { %v1199_v8 = vld [vmem:[#allocation16 + $0x18] sm:$0xff] }
 0x3d6   :  { %2919 = vmatpush2.bf16.msra.mxu0 %v4605_v32  ;;  %v1359_v32 = vld [vmem:[#allocation16 + $0x518] sm:$0xff] }
 0x3d7   :  { %2960 = vmatpush2.bf16.msra.mxu1 %v4733_v33  ;;  %2920 = vmatprep.subr.bf16.mxu0 %v4598_v40  ;;  %v1363_v33 = vld [vmem:[#allocation16 + $0x538] sm:$0xff]  ;;  %v4551_v40 = vcombine.low %v1239_v23, %v1243_v26 }
 0x3d8   :  { %2961 = vmatprep.subr.bf16.mxu1 %v4726_v41  ;;  %v4679_v41 = vcombine.low %v1367_v27, %v1371_v6  ;;  %v1203_v9 = vld [vmem:[#allocation16 + $0x38] sm:$0xff] }
 0x3d9   :  { %v1327_v10 = vld [vmem:[#allocation16 + $0x418] sm:$0xff]  ;;  %v4511_v20 = vcombine.low %v1199_v8, %v1203_v9 }
 0x3da   :  { %2921 = vmatpush2.bf16.msra.mxu0 %v4597_v46  ;;  %v1355_v46 = vld [vmem:[#allocation16 + $0x4f8] sm:$0xff] }
 0x3db   :  { %2962 = vmatpush2.bf16.msra.mxu1 %v4725_v49  ;;  %2922 = vmatprep.subr.bf16.mxu0 %v4590_v50  ;;  %v4671_v49 = vcombine.low %v1359_v32, %v1363_v33  ;;  %v4536_v50 = vcombine.high %v1223_v43, %v1227_v44  ;;  %v1331_v11 = vld [vmem:[#allocation16 + $0x438] sm:$0xff] }
 0x3dc   :  { %2963 = vmatprep.subr.bf16.mxu1 %v4718_v39  ;;  %v4664_v39 = vcombine.high %v1351_v45, %v1355_v46  ;;  %v1319_v14 = vld [vmem:[#allocation16 + $0x3d8] sm:$0xff] }
 0x3dd   :  { %v1323_v15 = vld [vmem:[#allocation16 + $0x3f8] sm:$0xff] }
 0x3de   :  { %2923 = vmatpush2.bf16.msra.mxu0 %v4589_v56  ;;  %v4535_v56 = vcombine.low %v1223_v43, %v1227_v44  ;;  %v1451_v19 = vld [vmem:[#allocation16 + $0x7f8] sm:$0xff] }
 0x3df   :  { %2964 = vmatpush2.bf16.msra.mxu1 %v4717_v57  ;;  %2924 = vmatprep.subr.bf16.mxu0 %v4582_v58  ;;  %v4663_v57 = vcombine.low %v1351_v45, %v1355_v46  ;;  %v4528_v58 = vcombine.high %v1215_v51, %v1219_v52  ;;  %v1311_v26 = vld [vmem:[#allocation16 + $0x398] sm:$0xff] }
 0x3e0   :  { %2965 = vmatprep.subr.bf16.mxu1 %v4710_v60  ;;  %v4656_v60 = vcombine.high %v1343_v53, %v1347_v36  ;;  %v1439_v27 = vld [vmem:[#allocation16 + $0x798] sm:$0xff] }
 0x3e1   :  { %v1443_v6 = vld [vmem:[#allocation16 + $0x7b8] sm:$0xff] }
 0x3e2   :  { %2925 = vmatpush2.bf16.msra.mxu0 %v4581_v63  ;;  %v4527_v63 = vcombine.low %v1215_v51, %v1219_v52  ;;  %v1295_v43 = vld [vmem:[#allocation16 + $0x318] sm:$0xff] }
 0x3e3   :  { %2966 = vmatpush2.bf16.msra.mxu1 %v4709_v3  ;;  %2926 = vmatprep.subr.bf16.mxu0 %v4574_v4  ;;  %v4655_v3 = vcombine.low %v1343_v53, %v1347_v36  ;;  %v4520_v4 = vcombine.high %v1207_v61, %v1211_v62  ;;  %v1299_v44 = vld [vmem:[#allocation16 + $0x338] sm:$0xff] }
 0x3e4   :  { %2967 = vmatprep.subr.bf16.mxu1 %v4702_v5  ;;  %v4648_v5 = vcombine.high %v1335_v54, %v1339_v55  ;;  %v1423_v45 = vld [vmem:[#allocation16 + $0x718] sm:$0xff] }
 0x3e5   :  { %v1427_v46 = vld [vmem:[#allocation16 + $0x738] sm:$0xff] }
 0x3e6   :  { %2927 = vmatpush2.bf16.msra.mxu0 %v4573_v12  ;;  %v4519_v12 = vcombine.low %v1207_v61, %v1211_v62  ;;  %v1287_v51 = vld [vmem:[#allocation16 + $0x2d8] sm:$0xff] }
 0x3e7   :  { %2968 = vmatpush2.bf16.msra.mxu1 %v4701_v13  ;;  %2978 = vmatprep.subr.bf16.mxu0 %v4568_v59  ;;  %v4647_v13 = vcombine.low %v1335_v54, %v1339_v55  ;;  %v4512_v59 = vcombine.high %v1199_v8, %v1203_v9  ;;  %v1291_v52 = vld [vmem:[#allocation16 + $0x2f8] sm:$0xff] }
 0x3e8   :  { %3019 = vmatprep.subr.bf16.mxu1 %v4696_v2  ;;  %v4640_v2 = vcombine.high %v1327_v10, %v1331_v11  ;;  %v1415_v53 = vld [vmem:[#allocation16 + $0x6d8] sm:$0xff] }
 0x3e9   :  { %2929 = vmatmul.mubr.bf16.vlgmr.msra.gmra.mxu0 %v5755_v37  ;;  %v1419_v36 = vld [vmem:[#allocation16 + $0x6f8] sm:$0xff] }
 0x3ea   :  { %2970 = vmatmul.mubr.bf16.vlgmr.msra.gmra.mxu1 %v5757_v38  ;;  %2979 = vmatpush1.bf16.msra.mxu0 %v4567_v17  ;;  %v1447_v17 = vld [vmem:[#allocation16 + $0x7d8] sm:$0xff] }
 0x3eb   :  { %3010 = vmatprep.mubr.bf16.mxu0 %v5751_v34  ;;  %3020 = vmatpush1.bf16.msra.mxu1 %v4695_v21  ;;  %v4672_v34 = vcombine.high %v1359_v32, %v1363_v33  ;;  %v4639_v21 = vcombine.low %v1327_v10, %v1331_v11  ;;  %v4760_v23 = vcombine.high %v1447_v17, %v1451_v19  ;;  %v1431_v32 = vld [vmem:[#allocation16 + $0x758] sm:$0xff] }
 0x3ec   :  { %3051 = vmatprep.mubr.bf16.mxu1 %v5753_v35  ;;  %2980 = vmatprep.subr.bf16.mxu0 %v4560_v22  ;;  %v4543_v35 = vcombine.low %v1231_v30, %v1235_v31  ;;  %v4632_v22 = vcombine.high %v1319_v14, %v1323_v15  ;;  %v1303_v30 = vld [vmem:[#allocation16 + $0x358] sm:$0xff] }
 0x3ed   :  { %3021 = vmatprep.subr.bf16.mxu1 %v4688_v7  ;;  %v1315_v7 = vld [vmem:[#allocation16 + $0x3b8] sm:$0xff] }
 0x3ee   :  { %2981 = vmatpush1.bf16.msra.mxu0 %v4559_v28  ;;  %v4631_v28 = vcombine.low %v1319_v14, %v1323_v15  ;;  %v1307_v31 = vld [vmem:[#allocation16 + $0x378] sm:$0xff] }
 0x3ef   :  { %3022 = vmatpush1.bf16.msra.mxu1 %v4687_v0  ;;  %2982 = vmatprep.subr.bf16.mxu0 %v4552_v29  ;;  %v4759_v0 = vcombine.low %v1447_v17, %v1451_v19  ;;  %v4624_v29 = vcombine.high %v1311_v26, %v1315_v7  ;;  %v1435_v33 = vld [vmem:[#allocation16 + $0x778] sm:$0xff] }
 0x3f0   :  { %3023 = vmatprep.subr.bf16.mxu1 %v4680_v1  ;;  %v4752_v1 = vcombine.high %v1439_v27, %v1443_v6  ;;  %v1279_v61 = vld [vmem:[#allocation16 + $0x298] sm:$0xff] }
 0x3f1   :  { %v1283_v62 = vld [vmem:[#allocation16 + $0x2b8] sm:$0xff] }
 0x3f2   :  { %2983 = vmatpush1.bf16.msra.mxu0 %v4551_v40  ;;  %v4623_v40 = vcombine.low %v1311_v26, %v1315_v7  ;;  %v1407_v54 = vld [vmem:[#allocation16 + $0x698] sm:$0xff] }
 0x3f3   :  { %3024 = vmatpush1.bf16.msra.mxu1 %v4679_v41  ;;  %2984 = vmatprep.subr.bf16.mxu0 %v4544_v42  ;;  %v4751_v41 = vcombine.low %v1439_v27, %v1443_v6  ;;  %v4616_v42 = vcombine.high %v1303_v30, %v1307_v31  ;;  %v1411_v55 = vld [vmem:[#allocation16 + $0x6b8] sm:$0xff] }
 0x3f4   :  { %3025 = vmatprep.subr.bf16.mxu1 %v4672_v34  ;;  %v4744_v34 = vcombine.high %v1431_v32, %v1435_v33  ;;  %v1271_v8 = vld [vmem:[#allocation16 + $0x258] sm:$0xff] }
 0x3f5   :  { %v1275_v9 = vld [vmem:[#allocation16 + $0x278] sm:$0xff] }
 0x3f6   :  { %2985 = vmatpush1.bf16.msra.mxu0 %v4543_v35  ;;  %v4615_v35 = vcombine.low %v1303_v30, %v1307_v31  ;;  %v1399_v10 = vld [vmem:[#allocation16 + $0x658] sm:$0xff] }
 0x3f7   :  { %3026 = vmatpush1.bf16.msra.mxu1 %v4671_v49  ;;  %2986 = vmatprep.subr.bf16.mxu0 %v4536_v50  ;;  %v4743_v49 = vcombine.low %v1431_v32, %v1435_v33  ;;  %v4608_v50 = vcombine.high %v1295_v43, %v1299_v44  ;;  %v1403_v11 = vld [vmem:[#allocation16 + $0x678] sm:$0xff] }
 0x3f8   :  { %3027 = vmatprep.subr.bf16.mxu1 %v4664_v39  ;;  %v4736_v39 = vcombine.high %v1423_v45, %v1427_v46  ;;  %v1263_v14 = vld [vmem:[#allocation16 + $0x218] sm:$0xff] }
 0x3f9   :  { %v1267_v15 = vld [vmem:[#allocation16 + $0x238] sm:$0xff] }
 0x3fa   :  { %2987 = vmatpush1.bf16.msra.mxu0 %v4535_v56  ;;  %v4607_v56 = vcombine.low %v1295_v43, %v1299_v44  ;;  %v1391_v17 = vld [vmem:[#allocation16 + $0x618] sm:$0xff]  ;;  %v4575_v26 = vcombine.low %v1263_v14, %v1267_v15 }
 0x3fb   :  { %3028 = vmatpush1.bf16.msra.mxu1 %v4663_v57  ;;  %2988 = vmatprep.subr.bf16.mxu0 %v4528_v58  ;;  %v4735_v57 = vcombine.low %v1423_v45, %v1427_v46  ;;  %v4600_v58 = vcombine.high %v1287_v51, %v1291_v52  ;;  %v1395_v19 = vld [vmem:[#allocation16 + $0x638] sm:$0xff] }
 0x3fc   :  { %3029 = vmatprep.subr.bf16.mxu1 %v4656_v60  ;;  %v4728_v60 = vcombine.high %v1415_v53, %v1419_v36  ;;  %v4703_v7 = vcombine.low %v1391_v17, %v1395_v19 }
 0x3fe   :  { %2989 = vmatpush1.bf16.msra.mxu0 %v4527_v63  ;;  %v4599_v63 = vcombine.low %v1287_v51, %v1291_v52 }
 0x3ff   :  { %3030 = vmatpush1.bf16.msra.mxu1 %v4655_v3  ;;  %2990 = vmatprep.subr.bf16.mxu0 %v4520_v4  ;;  %v4727_v3 = vcombine.low %v1415_v53, %v1419_v36  ;;  %v4592_v4 = vcombine.high %v1279_v61, %v1283_v62 }
 0x400   :  { %3031 = vmatprep.subr.bf16.mxu1 %v4648_v5  ;;  %v4720_v5 = vcombine.high %v1407_v54, %v1411_v55 }
 0x402   :  { %2991 = vmatpush1.bf16.msra.mxu0 %v4519_v12  ;;  %v4591_v12 = vcombine.low %v1279_v61, %v1283_v62 }
 0x403   :  { %3032 = vmatpush1.bf16.msra.mxu1 %v4647_v13  ;;  %2992 = vmatprep.subr.bf16.mxu0 %v4512_v59  ;;  %v4719_v13 = vcombine.low %v1407_v54, %v1411_v55  ;;  %v4584_v59 = vcombine.high %v1271_v8, %v1275_v9 }
 0x404   :  { %3033 = vmatprep.subr.bf16.mxu1 %v4640_v2  ;;  %v4712_v2 = vcombine.high %v1399_v10, %v1403_v11 }
 0x406   :  { %2993 = vmatpush1.bf16.msra.mxu0 %v4511_v20  ;;  %v4583_v20 = vcombine.low %v1271_v8, %v1275_v9 }
 0x407   :  { %3034 = vmatpush1.bf16.msra.mxu1 %v4639_v21  ;;  %2994 = vmatprep.subr.bf16.mxu0 %v4632_v22  ;;  %v4711_v21 = vcombine.low %v1399_v10, %v1403_v11  ;;  %v4576_v22 = vcombine.high %v1263_v14, %v1267_v15 }
 0x408   :  { %3035 = vmatprep.subr.bf16.mxu1 %v4760_v23  ;;  %v4704_v23 = vcombine.high %v1391_v17, %v1395_v19 }
 0x40a   :  { %2995 = vmatpush2.bf16.msra.mxu0 %v4631_v28 }
 0x40b   :  { %3036 = vmatpush2.bf16.msra.mxu1 %v4759_v0  ;;  %2996 = vmatprep.subr.bf16.mxu0 %v4624_v29 }
 0x40c   :  { %3037 = vmatprep.subr.bf16.mxu1 %v4752_v1 }
 0x40e   :  { %2997 = vmatpush2.bf16.msra.mxu0 %v4623_v40 }
 0x40f   :  { %3038 = vmatpush2.bf16.msra.mxu1 %v4751_v41  ;;  %2998 = vmatprep.subr.bf16.mxu0 %v4616_v42 }
 0x410   :  { %3039 = vmatprep.subr.bf16.mxu1 %v4744_v34 }
 0x412   :  { %2999 = vmatpush2.bf16.msra.mxu0 %v4615_v35 }
 0x413   :  { %3040 = vmatpush2.bf16.msra.mxu1 %v4743_v49  ;;  %3000 = vmatprep.subr.bf16.mxu0 %v4608_v50 }
 0x414   :  { %3041 = vmatprep.subr.bf16.mxu1 %v4736_v39 }
 0x416   :  { %3001 = vmatpush2.bf16.msra.mxu0 %v4607_v56 }
 0x417   :  { %3042 = vmatpush2.bf16.msra.mxu1 %v4735_v57  ;;  %3002 = vmatprep.subr.bf16.mxu0 %v4600_v58 }
 0x418   :  { %3043 = vmatprep.subr.bf16.mxu1 %v4728_v60 }
 0x41a   :  { %3003 = vmatpush2.bf16.msra.mxu0 %v4599_v63 }
 0x41b   :  { %3044 = vmatpush2.bf16.msra.mxu1 %v4727_v3  ;;  %3004 = vmatprep.subr.bf16.mxu0 %v4592_v4 }
 0x41c   :  { %3045 = vmatprep.subr.bf16.mxu1 %v4720_v5 }
 0x41e   :  { %3005 = vmatpush2.bf16.msra.mxu0 %v4591_v12 }
 0x41f   :  { %3046 = vmatpush2.bf16.msra.mxu1 %v4719_v13  ;;  %3006 = vmatprep.subr.bf16.mxu0 %v4584_v59 }
 0x420   :  { %3047 = vmatprep.subr.bf16.mxu1 %v4712_v2 }
 0x422   :  { %3007 = vmatpush2.bf16.msra.mxu0 %v4583_v20 }
 0x423   :  { %3048 = vmatpush2.bf16.msra.mxu1 %v4711_v21  ;;  %3008 = vmatprep.subr.bf16.mxu0 %v4576_v22 }
 0x424   :  { %3049 = vmatprep.subr.bf16.mxu1 %v4704_v23 }
 0x426   :  { %3009 = vmatpush2.bf16.msra.mxu0 %v4575_v26 }
 0x427   :  { %3050 = vmatpush2.bf16.msra.mxu1 %v4703_v7 }
 0x429   :  { %3011 = vmatmul.mubr.bf16.vlgmr.msra.gmra.mxu0 %v5755_v37  ;;  %v2766_v27 = vpop.f32.mrf.mxu0  ;;  %v2807_v6 = vpop.f32.mrf.mxu1 }
 0x42a   :  { %3052 = vmatmul.mubr.bf16.vlgmr.msra.gmra.mxu1 %v5757_v38  ;;  %v5781_v28 = vadd.f32 %v2807_v6, %v2766_v27 }
 0x42b   :  { %v2768_v0 = vpop.f32.mrf.mxu0  ;;  %v2809_v29 = vpop.f32.mrf.mxu1 }
 0x42c   :  { %v3062_v1 = vrot.slane %v5781_v28, 4  ;;  %v3118_v30 = vmul.f32 %v5781_v28, %v5781_v28  ;;  %v5786_v31 = vadd.f32 %v2809_v29, %v2768_v0 }
 0x42d   :  { %v2770_v32 = vpop.f32.mrf.mxu0  ;;  %v2811_v33 = vpop.f32.mrf.mxu1 }
 0x42e   :  { %v3063_v40 = vadd.f32 %v3062_v1, %v5781_v28  ;;  %v3126_v37 = vrot.slane %v3118_v30, 4  ;;  %v3068_v41 = vrot.slane %v5786_v31, 4  ;;  %v3119_v38 = vmul.f32 %v5786_v31, %v5786_v31 }
 0x42f   :  { %v2771_v42 = vpop.f32.mrf.mxu0  ;;  %v2812_v34 = vpop.f32.mrf.mxu1 }
 0x430   :  { %v3064_v43 = vrot.slane %v3063_v40, 2  ;;  %v3127_v44 = vadd.f32 %v3126_v37, %v3118_v30  ;;  %v3069_v45 = vadd.f32 %v3068_v41, %v5786_v31  ;;  %v3132_v46 = vrot.slane %v3119_v38, 4 }
 0x432   :  { %v3065_v35 = vadd.f32 %v3064_v43, %v3063_v40  ;;  %v3128_v49 = vrot.slane %v3127_v44, 2  ;;  %v3070_v50 = vrot.slane %v3069_v45, 2  ;;  %v3133_v39 = vadd.f32 %v3132_v46, %v3119_v38 }
 0x434   :  { %v3066_v51 = vrot.slane %v3065_v35, 1  ;;  %v3129_v52 = vadd.f32 %v3128_v49, %v3127_v44  ;;  %v3071_v53 = vadd.f32 %v3070_v50, %v3069_v45  ;;  %v3134_v36 = vrot.slane %v3133_v39, 2 }
 0x436   :  { %v3067_v56 = vadd.f32 %v3066_v51, %v3065_v35  ;;  %v3130_v57 = vrot.slane %v3129_v52, 1  ;;  %v3072_v58 = vrot.slane %v3071_v53, 1  ;;  %v3135_v60 = vadd.f32 %v3134_v36, %v3133_v39  ;;  %v5044_v36 = vld [vmem:[#allocation18 + $0x70] ss:$8 sps:$4 sm:$0xff]  }
 0x438   :  { %v5793_v61 = vmul.f32 0.125, %v3067_v56  ;;  %v3131_v62 = vadd.f32 %v3130_v57, %v3129_v52  ;;  %v3073_v54 = vadd.f32 %v3072_v58, %v3071_v53  ;;  %v3136_v55 = vrot.slane %v3135_v60, 1  ;;  %v5046_v52 = vld [vmem:[#allocation18 + $0x74] ss:$8 sps:$4 sm:$0xff]   ;;  %v5047_v56 = vld [vmem:[#allocation18 + $0x170] ss:$8 sps:$4 sm:$0xff]  }
 0x439   :  { %v5049_v53 = vld [vmem:[#allocation18 + $0x174] ss:$8 sps:$4 sm:$0xff]   ;;  %4242 = vmatprep.subr.bf16.mxu0 %v5046_v52  ;;  %v5086_v52 = vld [vmem:[#allocation18] ss:$8 sps:$4 sm:$0xff]  }
 0x43a   :  { %v3174_v63 = vmul.f32 0.125, %v3131_v62  ;;  %v3182_v3 = vmul.f32 %v5793_v61, %v5793_v61  ;;  %v5797_v4 = vmul.f32 0.125, %v3073_v54  ;;  %v3137_v5 = vadd.f32 %v3136_v55, %v3135_v60  ;;  %4283 = vmatprep.subr.bf16.mxu1 %v5049_v53  ;;  %4243 = vmatpush1.bf16.msra.mxu0 %v5044_v36  ;;  %v5089_v53 = vld [vmem:[#allocation18 + $0x100] ss:$8 sps:$4 sm:$0xff]  }
 0x43b   :  { %4284 = vmatpush1.bf16.msra.mxu1 %v5047_v56  ;;  %v5094_v56 = vld [vmem:[#allocation18 + $0xf4] ss:$8 sps:$4 sm:$0xff]  }
 0x43c   :  { %v3190_v8 = vsub.f32 %v3174_v63, %v3182_v3  ;;  %v3175_v9 = vmul.f32 0.125, %v3137_v5  ;;  %v3183_v10 = vmul.f32 %v5797_v4, %v5797_v4  ;;  %v5052_v5 = vld [vmem:[#allocation18 + $0x64] ss:$8 sps:$4 sm:$0xff]  }
 0x43d   :  { %4244 = vmatprep.subr.bf16.mxu0 %v5052_v5  ;;  %v5104_v5 = vld [vmem:[#allocation18 + $0xd0] ss:$8 sps:$4 sm:$0xff]  }
 0x43e   :  { %v3198_v11 = vadd.f32 0.8, %v3190_v8  ;;  %v3191_v12 = vsub.f32 %v3175_v9, %v3183_v10  ;;  %v5055_v8 = vld [vmem:[#allocation18 + $0x164] ss:$8 sps:$4 sm:$0xff]   ;;  %v5050_v9 = vld [vmem:[#allocation18 + $0x60] ss:$8 sps:$4 sm:$0xff]  }
 0x43f   :  { %v5053_v10 = vld [vmem:[#allocation18 + $0x160] ss:$8 sps:$4 sm:$0xff]   ;;  %4285 = vmatprep.subr.bf16.mxu1 %v5055_v8  ;;  %4245 = vmatpush1.bf16.msra.mxu0 %v5050_v9  ;;  %v5107_v8 = vld [vmem:[#allocation18 + $0x1d0] ss:$8 sps:$4 sm:$0xff]   ;;  %v5112_v9 = vld [vmem:[#allocation18 + $0xc4] ss:$8 sps:$4 sm:$0xff]  }
 0x440   :  { %v3199_v13 = vadd.f32 0.8, %v3191_v12  ;;  %5248 = vrsqrt.f32 %v3198_v11  ;;  %4286 = vmatpush1.bf16.msra.mxu1 %v5053_v10  ;;  %v5115_v10 = vld [vmem:[#allocation18 + $0x1c4] ss:$8 sps:$4 sm:$0xff]  }
 0x442   :  { %5250 = vrsqrt.f32 %v3199_v13 }
 0x44d   :  { %v5801_v59 = vpop.eup %5248 }
 0x44f   :  { %v5803_v2 = vpop.eup %5250 }
 0x450   :  { %v3222_v14 = vcombine.low %v5801_v59, %v5803_v2  ;;  %v5095_v59 = vld [vmem:[#allocation18 + $0x1f0] ss:$8 sps:$4 sm:$0xff]   ;;  %v5100_v2 = vld [vmem:[#allocation18 + $0xe4] ss:$8 sps:$4 sm:$0xff]  }
 0x469   :  { %v2848_v15 = vpop.f32.mrf.mxu0  ;;  %v2889_v17 = vpop.f32.mrf.mxu1 }
 0x46a   :  { %v5807_v19 = vadd.f32 %v2889_v17, %v2848_v15 }
 0x46b   :  { %v2850_v20 = vpop.f32.mrf.mxu0  ;;  %v2891_v21 = vpop.f32.mrf.mxu1 }
 0x46c   :  { %v3074_v22 = vrot.slane %v5807_v19, 4  ;;  %v3120_v23 = vmul.f32 %v5807_v19, %v5807_v19  ;;  %v5812_v26 = vadd.f32 %v2891_v21, %v2850_v20  ;;  %v5058_v20 = vld [vmem:[#allocation18 + $0x54] ss:$8 sps:$4 sm:$0xff]  }
 0x46d   :  { %v2852_v7 = vpop.f32.mrf.mxu0  ;;  %v2893_v27 = vpop.f32.mrf.mxu1  ;;  %v5061_v21 = vld [vmem:[#allocation18 + $0x154] ss:$8 sps:$4 sm:$0xff]   ;;  %4246 = vmatprep.subr.bf16.mxu0 %v5058_v20  ;;  %v5119_v20 = vld [vmem:[#allocation18 + $0x1b0] ss:$8 sps:$4 sm:$0xff]  }
 0x46e   :  { %v3075_v6 = vadd.f32 %v3074_v22, %v5807_v19  ;;  %v3138_v0 = vrot.slane %v3120_v23, 4  ;;  %v3080_v29 = vrot.slane %v5812_v26, 4  ;;  %v3121_v1 = vmul.f32 %v5812_v26, %v5812_v26  ;;  %v5056_v22 = vld [vmem:[#allocation18 + $0x50] ss:$8 sps:$4 sm:$0xff]   ;;  %4287 = vmatprep.subr.bf16.mxu1 %v5061_v21  ;;  %v5064_v27 = vld [vmem:[#allocation18 + $0x44] ss:$8 sps:$4 sm:$0xff]  }
 0x46f   :  { %v2853_v30 = vpop.f32.mrf.mxu0  ;;  %v2894_v32 = vpop.f32.mrf.mxu1  ;;  %4247 = vmatpush1.bf16.msra.mxu0 %v5056_v22  ;;  %v5124_v21 = vld [vmem:[#allocation18 + $0xa4] ss:$8 sps:$4 sm:$0xff]  }
 0x470   :  { %v3076_v33 = vrot.slane %v3075_v6, 2  ;;  %v3139_v40 = vadd.f32 %v3138_v0, %v3120_v23  ;;  %v3081_v37 = vadd.f32 %v3080_v29, %v5812_v26  ;;  %v3144_v41 = vrot.slane %v3121_v1, 4  ;;  %v5059_v23 = vld [vmem:[#allocation18 + $0x150] ss:$8 sps:$4 sm:$0xff]   ;;  %v5062_v0 = vld [vmem:[#allocation18 + $0x40] ss:$8 sps:$4 sm:$0xff]   ;;  %4248 = vmatprep.subr.bf16.mxu0 %v5064_v27 }
 0x471   :  { %4288 = vmatpush1.bf16.msra.mxu1 %v5059_v23  ;;  %v5065_v29 = vld [vmem:[#allocation18 + $0x140] ss:$8 sps:$4 sm:$0xff]   ;;  %v5073_v30 = vld [vmem:[#allocation18 + $0x134] ss:$8 sps:$4 sm:$0xff]   ;;  %v5068_v32 = vld [vmem:[#allocation18 + $0x30] ss:$8 sps:$4 sm:$0xff]  }
 0x472   :  { %v3077_v38 = vadd.f32 %v3076_v33, %v3075_v6  ;;  %v3140_v42 = vrot.slane %v3139_v40, 2  ;;  %v3082_v34 = vrot.slane %v3081_v37, 2  ;;  %v3145_v43 = vadd.f32 %v3144_v41, %v3121_v1  ;;  %v5067_v6 = vld [vmem:[#allocation18 + $0x144] ss:$8 sps:$4 sm:$0xff]   ;;  %v5070_v1 = vld [vmem:[#allocation18 + $0x34] ss:$8 sps:$4 sm:$0xff]  }
 0x473   :  { %4289 = vmatprep.subr.bf16.mxu1 %v5067_v6  ;;  %4249 = vmatpush1.bf16.msra.mxu0 %v5062_v0  ;;  %v5071_v33 = vld [vmem:[#allocation18 + $0x130] ss:$8 sps:$4 sm:$0xff]   ;;  %v5074_v41 = vld [vmem:[#allocation18 + $0x20] ss:$8 sps:$4 sm:$0xff]   ;;  %v5127_v22 = vld [vmem:[#allocation18 + $0x1a4] ss:$8 sps:$4 sm:$0xff]  }
 0x474   :  { %v3078_v44 = vrot.slane %v3077_v38, 1  ;;  %v3141_v45 = vadd.f32 %v3140_v42, %v3139_v40  ;;  %v3083_v46 = vadd.f32 %v3082_v34, %v3081_v37  ;;  %v3146_v35 = vrot.slane %v3145_v43, 2  ;;  %4250 = vmatprep.subr.bf16.mxu0 %v5070_v1  ;;  %v5076_v40 = vld [vmem:[#allocation18 + $0x24] ss:$8 sps:$4 sm:$0xff]   ;;  %v5082_v34 = vld [vmem:[#allocation18 + $0x14] ss:$8 sps:$4 sm:$0xff]  }
 0x475   :  { %4290 = vmatpush1.bf16.msra.mxu1 %v5065_v29  ;;  %v5079_v37 = vld [vmem:[#allocation18 + $0x124] ss:$8 sps:$4 sm:$0xff]   ;;  %v5125_v27 = vld [vmem:[#allocation18 + $0x1a0] ss:$8 sps:$4 sm:$0xff]   ;;  %v5130_v0 = vld [vmem:[#allocation18 + $0x94] ss:$8 sps:$4 sm:$0xff]  }
 0x476   :  { %v3079_v49 = vadd.f32 %v3078_v44, %v3077_v38  ;;  %v3142_v50 = vrot.slane %v3141_v45, 1  ;;  %v3084_v39 = vrot.slane %v3083_v46, 1  ;;  %v3147_v51 = vadd.f32 %v3146_v35, %v3145_v43  ;;  %4291 = vmatprep.subr.bf16.mxu1 %v5073_v30  ;;  %v5077_v38 = vld [vmem:[#allocation18 + $0x120] ss:$8 sps:$4 sm:$0xff]   ;;  %v5085_v43 = vld [vmem:[#allocation18 + $0x114] ss:$8 sps:$4 sm:$0xff]  }
 0x477   :  { %4251 = vmatpush1.bf16.msra.mxu0 %v5068_v32  ;;  %v5133_v29 = vld [vmem:[#allocation18 + $0x194] ss:$8 sps:$4 sm:$0xff]  }
 0x478   :  { %v5819_v57 = vmul.f32 0.125, %v3079_v49  ;;  %v3143_v58 = vadd.f32 %v3142_v50, %v3141_v45  ;;  %v3085_v60 = vadd.f32 %v3084_v39, %v3083_v46  ;;  %v3148_v62 = vrot.slane %v3147_v51, 1  ;;  %4252 = vmatprep.subr.bf16.mxu0 %v5076_v40  ;;  %v5080_v45 = vld [vmem:[#allocation18 + $0x10] ss:$8 sps:$4 sm:$0xff]   ;;  %v5088_v39 = vld [vmem:[#allocation18 + $0x4] ss:$8 sps:$4 sm:$0xff]  }
 0x479   :  { %4292 = vmatpush1.bf16.msra.mxu1 %v5071_v33  ;;  %v5083_v46 = vld [vmem:[#allocation18 + $0x110] ss:$8 sps:$4 sm:$0xff]   ;;  %v5831_v49 = vrot.slane %v3222_v14, %v5669_v18  ;;  %v5103_v14 = vld [vmem:[#allocation18 + $0x1e4] ss:$8 sps:$4 sm:$0xff]  }
 0x47a   :  { %v3176_v54 = vmul.f32 0.125, %v3143_v58  ;;  %v3184_v55 = vmul.f32 %v5819_v57, %v5819_v57  ;;  %v5823_v63 = vmul.f32 0.125, %v3085_v60  ;;  %v3149_v3 = vadd.f32 %v3148_v62, %v3147_v51  ;;  %4293 = vmatprep.subr.bf16.mxu1 %v5079_v37  ;;  %v5091_v51 = vld [vmem:[#allocation18 + $0x104] ss:$8 sps:$4 sm:$0xff]   ;;  %v5097_v58 = vld [vmem:[#allocation18 + $0x1f4] ss:$8 sps:$4 sm:$0xff]  }
 0x47b   :  { %4253 = vmatpush1.bf16.msra.mxu0 %v5074_v41  ;;  %v5092_v60 = vld [vmem:[#allocation18 + $0xf0] ss:$8 sps:$4 sm:$0xff]   ;;  %v5098_v62 = vld [vmem:[#allocation18 + $0xe0] ss:$8 sps:$4 sm:$0xff]  }
 0x47c   :  { %v3192_v11 = vsub.f32 %v3176_v54, %v3184_v55  ;;  %v3177_v12 = vmul.f32 0.125, %v3149_v3  ;;  %v3185_v13 = vmul.f32 %v5823_v63, %v5823_v63  ;;  %4254 = vmatprep.subr.bf16.mxu0 %v5082_v34  ;;  %v5101_v54 = vld [vmem:[#allocation18 + $0x1e0] ss:$8 sps:$4 sm:$0xff]   ;;  %v5106_v55 = vld [vmem:[#allocation18 + $0xd4] ss:$8 sps:$4 sm:$0xff]  }
 0x47d   :  { %4294 = vmatpush1.bf16.msra.mxu1 %v5077_v38  ;;  %v5109_v3 = vld [vmem:[#allocation18 + $0x1d4] ss:$8 sps:$4 sm:$0xff]   ;;  %v5128_v37 = vld [vmem:[#allocation18 + $0x90] ss:$8 sps:$4 sm:$0xff]   ;;  %v5139_v34 = vld [vmem:[#allocation18 + $0x184] ss:$8 sps:$4 sm:$0xff]  }
 0x47e   :  { %v3200_v15 = vadd.f32 0.8, %v3192_v11  ;;  %v3193_v17 = vsub.f32 %v3177_v12, %v3185_v13  ;;  %4295 = vmatprep.subr.bf16.mxu1 %v5085_v43  ;;  %v5110_v11 = vld [vmem:[#allocation18 + $0xc0] ss:$8 sps:$4 sm:$0xff]   ;;  %v5118_v13 = vld [vmem:[#allocation18 + $0xb4] ss:$8 sps:$4 sm:$0xff]  }
 0x47f   :  { %4255 = vmatpush1.bf16.msra.mxu0 %v5080_v45  ;;  %v5113_v12 = vld [vmem:[#allocation18 + $0x1c0] ss:$8 sps:$4 sm:$0xff]   ;;  %v5131_v41 = vld [vmem:[#allocation18 + $0x190] ss:$8 sps:$4 sm:$0xff]  }
 0x480   :  { %v3201_v7 = vadd.f32 0.8, %v3193_v17  ;;  %5252 = vrsqrt.f32 %v3200_v15  ;;  %4256 = vmatprep.subr.bf16.mxu0 %v5088_v39  ;;  %v5121_v15 = vld [vmem:[#allocation18 + $0x1b4] ss:$8 sps:$4 sm:$0xff]   ;;  %v5116_v17 = vld [vmem:[#allocation18 + $0xb0] ss:$8 sps:$4 sm:$0xff]  }
 0x481   :  { %4296 = vmatpush1.bf16.msra.mxu1 %v5083_v46  ;;  %v5134_v45 = vld [vmem:[#allocation18 + $0x80] ss:$8 sps:$4 sm:$0xff]   ;;  %v5145_v39 = vld [vmem:[#allocation18 + $0x374] ss:$8 sps:$4 sm:$0xff]  }
 0x482   :  { %5254 = vrsqrt.f32 %v3201_v7  ;;  %4297 = vmatprep.subr.bf16.mxu1 %v5091_v51  ;;  %v5122_v7 = vld [vmem:[#allocation18 + $0xa0] ss:$8 sps:$4 sm:$0xff]  }
 0x483   :  { %4257 = vmatpush1.bf16.msra.mxu0 %v5086_v52  ;;  %v5137_v46 = vld [vmem:[#allocation18 + $0x180] ss:$8 sps:$4 sm:$0xff]  }
 0x484   :  { %4258 = vmatprep.subr.bf16.mxu0 %v5094_v56 }
 0x485   :  { %4298 = vmatpush1.bf16.msra.mxu1 %v5089_v53 }
 0x486   :  { %4299 = vmatprep.subr.bf16.mxu1 %v5097_v58 }
 0x487   :  { %4259 = vmatpush2.bf16.msra.mxu0 %v5092_v60 }
 0x488   :  { %4260 = vmatprep.subr.bf16.mxu0 %v5100_v2 }
 0x489   :  { %4300 = vmatpush2.bf16.msra.mxu1 %v5095_v59 }
 0x48a   :  { %4301 = vmatprep.subr.bf16.mxu1 %v5103_v14 }
 0x48b   :  { %4261 = vmatpush2.bf16.msra.mxu0 %v5098_v62 }
 0x48c   :  { %4262 = vmatprep.subr.bf16.mxu0 %v5106_v55 }
 0x48d   :  { %v5253_v42 = vpop.eup %5252  ;;  %4302 = vmatpush2.bf16.msra.mxu1 %v5101_v54 }
 0x48e   :  { %4303 = vmatprep.subr.bf16.mxu1 %v5109_v3 }
 0x48f   :  { %v5255_v44 = vpop.eup %5254  ;;  %4263 = vmatpush2.bf16.msra.mxu0 %v5104_v5 }
 0x490   :  { %v3223_v35 = vcombine.low %v5253_v42, %v5255_v44  ;;  %4264 = vmatprep.subr.bf16.mxu0 %v5112_v9  ;;  %v5136_v42 = vld [vmem:[#allocation18 + $0x84] ss:$8 sps:$4 sm:$0xff]  }
 0x491   :  { %4304 = vmatpush2.bf16.msra.mxu1 %v5107_v8 }
 0x492   :  { %v5834_v50 = vrot.slane %v3223_v35, %v5669_v18  ;;  %4305 = vmatprep.subr.bf16.mxu1 %v5115_v10  ;;  %v5142_v35 = vld [vmem:[#allocation18 + $0x274] ss:$8 sps:$4 sm:$0xff]  }
 0x493   :  { %4265 = vmatpush2.bf16.msra.mxu0 %v5110_v11 }
 0x494   :  { %v3254_v36 = vcombine.low %v5831_v49, %v5834_v50  ;;  %4266 = vmatprep.subr.bf16.mxu0 %v5118_v13 }
 0x495   :  { %4306 = vmatpush2.bf16.msra.mxu1 %v5113_v12 }
 0x496   :  { %4307 = vmatprep.subr.bf16.mxu1 %v5121_v15 }
 0x497   :  { %4267 = vmatpush2.bf16.msra.mxu0 %v5116_v17 }
 0x498   :  { %4268 = vmatprep.subr.bf16.mxu0 %v5124_v21 }
 0x499   :  { %4308 = vmatpush2.bf16.msra.mxu1 %v5119_v20 }
 0x49a   :  { %4309 = vmatprep.subr.bf16.mxu1 %v5127_v22 }
 0x49b   :  { %4269 = vmatpush2.bf16.msra.mxu0 %v5122_v7 }
 0x49c   :  { %4270 = vmatprep.subr.bf16.mxu0 %v5130_v0 }
 0x49d   :  { %4310 = vmatpush2.bf16.msra.mxu1 %v5125_v27 }
 0x49e   :  { %4311 = vmatprep.subr.bf16.mxu1 %v5133_v29 }
 0x49f   :  { %4271 = vmatpush2.bf16.msra.mxu0 %v5128_v37 }
 0x4a0   :  { %4272 = vmatprep.subr.bf16.mxu0 %v5136_v42 }
 0x4a1   :  { %4312 = vmatpush2.bf16.msra.mxu1 %v5131_v41 }
 0x4a2   :  { %4313 = vmatprep.subr.bf16.mxu1 %v5139_v34 }
 0x4a3   :  { %4273 = vmatpush2.bf16.msra.mxu0 %v5134_v45 }
 0x4a4   :  { %4324 = vmatprep.subr.bf16.mxu0 %v5142_v35 }
 0x4a5   :  { %4314 = vmatpush2.bf16.msra.mxu1 %v5137_v46 }
 0x4a6   :  { %4365 = vmatprep.subr.bf16.mxu1 %v5145_v39 }
 0x4a9   :  { %v2930_v23 = vpop.f32.mrf.mxu0 }
 0x4aa   :  { %v2971_v6 = vpop.f32.mrf.mxu1 }
 0x4ab   :  { %v5838_v1 = vadd.f32 %v2971_v6, %v2930_v23  ;;  %v2932_v30 = vpop.f32.mrf.mxu0 }
 0x4ac   :  { %v2973_v32 = vpop.f32.mrf.mxu1 }
 0x4ad   :  { %v5840_v33 = vadd.f32 %v2973_v32, %v2932_v30  ;;  %v2934_v40 = vpop.f32.mrf.mxu0  ;;  %v3086_v53 = vrot.slane %v5838_v1, 4  ;;  %v3122_v56 = vmul.f32 %v5838_v1, %v5838_v1 }
 0x4ae   :  { %v2975_v38 = vpop.f32.mrf.mxu1 }
 0x4af   :  { %v2935_v43 = vpop.f32.mrf.mxu0  ;;  %v3092_v51 = vrot.slane %v5840_v33, 4  ;;  %v3123_v52 = vmul.f32 %v5840_v33, %v5840_v33  ;;  %v3087_v59 = vadd.f32 %v3086_v53, %v5838_v1  ;;  %v3150_v2 = vrot.slane %v3122_v56, 4 }
 0x4b0   :  { %v2976_v44 = vpop.f32.mrf.mxu1 }
 0x4b1   :  { %v3093_v58 = vadd.f32 %v3092_v51, %v5840_v33  ;;  %v3156_v60 = vrot.slane %v3123_v52, 4  ;;  %v3088_v54 = vrot.slane %v3087_v59, 2  ;;  %v3151_v55 = vadd.f32 %v3150_v2, %v3122_v56 }
 0x4b3   :  { %v3094_v14 = vrot.slane %v3093_v58, 2  ;;  %v3157_v62 = vadd.f32 %v3156_v60, %v3123_v52  ;;  %v3089_v8 = vadd.f32 %v3088_v54, %v3087_v59  ;;  %v3152_v9 = vrot.slane %v3151_v55, 2 }
 0x4b5   :  { %v3095_v3 = vadd.f32 %v3094_v14, %v3093_v58  ;;  %v3158_v5 = vrot.slane %v3157_v62, 2  ;;  %v3090_v12 = vrot.slane %v3089_v8, 1  ;;  %v3153_v13 = vadd.f32 %v3152_v9, %v3151_v55 }
 0x4b7   :  { %v3096_v10 = vrot.slane %v3095_v3, 1  ;;  %v3159_v11 = vadd.f32 %v3158_v5, %v3157_v62  ;;  %v3091_v7 = vadd.f32 %v3090_v12, %v3089_v8  ;;  %v3154_v27 = vrot.slane %v3153_v13, 1 }
 0x4b9   :  { %v3097_v17 = vadd.f32 %v3096_v10, %v3095_v3  ;;  %v3160_v20 = vrot.slane %v3159_v11, 1  ;;  %v5863_v45 = vmul.f32 0.125, %v3091_v7  ;;  %v3155_v46 = vadd.f32 %v3154_v27, %v3153_v13 }
 0x4bb   :  { %v5857_v40 = vmul.f32 0.125, %v3097_v17  ;;  %v3161_v37 = vadd.f32 %v3160_v20, %v3159_v11  ;;  %v3178_v62 = vmul.f32 0.125, %v3155_v46  ;;  %v3186_v54 = vmul.f32 %v5863_v45, %v5863_v45 }
 0x4bd   :  { %v3179_v56 = vmul.f32 0.125, %v3161_v37  ;;  %v3187_v58 = vmul.f32 %v5857_v40, %v5857_v40 }
 0x4bf   :  { %v3195_v9 = vsub.f32 %v3179_v56, %v3187_v58 }
 0x4c1   :  { %v3203_v7 = vadd.f32 0.8, %v3195_v9 }
 0x4c3   :  { %5256 = vrsqrt.f32 %v3203_v7 }
 0x4e9   :  { %v3012_v15 = vpop.f32.mrf.mxu0 }
 0x4ea   :  { %v3053_v21 = vpop.f32.mrf.mxu1 }
 0x4eb   :  { %v5850_v22 = vadd.f32 %v3053_v21, %v3012_v15  ;;  %v3014_v23 = vpop.f32.mrf.mxu0  ;;  %v3194_v15 = vsub.f32 %v3178_v62, %v3186_v54  ;;  %v3296_v54 = vsub.s32 5, %v5666_v16 }
 0x4ec   :  { %v3055_v6 = vpop.f32.mrf.mxu1 }
 0x4ed   :  { %v3098_v0 = vrot.slane %v5850_v22, 4  ;;  %v3124_v29 = vmul.f32 %v5850_v22, %v5850_v22  ;;  %v5855_v30 = vadd.f32 %v3055_v6, %v3014_v23  ;;  %v3016_v32 = vpop.f32.mrf.mxu0 }
 0x4ee   :  { %v3057_v41 = vpop.f32.mrf.mxu1  ;;  %v3202_v32 = vadd.f32 0.8, %v3194_v15 }
 0x4ef   :  { %v3099_v38 = vadd.f32 %v3098_v0, %v5850_v22  ;;  %v3162_v42 = vrot.slane %v3124_v29, 4  ;;  %v3104_v34 = vrot.slane %v5855_v30, 4  ;;  %v3125_v43 = vmul.f32 %v5855_v30, %v5855_v30  ;;  %v3017_v44 = vpop.f32.mrf.mxu0 }
 0x4f0   :  { %v3058_v35 = vpop.f32.mrf.mxu1  ;;  %5258 = vrsqrt.f32 %v3202_v32  ;;  %v5257_v44 = vpop.eup %5256 }
 0x4f1   :  { %v3100_v39 = vrot.slane %v3099_v38, 2  ;;  %v3163_v51 = vadd.f32 %v3162_v42, %v3124_v29  ;;  %v3105_v52 = vadd.f32 %v3104_v34, %v5855_v30  ;;  %v3168_v53 = vrot.slane %v3125_v43, 4 }
 0x4f3   :  { %v3101_v60 = vadd.f32 %v3100_v39, %v3099_v38  ;;  %v3164_v59 = vrot.slane %v3163_v51, 2  ;;  %v3106_v2 = vrot.slane %v3105_v52, 2  ;;  %v3169_v14 = vadd.f32 %v3168_v53, %v3125_v43 }
 0x4f5   :  { %v3102_v55 = vrot.slane %v3101_v60, 1  ;;  %v3165_v3 = vadd.f32 %v3164_v59, %v3163_v51  ;;  %v3107_v5 = vadd.f32 %v3106_v2, %v3105_v52  ;;  %v3170_v8 = vrot.slane %v3169_v14, 2  ;;  %v3060_v2 = vld [vmem:[%s5946_s12] sm:$0xff] }
 0x4f7   :  { %v3103_v10 = vadd.f32 %v3102_v55, %v3101_v60  ;;  %v3166_v11 = vrot.slane %v3165_v3, 1  ;;  %v3108_v12 = vrot.slane %v3107_v5, 1  ;;  %v3171_v13 = vadd.f32 %v3170_v8, %v3169_v14 }
 0x4f8   :  { %v3262_v60 = vrot.slane %v3254_v36, %v5669_v18  ;;  %v3292_v14 = vsub.s32 4, %v5666_v16  ;;  %v3300_v55 = vsub.s32 6, %v5666_v16 }
 0x4f9   :  { %v3116_v17 = vmul.f32 0.125, %v3103_v10  ;;  %v3167_v20 = vadd.f32 %v3166_v11, %v3165_v3  ;;  %v3109_v21 = vadd.f32 %v3108_v12, %v3107_v5  ;;  %v3172_v23 = vrot.slane %v3171_v13, 1 }
 0x4fa   :  { %v3304_v3 = vsub.s32 7, %v5666_v16 }
 0x4fb   :  { %v3180_v27 = vmul.f32 0.125, %v3167_v20  ;;  %v3188_v6 = vmul.f32 %v3116_v17, %v3116_v17  ;;  %v3117_v0 = vmul.f32 0.125, %v3109_v21  ;;  %v3173_v29 = vadd.f32 %v3172_v23, %v3171_v13 }
 0x4fd   :  { %v3196_v37 = vsub.f32 %v3180_v27, %v3188_v6  ;;  %v3181_v41 = vmul.f32 0.125, %v3173_v29  ;;  %v3189_v38 = vmul.f32 %v3117_v0, %v3117_v0  ;;  %v5259_v46 = vpop.eup %5258 }
 0x4fe   :  { %v3224_v39 = vcombine.low %v5259_v46, %v5257_v44 }
 0x4ff   :  { %v3204_v42 = vadd.f32 0.8, %v3196_v37  ;;  %v3197_v34 = vsub.f32 %v3181_v41, %v3189_v38 }
 0x500   :  { %v3246_v53 = vrot.slane %v3224_v39, %v5669_v18 }
 0x501   :  { %v3205_v43 = vadd.f32 0.8, %v3197_v34  ;;  %5260 = vrsqrt.f32 %v3204_v42 }
 0x503   :  { %5262 = vrsqrt.f32 %v3205_v43 }
 0x50e   :  { %v5261_v35 = vpop.eup %5260 }
 0x510   :  { %v5263_v51 = vpop.eup %5262 }
 0x511   :  { %v3225_v52 = vcombine.low %v5261_v35, %v5263_v51 }
 0x513   :  { %v3253_v56 = vrot.slane %v3225_v52, %v5669_v18 }
 0x515   :  { %v3255_v58 = vcombine.low %v3246_v53, %v3253_v56 }
 0x517   :  { %v3269_v59 = vrot.slane %v3255_v58, %v5669_v18 }
 0x519   :  { %v3270_v62 = vcombine.low %v3262_v60, %v3269_v59 }
 0x51b   :  { %v3272_v5 = vmul.f32 %v3270_v62, %v3060_v2 }
 0x51d   :  { %v3293_v8 = vrot.slane %v3272_v5, %v3292_v14  ;;  %v3297_v9 = vrot.slane %v3272_v5, %v3296_v54  ;;  %v3301_v49 = vrot.slane %v3272_v5, %v3300_v55  ;;  %v3305_v50 = vrot.slane %v3272_v5, %v3304_v3 }
 0x51e   :  { %v3277_v36 = vrot.slane %v3272_v5, %v5674_v24  ;;  %v3281_v10 = vrot.slane %v3272_v5, %v5677_v25  ;;  %v3285_v11 = vrot.slane %v3272_v5, %v5731_v47  ;;  %v3289_v12 = vrot.slane %v3272_v5, %v5734_v48 }
 0x51f   :  { %v3318_v13 = vmul.f32 %v3293_v8, %v5863_v45  ;;  %v3319_v15 = vmul.f32 %v3297_v9, %v5857_v40  ;;  %v3320_v20 = vmul.f32 %v3301_v49, %v3116_v17  ;;  %v3321_v21 = vmul.f32 %v3305_v50, %v3117_v0 }
 0x520   :  { %v3314_v16 = vmul.f32 %v3277_v36, %v5793_v61  ;;  %v3315_v23 = vmul.f32 %v3281_v10, %v5797_v4  ;;  %v3316_v7 = vmul.f32 %v3285_v11, %v5819_v57  ;;  %v3317_v27 = vmul.f32 %v3289_v12, %v5823_v63 }
 0x521   :  { %v3332_v6 = vcombine.low %v3318_v13, %v3319_v15  ;;  %v3333_v29 = vcombine.low %v3320_v20, %v3321_v21  ;;  %v3382_v32 = vmul.f32 %v3281_v10, %v5786_v31  ;;  %v3384_v37 = vmul.f32 %v3289_v12, %v5812_v26  ;;  %v5140_v12 = vld [vmem:[#allocation18 + $0x270] ss:$8 sps:$4 sm:$0xff]   ;;  %v5148_v21 = vld [vmem:[#allocation18 + $0x264] ss:$8 sps:$4 sm:$0xff]  }
 0x522   :  { %v3330_v41 = vcombine.low %v3314_v16, %v3315_v23  ;;  %v3331_v45 = vcombine.low %v3316_v7, %v3317_v27  ;;  %v3381_v40 = vmul.f32 %v3277_v36, %v5781_v28  ;;  %v3383_v17 = vmul.f32 %v3285_v11, %v5807_v19  ;;  %v3061_v19 = vld [vmem:[%s5947_s13] sm:$0xff]  ;;  %v5143_v13 = vld [vmem:[#allocation18 + $0x370] ss:$8 sps:$4 sm:$0xff]  }
 0x523   :  { %v3354_v61 = vrot.slane %v3332_v6, %v5669_v18  ;;  %v3361_v4 = vrot.slane %v3333_v29, %v5669_v18  ;;  %v3388_v57 = vmul.f32 %v3305_v50, %v5855_v30  ;;  %v3387_v31 = vmul.f32 %v3301_v49, %v5850_v22  ;;  %v5151_v16 = vld [vmem:[#allocation18 + $0x364] ss:$8 sps:$4 sm:$0xff]   ;;  %v5146_v27 = vld [vmem:[#allocation18 + $0x260] ss:$8 sps:$4 sm:$0xff]   ;;  %v5154_v29 = vld [vmem:[#allocation18 + $0x254] ss:$8 sps:$4 sm:$0xff]  }
 0x524   :  { %v3340_v63 = vrot.slane %v3330_v41, %v5669_v18  ;;  %v3347_v0 = vrot.slane %v3331_v45, %v5669_v18  ;;  %v3386_v30 = vmul.f32 %v3297_v9, %v5840_v33  ;;  %v3385_v44 = vmul.f32 %v3293_v8, %v5838_v1  ;;  %v5149_v6 = vld [vmem:[#allocation18 + $0x360] ss:$8 sps:$4 sm:$0xff]   ;;  %v5155_v41 = vld [vmem:[#allocation18 + $0x350] ss:$8 sps:$4 sm:$0xff]   ;;  %v5160_v45 = vld [vmem:[#allocation18 + $0x244] ss:$8 sps:$4 sm:$0xff]  }
 0x525   :  { %v3363_v38 = vcombine.low %v3354_v61, %v3361_v4  ;;  %v5161_v61 = vld [vmem:[#allocation18 + $0x340] ss:$8 sps:$4 sm:$0xff]   ;;  %v5166_v4 = vld [vmem:[#allocation18 + $0x234] ss:$8 sps:$4 sm:$0xff]  }
 0x526   :  { %v3362_v26 = vcombine.low %v3340_v63, %v3347_v0  ;;  %v5164_v63 = vld [vmem:[#allocation18 + $0x230] ss:$8 sps:$4 sm:$0xff]  }
 0x527   :  { %v3377_v42 = vrot.slane %v3363_v38, %v5669_v18  ;;  %v5167_v0 = vld [vmem:[#allocation18 + $0x330] ss:$8 sps:$4 sm:$0xff]   ;;  %v5175_v38 = vld [vmem:[#allocation18 + $0x324] ss:$8 sps:$4 sm:$0xff]  }
 0x528   :  { %v3370_v28 = vrot.slane %v3362_v26, %v5669_v18  ;;  %v5170_v26 = vld [vmem:[#allocation18 + $0x220] ss:$8 sps:$4 sm:$0xff]  }
 0x52a   :  { %v3378_v34 = vcombine.low %v3370_v28, %v3377_v42  ;;  %v5173_v42 = vld [vmem:[#allocation18 + $0x320] ss:$8 sps:$4 sm:$0xff]   ;;  %v5178_v28 = vld [vmem:[#allocation18 + $0x214] ss:$8 sps:$4 sm:$0xff]  }
 0x52c   :  { %v3380_v43 = vsub.f32 %v3061_v19, %v3378_v34  ;;  %v5181_v19 = vld [vmem:[#allocation18 + $0x314] ss:$8 sps:$4 sm:$0xff]   ;;  %v5176_v34 = vld [vmem:[#allocation18 + $0x210] ss:$8 sps:$4 sm:$0xff]  }
 0x52e   :  { %v3397_v46 = vrot.slane %v3380_v43, %v5677_v25  ;;  %v3405_v22 = vrot.slane %v3380_v43, %v5734_v48  ;;  %v3393_v35 = vrot.slane %v3380_v43, %v5674_v24  ;;  %v3401_v39 = vrot.slane %v3380_v43, %v5731_v47 }
 0x52f   :  { %v3413_v51 = vrot.slane %v3380_v43, %v3296_v54  ;;  %v3421_v18 = vrot.slane %v3380_v43, %v3304_v3  ;;  %v3409_v52 = vrot.slane %v3380_v43, %v3292_v14  ;;  %v3417_v53 = vrot.slane %v3380_v43, %v3300_v55  ;;  %v5179_v43 = vld [vmem:[#allocation18 + $0x310] ss:$8 sps:$4 sm:$0xff]  }
 0x530   :  { %v3431_v56 = vadd.f32 %v3397_v46, %v3382_v32  ;;  %v3433_v58 = vadd.f32 %v3405_v22, %v3384_v37  ;;  %v3430_v60 = vadd.f32 %v3393_v35, %v3381_v40  ;;  %v3432_v59 = vadd.f32 %v3401_v39, %v3383_v17  ;;  %v5157_v32 = vld [vmem:[#allocation18 + $0x354] ss:$8 sps:$4 sm:$0xff]   ;;  %v5152_v37 = vld [vmem:[#allocation18 + $0x250] ss:$8 sps:$4 sm:$0xff]   ;;  %v5163_v40 = vld [vmem:[#allocation18 + $0x344] ss:$8 sps:$4 sm:$0xff]  }
 0x531   :  { %v3435_v2 = vadd.f32 %v3413_v51, %v3386_v30  ;;  %v3437_v33 = vadd.f32 %v3421_v18, %v3388_v57  ;;  %v5915_v62 = vadd.f32 %v3409_v52, %v3385_v44  ;;  %v5917_v1 = vadd.f32 %v3417_v53, %v3387_v31  ;;  %v5158_v17 = vld [vmem:[#allocation18 + $0x240] ss:$8 sps:$4 sm:$0xff]   ;;  %v5169_v57 = vld [vmem:[#allocation18 + $0x334] ss:$8 sps:$4 sm:$0xff]   ;;  %v5172_v31 = vld [vmem:[#allocation18 + $0x224] ss:$8 sps:$4 sm:$0xff]  }
 0x532   :  { %v3439_v5 = vmul.f32 0.2, %v3431_v56  ;;  %v3441_v48 = vmul.f32 0.2, %v3433_v58  ;;  %v3438_v8 = vmul.f32 0.2, %v3430_v60 }
 0x533   :  { %v3440_v9 = vmul.f32 0.2, %v3432_v59  ;;  %v3443_v49 = vmul.f32 0.2, %v3435_v2  ;;  %v3445_v47 = vmul.f32 0.2, %v3437_v33 }
 0x534   :  { %v3447_v54 = vmax.f32 %v3431_v56, %v3439_v5  ;;  %v3449_v3 = vmax.f32 %v3433_v58, %v3441_v48  ;;  %v3446_v14 = vmax.f32 %v3430_v60, %v3438_v8  ;;  %v5184_v30 = vld [vmem:[#allocation18 + $0x204] ss:$8 sps:$4 sm:$0xff]   ;;  %v5182_v46 = vld [vmem:[#allocation18 + $0x200] ss:$8 sps:$4 sm:$0xff]   ;;  %v5190_v35 = vld [vmem:[#allocation18 + $0x2f4] ss:$8 sps:$4 sm:$0xff]  }
 0x535   :  { %v3448_v55 = vmax.f32 %v3432_v59, %v3440_v9  ;;  %v3451_v50 = vmax.f32 %v3435_v2, %v3443_v49  ;;  %v3453_v36 = vmax.f32 %v3437_v33, %v3445_v47  ;;  %v5187_v44 = vld [vmem:[#allocation18 + $0x304] ss:$8 sps:$4 sm:$0xff]   ;;  %v5185_v22 = vld [vmem:[#allocation18 + $0x300] ss:$8 sps:$4 sm:$0xff]   ;;  %v5193_v39 = vld [vmem:[#allocation18 + $0x3f4] ss:$8 sps:$4 sm:$0xff]  }
 0x536   :  { %v3455_v10 = vpack.c.bf16 %v3447_v54, %v3447_v54  ;;  %v3457_v11 = vpack.c.bf16 %v3449_v3, %v3449_v3  ;;  %v3454_v15 = vpack.c.bf16 %v3446_v14, %v3446_v14  ;;  %v5188_v51 = vld [vmem:[#allocation18 + $0x2f0] ss:$8 sps:$4 sm:$0xff]   ;;  %v5196_v52 = vld [vmem:[#allocation18 + $0x2e4] ss:$8 sps:$4 sm:$0xff]   ;;  %v5194_v56 = vld [vmem:[#allocation18 + $0x2e0] ss:$8 sps:$4 sm:$0xff]  }
 0x537   :  { %v3456_v20 = vpack.c.bf16 %v3448_v55, %v3448_v55  ;;  %v3459_v23 = vpack.c.bf16 %v3451_v50, %v3451_v50  ;;  %v3461_v7 = vpack.c.bf16 %v3453_v36, %v3453_v36  ;;  %v5191_v18 = vld [vmem:[#allocation18 + $0x3f0] ss:$8 sps:$4 sm:$0xff]   ;;  %v5199_v53 = vld [vmem:[#allocation18 + $0x3e4] ss:$8 sps:$4 sm:$0xff]   ;;  %v5197_v58 = vld [vmem:[#allocation18 + $0x3e0] ss:$8 sps:$4 sm:$0xff]  }
 0x538   :  { %4274 = vmatprep.mubr.bf16.mxu0 %v3455_v10  ;;  %4315 = vmatprep.mubr.bf16.mxu1 %v3457_v11  ;;  %v5202_v60 = vld [vmem:[#allocation18 + $0x2d4] ss:$8 sps:$4 sm:$0xff]   ;;  %v5200_v2 = vld [vmem:[#allocation18 + $0x2d0] ss:$8 sps:$4 sm:$0xff]   ;;  %v5208_v5 = vld [vmem:[#allocation18 + $0x2c4] ss:$8 sps:$4 sm:$0xff]  }
 0x539   :  { %4275 = vmatmul.mubr.bf16.vlgmr.msra.gmra.mxu0 %v3454_v15  ;;  %4316 = vmatmul.mubr.bf16.vlgmr.msra.gmra.mxu1 %v3456_v20  ;;  %v5205_v59 = vld [vmem:[#allocation18 + $0x3d4] ss:$8 sps:$4 sm:$0xff]   ;;  %v5203_v33 = vld [vmem:[#allocation18 + $0x3d0] ss:$8 sps:$4 sm:$0xff]   ;;  %v5211_v48 = vld [vmem:[#allocation18 + $0x3c4] ss:$8 sps:$4 sm:$0xff]  }
 0x53a   :  { %4325 = vmatpush1.bf16.msra.mxu0 %v5140_v12  ;;  %4366 = vmatpush1.bf16.msra.mxu1 %v5143_v13  ;;  %v5206_v8 = vld [vmem:[#allocation18 + $0x2c0] ss:$8 sps:$4 sm:$0xff]   ;;  %v5214_v49 = vld [vmem:[#allocation18 + $0x2b4] ss:$8 sps:$4 sm:$0xff]   ;;  %v5212_v54 = vld [vmem:[#allocation18 + $0x2b0] ss:$8 sps:$4 sm:$0xff]  }
 0x53b   :  { %4356 = vmatprep.mubr.bf16.mxu0 %v3459_v23  ;;  %4397 = vmatprep.mubr.bf16.mxu1 %v3461_v7  ;;  %v5209_v9 = vld [vmem:[#allocation18 + $0x3c0] ss:$8 sps:$4 sm:$0xff]   ;;  %v5217_v47 = vld [vmem:[#allocation18 + $0x3b4] ss:$8 sps:$4 sm:$0xff]   ;;  %v5215_v3 = vld [vmem:[#allocation18 + $0x3b0] ss:$8 sps:$4 sm:$0xff]  }
 0x53c   :  { %4326 = vmatprep.subr.bf16.mxu0 %v5148_v21  ;;  %4367 = vmatprep.subr.bf16.mxu1 %v5151_v16  ;;  %v5220_v14 = vld [vmem:[#allocation18 + $0x2a4] ss:$8 sps:$4 sm:$0xff]   ;;  %v5218_v50 = vld [vmem:[#allocation18 + $0x2a0] ss:$8 sps:$4 sm:$0xff]   ;;  %v5226_v10 = vld [vmem:[#allocation18 + $0x294] ss:$8 sps:$4 sm:$0xff]  }
 0x53d   :  { %v5223_v55 = vld [vmem:[#allocation18 + $0x3a4] ss:$8 sps:$4 sm:$0xff]   ;;  %v5221_v36 = vld [vmem:[#allocation18 + $0x3a0] ss:$8 sps:$4 sm:$0xff]   ;;  %v5229_v11 = vld [vmem:[#allocation18 + $0x394] ss:$8 sps:$4 sm:$0xff]  }
 0x53e   :  { %4327 = vmatpush1.bf16.msra.mxu0 %v5146_v27  ;;  %4368 = vmatpush1.bf16.msra.mxu1 %v5149_v6  ;;  %v5224_v12 = vld [vmem:[#allocation18 + $0x290] ss:$8 sps:$4 sm:$0xff]   ;;  %v5232_v15 = vld [vmem:[#allocation18 + $0x284] ss:$8 sps:$4 sm:$0xff]   ;;  %v3442_v21 = vmul.f32 0.2, %v5915_v62 }
 0x53f   :  { %4328 = vmatprep.subr.bf16.mxu0 %v5154_v29  ;;  %4369 = vmatprep.subr.bf16.mxu1 %v5157_v32  ;;  %v5227_v13 = vld [vmem:[#allocation18 + $0x390] ss:$8 sps:$4 sm:$0xff]   ;;  %v5235_v20 = vld [vmem:[#allocation18 + $0x384] ss:$8 sps:$4 sm:$0xff]   ;;  %v3444_v16 = vmul.f32 0.2, %v5917_v1 }
 0x540   :  { %v5230_v23 = vld [vmem:[#allocation18 + $0x280] ss:$8 sps:$4 sm:$0xff]   ;;  %v3450_v27 = vmax.f32 %v5915_v62, %v3442_v21 }
 0x541   :  { %v5233_v7 = vld [vmem:[#allocation18 + $0x380] ss:$8 sps:$4 sm:$0xff]   ;;  %v3452_v6 = vmax.f32 %v5917_v1, %v3444_v16 }
 0x542   :  { %4329 = vmatpush1.bf16.msra.mxu0 %v5152_v37  ;;  %4370 = vmatpush1.bf16.msra.mxu1 %v5155_v41  ;;  %v3458_v29 = vpack.c.bf16 %v3450_v27, %v3450_v27  ;;  %v3590_v62 = vld [vmem:[%s5949_s15] sm:$0x3] }
 0x543   :  { %4330 = vmatprep.subr.bf16.mxu0 %v5160_v45  ;;  %4371 = vmatprep.subr.bf16.mxu1 %v5163_v40  ;;  %v3460_v32 = vpack.c.bf16 %v3452_v6, %v3452_v6  ;;  %v3595_v1 = vrot.slane %v3590_v62, %v5674_v24 }
 0x546   :  { %4331 = vmatpush1.bf16.msra.mxu0 %v5158_v17  ;;  %4372 = vmatpush1.bf16.msra.mxu1 %v5161_v61 }
 0x547   :  { %4332 = vmatprep.subr.bf16.mxu0 %v5166_v4  ;;  %4373 = vmatprep.subr.bf16.mxu1 %v5169_v57 }
 0x54a   :  { %4333 = vmatpush1.bf16.msra.mxu0 %v5164_v63  ;;  %4374 = vmatpush1.bf16.msra.mxu1 %v5167_v0  ;;  %v3599_v63 = vrot.slane %v3590_v62, %v5677_v25 }
 0x54b   :  { %4334 = vmatprep.subr.bf16.mxu0 %v5172_v31  ;;  %4375 = vmatprep.subr.bf16.mxu1 %v5175_v38 }
 0x54e   :  { %4335 = vmatpush1.bf16.msra.mxu0 %v5170_v26  ;;  %4376 = vmatpush1.bf16.msra.mxu1 %v5173_v42 }
 0x54f   :  { %4336 = vmatprep.subr.bf16.mxu0 %v5178_v28  ;;  %4377 = vmatprep.subr.bf16.mxu1 %v5181_v19 }
 0x552   :  { %4337 = vmatpush1.bf16.msra.mxu0 %v5176_v34  ;;  %4378 = vmatpush1.bf16.msra.mxu1 %v5179_v43 }
 0x553   :  { %4338 = vmatprep.subr.bf16.mxu0 %v5184_v30  ;;  %4379 = vmatprep.subr.bf16.mxu1 %v5187_v44 }
 0x556   :  { %4339 = vmatpush1.bf16.msra.mxu0 %v5182_v46  ;;  %4380 = vmatpush1.bf16.msra.mxu1 %v5185_v22 }
 0x557   :  { %4340 = vmatprep.subr.bf16.mxu0 %v5190_v35  ;;  %4381 = vmatprep.subr.bf16.mxu1 %v5193_v39 }
 0x55a   :  { %4341 = vmatpush2.bf16.msra.mxu0 %v5188_v51  ;;  %4382 = vmatpush2.bf16.msra.mxu1 %v5191_v18 }
 0x55b   :  { %4342 = vmatprep.subr.bf16.mxu0 %v5196_v52  ;;  %4383 = vmatprep.subr.bf16.mxu1 %v5199_v53 }
 0x55e   :  { %4343 = vmatpush2.bf16.msra.mxu0 %v5194_v56  ;;  %4384 = vmatpush2.bf16.msra.mxu1 %v5197_v58 }
 0x55f   :  { %4344 = vmatprep.subr.bf16.mxu0 %v5202_v60  ;;  %4385 = vmatprep.subr.bf16.mxu1 %v5205_v59 }
 0x562   :  { %4345 = vmatpush2.bf16.msra.mxu0 %v5200_v2  ;;  %4386 = vmatpush2.bf16.msra.mxu1 %v5203_v33 }
 0x563   :  { %4346 = vmatprep.subr.bf16.mxu0 %v5208_v5  ;;  %4387 = vmatprep.subr.bf16.mxu1 %v5211_v48 }
 0x566   :  { %4347 = vmatpush2.bf16.msra.mxu0 %v5206_v8  ;;  %4388 = vmatpush2.bf16.msra.mxu1 %v5209_v9 }
 0x567   :  { %4348 = vmatprep.subr.bf16.mxu0 %v5214_v49  ;;  %4389 = vmatprep.subr.bf16.mxu1 %v5217_v47 }
 0x56a   :  { %4349 = vmatpush2.bf16.msra.mxu0 %v5212_v54  ;;  %4390 = vmatpush2.bf16.msra.mxu1 %v5215_v3 }
 0x56b   :  { %4350 = vmatprep.subr.bf16.mxu0 %v5220_v14  ;;  %4391 = vmatprep.subr.bf16.mxu1 %v5223_v55 }
 0x56e   :  { %4351 = vmatpush2.bf16.msra.mxu0 %v5218_v50  ;;  %4392 = vmatpush2.bf16.msra.mxu1 %v5221_v36 }
 0x56f   :  { %4352 = vmatprep.subr.bf16.mxu0 %v5226_v10  ;;  %4393 = vmatprep.subr.bf16.mxu1 %v5229_v11 }
 0x572   :  { %4353 = vmatpush2.bf16.msra.mxu0 %v5224_v12  ;;  %4394 = vmatpush2.bf16.msra.mxu1 %v5227_v13 }
 0x573   :  { %4354 = vmatprep.subr.bf16.mxu0 %v5232_v15  ;;  %4395 = vmatprep.subr.bf16.mxu1 %v5235_v20 }
 0x576   :  { %4355 = vmatpush2.bf16.msra.mxu0 %v5230_v23  ;;  %4396 = vmatpush2.bf16.msra.mxu1 %v5233_v7 }
 0x579   :  { %4357 = vmatmul.mubr.bf16.vlgmr.msra.gmra.mxu0 %v3458_v29  ;;  %4398 = vmatmul.mubr.bf16.vlgmr.msra.gmra.mxu1 %v3460_v32 }
 0x5f9   :  { %v4276_v37 = vpop.f32.mrf.mxu0  ;;  %v4317_v41 = vpop.f32.mrf.mxu1 }
 0x5fa   :  { %v4277_v0 = vadd.f32 %v4276_v37, %v3595_v1 }
 0x5fb   :  { %v4278_v45 = vpop.f32.mrf.mxu0  ;;  %v4319_v40 = vpop.f32.mrf.mxu1 }
 0x5fc   :  { %v4279_v31 = vadd.f32 %v4278_v45, %v3599_v63  ;;  %v4318_v38 = vadd.f32 %v4317_v41, %v4277_v0 }
 0x5fd   :  { %v4280_v17 = vpop.f32.mrf.mxu0  ;;  %v4321_v61 = vpop.f32.mrf.mxu1 }
 0x5fe   :  { %v4320_v28 = vadd.f32 %v4319_v40, %v4279_v31 }
 0x5ff   :  { %v4281_v4 = vpop.f32.mrf.mxu0  ;;  %v4322_v57 = vpop.f32.mrf.mxu1 }
 0x639   :  { %v4358_v26 = vpop.f32.mrf.mxu0  ;;  %v4399_v42 = vpop.f32.mrf.mxu1 }
 0x63a   :  { %v4359_v19 = vadd.f32 %v4358_v26, %v4318_v38 }
 0x63b   :  { %v4360_v34 = vpop.f32.mrf.mxu0  ;;  %v4401_v43 = vpop.f32.mrf.mxu1 }
 0x63c   :  { %v4400_v30 = vadd.f32 %v4399_v42, %v4359_v19  ;;  %v4361_v44 = vadd.f32 %v4360_v34, %v4320_v28 }
 0x63d   :  { %v4362_v46 = vpop.f32.mrf.mxu0  ;;  %v4403_v22 = vpop.f32.mrf.mxu1 }
 0x63e   :  { %5264 = vtanh.f32 %v4400_v30  ;;  %v4402_v35 = vadd.f32 %v4401_v43, %v4361_v44 }
 0x63f   :  { %v4363_v39 = vpop.f32.mrf.mxu0  ;;  %v4404_v51 = vpop.f32.mrf.mxu1 }
 0x640   :  { %5266 = vtanh.f32 %v4402_v35 }
 0x64b   :  { %v5265_v24 = vpop.eup %5264 }
 0x64c   :  { %4408 = vst [vmem:[%s5950_s16] sm:$0xff] %v5265_v24 }
 0x64d   :  { %v5267_v25 = vpop.eup %5266 }
 0x64e   :  { %4409 = vst [vmem:[%s5950_s16 + $0x8] sm:$0xff] %v5267_v25 }
 0x64f   :  { %4414 = vsyncpa [#allocation3], 1 }
 0x650   :  { %4415 = vsyncpa [#allocation5], 1 }
 0x651   :  { %4416 = vsyncpa [#allocation8], 1 }
 0x652   :  { %4417 = vsyncpa [#allocation11], 1 }
 0x653   :  { %4418 = vsyncpa [#allocation14], 1 }
 0x654   :  { %4419 = vsyncpa [#allocation17], 1 }

</bundles_post_ra>
